<compile_context>
chip_gen: v7x
topology: tpu7x:2x2x1
jax: 0.10.0
libtpu: 0.0.40
codegen_flags: <defaults>
</compile_context>

<pallas_src>
import jax
import jax.numpy as jnp
from jax.experimental import pallas as pl
from jax.experimental.pallas import tpu as pltpu


# ------------------------------ fused Encoder kernel ------------------------------

def _encoder_kernel(x_ref, wih_ref, bpre_ref, whh_ref, bhhn_ref,
                    wlin_ref, blin_ref, wctx_ref, bctx_ref,
                    go_ref, si_ref, ihp_ref):
    # x_ref:    (S, B, E)   embedded input, time-major (batch_first=False)
    # wih_ref:  (E, 6H)     [Wih_f^T | Wih_b^T], per-direction gate order [r|z|n]
    # bpre_ref: (1, 6H)     folded input biases (b_ih+b_hh for r,z; b_ih for n)
    # whh_ref:  (2H, 6H)    block-diagonal: [[Whh_f^T, 0], [0, Whh_b^T]]
    # bhhn_ref: (1, 6H)     [0, 0, b_hh_n_f | 0, 0, b_hh_n_b]
    # wlin_ref: (D, D)      attention Linear(D, D) weight, (in, out) layout
    # blin_ref: (1, D)
    # wctx_ref: (1, D)      attention Linear(D, 1) weight
    # bctx_ref: (1, 1)
    # go_ref:   (S, B, D)   gru_out output (D = 2H); stays in VMEM for the attention tail
    # si_ref:   (S, 1, D)   attention output s_i
    # ihp_ref:  (S, B, 6H)  VMEM scratch: hoisted input projections
    S, B, E = x_ref.shape
    D = go_ref.shape[-1]
    H = D // 2
    G = 3 * H

    # ---- hoisted input->hidden projection: all timesteps, both directions, one matmul ----
    x2 = x_ref[...].reshape(S * B, E)
    ihp = jnp.dot(x2, wih_ref[...], preferred_element_type=jnp.float32) + bpre_ref[...]
    ihp_ref[...] = ihp.reshape(S, B, 2 * G)

    whh = whh_ref[...]      # hoisted constant loads (reused every timestep)
    bhhn = bhhn_ref[...]

    # ---------------- sequential recurrence: both directions in one loop ----------------
    def step(t, h):         # h: (B, 2H) = [h_fwd | h_bwd]
        rev_t = S - 1 - t
        hh = jnp.dot(h, whh, preferred_element_type=jnp.float32) + bhhn     # (B, 6H)
        ih_f = ihp_ref[t]        # (B, 6H): forward uses cols [:3H]
        ih_b = ihp_ref[rev_t]    # (B, 6H): backward uses cols [3H:]

        def one_dir(ih, hhd, hd):        # ih, hhd: (B, 3H); hd: (B, H)
            r = jax.nn.sigmoid(ih[:, 0:H] + hhd[:, 0:H])
            z = jax.nn.sigmoid(ih[:, H:2 * H] + hhd[:, H:2 * H])
            n = jnp.tanh(ih[:, 2 * H:G] + r * hhd[:, 2 * H:G])
            return (1.0 - z) * n + z * hd

        h_f = one_dir(ih_f[:, 0:G], hh[:, 0:G], h[:, 0:H])
        h_b = one_dir(ih_b[:, G:2 * G], hh[:, G:2 * G], h[:, H:D])

        # forward hidden belongs to time t; backward hidden to (original) time rev_t
        go_ref[pl.ds(t, 1), :, 0:H] = h_f[None]
        go_ref[pl.ds(rev_t, 1), :, H:D] = h_b[None]
        return jnp.concatenate([h_f, h_b], axis=-1)

    h0 = jnp.zeros((B, D), jnp.float32)
    jax.lax.fori_loop(0, S, step, h0, unroll=True)

    # ------------------------------ fused attention tail ------------------------------
    g = go_ref[...]                                        # (S, B, D) already in VMEM
    g2 = g.reshape(S * B, D)
    u = jnp.tanh(jnp.dot(g2, wlin_ref[...], preferred_element_type=jnp.float32)
                 + blin_ref[...])
    cv = jnp.sum(u * wctx_ref[...], axis=-1, keepdims=True)          # (S*B, 1)
    cv = cv.reshape(S, B) + bctx_ref[...]                            # (S, B)
    # softmax over dim=1 (the batch axis), exactly as in the PyTorch module
    cv = cv - jnp.max(cv, axis=1, keepdims=True)
    e = jnp.exp(cv)
    alpha = e * pl.reciprocal(jnp.sum(e, axis=1, keepdims=True), approx=True)   # (S, B)
    si = jnp.sum(alpha[:, :, None] * g, axis=1)                      # (S, D)
    si_ref[...] = si[:, None, :].astype(si_ref.dtype)


# --------------------------------- host-side glue ----------------------------------

def init_params(key, vocab_size, embed_dim, hidden_dim):
    """PyTorch-layout parameters (same layout as nn.Embedding / nn.GRU / nn.Linear)."""
    ks = jax.random.split(key, 12)
    H, E = hidden_dim, embed_dim
    s_gru = 1.0 / jnp.sqrt(H)
    D = 2 * H
    s_lin = 1.0 / jnp.sqrt(D)
    u = lambda k, shape, s: jax.random.uniform(k, shape, jnp.float32, -s, s)
    return {
        "embedding": jax.random.normal(ks[0], (vocab_size, E), jnp.float32),
        # forward direction
        "w_ih_f": u(ks[1], (3 * H, E), s_gru),
        "w_hh_f": u(ks[2], (3 * H, H), s_gru),
        "b_ih_f": u(ks[3], (3 * H,), s_gru),
        "b_hh_f": u(ks[4], (3 * H,), s_gru),
        # backward direction
        "w_ih_b": u(ks[5], (3 * H, E), s_gru),
        "w_hh_b": u(ks[6], (3 * H, H), s_gru),
        "b_ih_b": u(ks[7], (3 * H,), s_gru),
        "b_hh_b": u(ks[8], (3 * H,), s_gru),
        # attention (operates on D = 2H)
        "att_w_lin": u(ks[9], (D, D), s_lin),
        "att_b_lin": u(ks[10], (D,), s_lin),
        "att_w_ctx": u(ks[11], (1, D), s_lin),
        "att_b_ctx": jnp.zeros((1,), jnp.float32),
    }


def pack_encoder_params(p):
    """One-time repack (transpose / stack / bias-fold) into the kernel layout."""
    H = p["w_hh_f"].shape[1]
    D, G = 2 * H, 3 * H

    wih_cat = jnp.concatenate([p["w_ih_f"].T, p["w_ih_b"].T], axis=1)            # (E, 6H)

    def fold_rz(b_ih, b_hh):   # fold b_hh into r/z pre-activations; keep n's b_hh out
        return b_ih + jnp.concatenate([b_hh[:2 * H], jnp.zeros((H,), b_hh.dtype)])

    b_pre = jnp.concatenate([fold_rz(p["b_ih_f"], p["b_hh_f"]),
                             fold_rz(p["b_ih_b"], p["b_hh_b"])])[None, :]        # (1, 6H)

    def n_only(b_hh):
        return jnp.concatenate([jnp.zeros((2 * H,), b_hh.dtype), b_hh[2 * H:]])

    b_hhn = jnp.concatenate([n_only(p["b_hh_f"]), n_only(p["b_hh_b"])])[None, :]  # (1, 6H)

    whh_bd = jnp.zeros((D, 2 * G), jnp.float32)                                  # (2H, 6H)
    whh_bd = whh_bd.at[0:H, 0:G].set(p["w_hh_f"].T)
    whh_bd = whh_bd.at[H:D, G:2 * G].set(p["w_hh_b"].T)

    return {
        "embedding": p["embedding"],
        "wih_cat": wih_cat,
        "b_pre": b_pre,
        "b_hhn": b_hhn,
        "whh_bd": whh_bd,
        "att_w_lin_t": p["att_w_lin"].T,
        "att_b_lin": p["att_b_lin"][None, :],
        "att_w_ctx": p["att_w_ctx"].reshape(1, D),
        "att_b_ctx": p["att_b_ctx"].reshape(1, 1),
    }


def encoder_forward(packed, text):
    """text: (S, B) int32 (seq-major).  Returns (s_i (S,1,2H), gru_out (S,B,2H))."""
    S, B = text.shape
    D = packed["whh_bd"].shape[0]
    embedded = jnp.take(packed["embedding"], text, axis=0)        # (S, B, E) — glue gather
    gru_out, s_i = pl.pallas_call(
        _encoder_kernel,
        out_shape=(jax.ShapeDtypeStruct((S, B, D), jnp.float32),
                   jax.ShapeDtypeStruct((S, 1, D), jnp.float32)),
        in_specs=[pl.BlockSpec(memory_space=pltpu.MemorySpace.VMEM)] * 9,
        out_specs=(pl.BlockSpec(memory_space=pltpu.MemorySpace.VMEM),
                   pl.BlockSpec(memory_space=pltpu.MemorySpace.VMEM)),
        scratch_shapes=[pltpu.VMEM((S, B, 3 * D), jnp.float32)],
    )(embedded, packed["wih_cat"], packed["b_pre"], packed["whh_bd"], packed["b_hhn"],
      packed["att_w_lin_t"], packed["att_b_lin"], packed["att_w_ctx"], packed["att_b_ctx"])
    return s_i, gru_out


# ---------------------------- pure-JAX reference (check) ----------------------------

def encoder_reference(params, text):
    emb = jnp.take(params["embedding"], text, axis=0)

    def run_dir(xs, w_ih, w_hh, b_ih, b_hh):
        Hd = w_hh.shape[1]

        def stepf(h, x):
            gi = x @ w_ih.T + b_ih
            gh = h @ w_hh.T + b_hh
            r = jax.nn.sigmoid(gi[:, :Hd] + gh[:, :Hd])
            z = jax.nn.sigmoid(gi[:, Hd:2 * Hd] + gh[:, Hd:2 * Hd])
            n = jnp.tanh(gi[:, 2 * Hd:] + r * gh[:, 2 * Hd:])
            h_new = (1.0 - z) * n + z * h
            return h_new, h_new

        h0 = jnp.zeros((xs.shape[1], Hd), jnp.float32)
        _, out = jax.lax.scan(stepf, h0, xs)
        return out

    out_f = run_dir(emb, params["w_ih_f"], params["w_hh_f"], params["b_ih_f"], params["b_hh_f"])
    out_b = run_dir(emb[::-1], params["w_ih_b"], params["w_hh_b"],
                    params["b_ih_b"], params["b_hh_b"])[::-1]
    gru_out = jnp.concatenate([out_f, out_b], axis=-1)
    u = jnp.tanh(gru_out @ params["att_w_lin"].T + params["att_b_lin"])
    cv = u @ params["att_w_ctx"].T + params["att_b_ctx"]
    alpha = jax.nn.softmax(cv, axis=1)
    s_i = jnp.transpose(alpha, (0, 2, 1)) @ gru_out
    return s_i, gru_out


if __name__ == "__main__":
    VOCAB_SIZE = 50
    EMBEDDING_DIMENSION = 32
    ENCODER_HIDDEN_DIMENSION = 64
    S, B = 8, 2   # seq_len, batch (seq-major, like pad_sequence default)

    key = jax.random.PRNGKey(0)
    k_param, k_text = jax.random.split(key)
    params = init_params(k_param, VOCAB_SIZE, EMBEDDING_DIMENSION, ENCODER_HIDDEN_DIMENSION)
    packed = pack_encoder_params(params)   # one-time weight packing, not per forward
    text = jax.random.randint(k_text, (S, B), 0, VOCAB_SIZE, dtype=jnp.int32)

    s_i, gru_out = jax.jit(encoder_forward)(packed, text)
    jax.block_until_ready((s_i, gru_out))

    assert s_i.shape == (S, 1, 2 * ENCODER_HIDDEN_DIMENSION)
    assert gru_out.shape == (S, B, 2 * ENCODER_HIDDEN_DIMENSION)

    # sanity check against a pure-JAX reference of the PyTorch module
    s_i_ref, gru_out_ref = jax.jit(encoder_reference)(params, text)
    assert jnp.allclose(gru_out, gru_out_ref, atol=2e-2, rtol=2e-2), \
        float(jnp.max(jnp.abs(gru_out - gru_out_ref)))
    assert jnp.allclose(s_i, s_i_ref, atol=2e-2, rtol=2e-2), \
        float(jnp.max(jnp.abs(s_i - s_i_ref)))

    print("KERNEL_OK")
</pallas_src>

<mosaic_0001>
module attributes {stable_mosaic.version = 11 : i64} {
  func.func @_encoder_kernel(%arg0: memref<8x2x32xf32, #tpu.memory_space<vmem>>, %arg1: memref<32x384xf32, #tpu.memory_space<vmem>>, %arg2: memref<1x384xf32, #tpu.memory_space<vmem>>, %arg3: memref<128x384xf32, #tpu.memory_space<vmem>>, %arg4: memref<1x384xf32, #tpu.memory_space<vmem>>, %arg5: memref<128x128xf32, #tpu.memory_space<vmem>>, %arg6: memref<1x128xf32, #tpu.memory_space<vmem>>, %arg7: memref<1x128xf32, #tpu.memory_space<vmem>>, %arg8: memref<1x1xf32, #tpu.memory_space<vmem>>, %arg9: memref<8x2x128xf32, #tpu.memory_space<vmem>>, %arg10: memref<8x1x128xf32, #tpu.memory_space<vmem>>, %arg11: memref<8x2x384xf32, #tpu.memory_space<vmem>>) attributes {dimension_semantics = [], scalar_prefetch = 0 : i64, scratch_operands = 1 : i64, tpu.core_type = #tpu.core_type<tc>} {
    %c0 = arith.constant 0 : index
    %c0_0 = arith.constant 0 : index
    %c0_1 = arith.constant 0 : index
    %0 = vector.load %arg0[%c0, %c0_0, %c0_1] : memref<8x2x32xf32, #tpu.memory_space<vmem>>, vector<8x2x32xf32>
    %1 = vector.shape_cast %0 : vector<8x2x32xf32> to vector<16x32xf32>
    %c0_2 = arith.constant 0 : index
    %c0_3 = arith.constant 0 : index
    %2 = vector.load %arg1[%c0_2, %c0_3] : memref<32x384xf32, #tpu.memory_space<vmem>>, vector<32x384xf32>
    %cst = arith.constant dense<0.000000e+00> : vector<16x384xf32>
    %3 = tpu.matmul %1, %2, %cst {dimension_numbers = #tpu.dot_dimension_numbers<[1], [0], [0], [1], [0, 0, 1, 1], [], []>} : vector<16x32xf32>, vector<32x384xf32>, vector<16x384xf32> -> vector<16x384xf32>
    %c0_4 = arith.constant 0 : index
    %c0_5 = arith.constant 0 : index
    %4 = vector.load %arg2[%c0_4, %c0_5] : memref<1x384xf32, #tpu.memory_space<vmem>>, vector<1x384xf32>
    %5 = vector.broadcast %4 : vector<1x384xf32> to vector<16x384xf32>
    %6 = arith.addf %3, %5 : vector<16x384xf32>
    %7 = vector.shape_cast %6 : vector<16x384xf32> to vector<8x2x384xf32>
    %c0_6 = arith.constant 0 : index
    %c0_7 = arith.constant 0 : index
    %c0_8 = arith.constant 0 : index
    %8 = vector.load %arg11[%c0_6, %c0_7, %c0_8] : memref<8x2x384xf32, #tpu.memory_space<vmem>>, vector<8x2x384xf32>
    tpu.vector_store %arg11[%c0_6, %c0_7, %c0_8], %7 {strides = array<i32>} : memref<8x2x384xf32, #tpu.memory_space<vmem>>, vector<8x2x384xf32>,
    %c0_9 = arith.constant 0 : index
    %c0_10 = arith.constant 0 : index
    %9 = vector.load %arg3[%c0_9, %c0_10] : memref<128x384xf32, #tpu.memory_space<vmem>>, vector<128x384xf32>
    %c0_11 = arith.constant 0 : index
    %c0_12 = arith.constant 0 : index
    %10 = vector.load %arg4[%c0_11, %c0_12] : memref<1x384xf32, #tpu.memory_space<vmem>>, vector<1x384xf32>
    %cst_13 = arith.constant 0.000000e+00 : f32
    %11 = vector.broadcast %cst_13 : f32 to vector<2x128xf32>
    %c0_i32 = arith.constant 0 : i32
    %c7_i32 = arith.constant 7 : i32
    %12 = arith.subi %c7_i32, %c0_i32 : i32
    %cst_14 = arith.constant dense<0.000000e+00> : vector<2x384xf32>
    %13 = tpu.matmul %11, %9, %cst_14 {dimension_numbers = #tpu.dot_dimension_numbers<[1], [0], [0], [1], [0, 0, 1, 1], [], []>} : vector<2x128xf32>, vector<128x384xf32>, vector<2x384xf32> -> vector<2x384xf32>
    %14 = vector.broadcast %10 : vector<1x384xf32> to vector<2x384xf32>
    %15 = arith.addf %13, %14 : vector<2x384xf32>
    %16 = arith.index_cast %c0_i32 : i32 to index
    %c0_15 = arith.constant 0 : index
    %c0_16 = arith.constant 0 : index
    %17 = vector.load %arg11[%16, %c0_15, %c0_16] : memref<8x2x384xf32, #tpu.memory_space<vmem>>, vector<1x2x384xf32>
    %18 = vector.shape_cast %17 : vector<1x2x384xf32> to vector<2x384xf32>
    %19 = arith.index_cast %12 : i32 to index
    %c0_17 = arith.constant 0 : index
    %c0_18 = arith.constant 0 : index
    %20 = vector.load %arg11[%19, %c0_17, %c0_18] : memref<8x2x384xf32, #tpu.memory_space<vmem>>, vector<1x2x384xf32>
    %21 = vector.shape_cast %20 : vector<1x2x384xf32> to vector<2x384xf32>
    %22 = vector.extract_strided_slice %18 {offsets = [0, 0], sizes = [2, 192], strides = [1, 1]} : vector<2x384xf32> to vector<2x192xf32>
    %23 = vector.extract_strided_slice %15 {offsets = [0, 0], sizes = [2, 192], strides = [1, 1]} : vector<2x384xf32> to vector<2x192xf32>
    %24 = vector.extract_strided_slice %11 {offsets = [0, 0], sizes = [2, 64], strides = [1, 1]} : vector<2x128xf32> to vector<2x64xf32>
    %25 = vector.extract_strided_slice %22 {offsets = [0, 0], sizes = [2, 64], strides = [1, 1]} : vector<2x192xf32> to vector<2x64xf32>
    %26 = vector.extract_strided_slice %23 {offsets = [0, 0], sizes = [2, 64], strides = [1, 1]} : vector<2x192xf32> to vector<2x64xf32>
    %27 = arith.addf %25, %26 : vector<2x64xf32>
    %28 = arith.negf %27 : vector<2x64xf32>
    %29 = math.exp %28 : vector<2x64xf32>
    %cst_19 = arith.constant 1.000000e+00 : f32
    %30 = vector.broadcast %cst_19 : f32 to vector<2x64xf32>
    %31 = arith.addf %30, %29 : vector<2x64xf32>
    %32 = arith.divf %30, %31 : vector<2x64xf32>
    %33 = vector.extract_strided_slice %22 {offsets = [0, 64], sizes = [2, 64], strides = [1, 1]} : vector<2x192xf32> to vector<2x64xf32>
    %34 = vector.extract_strided_slice %23 {offsets = [0, 64], sizes = [2, 64], strides = [1, 1]} : vector<2x192xf32> to vector<2x64xf32>
    %35 = arith.addf %33, %34 : vector<2x64xf32>
    %36 = arith.negf %35 : vector<2x64xf32>
    %37 = math.exp %36 : vector<2x64xf32>
    %cst_20 = arith.constant 1.000000e+00 : f32
    %38 = vector.broadcast %cst_20 : f32 to vector<2x64xf32>
    %39 = arith.addf %38, %37 : vector<2x64xf32>
    %40 = arith.divf %38, %39 : vector<2x64xf32>
    %41 = vector.extract_strided_slice %22 {offsets = [0, 128], sizes = [2, 64], strides = [1, 1]} : vector<2x192xf32> to vector<2x64xf32>
    %42 = vector.extract_strided_slice %23 {offsets = [0, 128], sizes = [2, 64], strides = [1, 1]} : vector<2x192xf32> to vector<2x64xf32>
    %43 = arith.mulf %32, %42 : vector<2x64xf32>
    %44 = arith.addf %41, %43 : vector<2x64xf32>
    %45 = math.tanh %44 : vector<2x64xf32>
    %cst_21 = arith.constant 1.000000e+00 : f32
    %46 = vector.broadcast %cst_21 : f32 to vector<2x64xf32>
    %47 = arith.subf %46, %40 : vector<2x64xf32>
    %48 = arith.mulf %47, %45 : vector<2x64xf32>
    %49 = arith.mulf %40, %24 : vector<2x64xf32>
    %50 = arith.addf %48, %49 : vector<2x64xf32>
    %51 = vector.extract_strided_slice %21 {offsets = [0, 192], sizes = [2, 192], strides = [1, 1]} : vector<2x384xf32> to vector<2x192xf32>
    %52 = vector.extract_strided_slice %15 {offsets = [0, 192], sizes = [2, 192], strides = [1, 1]} : vector<2x384xf32> to vector<2x192xf32>
    %53 = vector.extract_strided_slice %11 {offsets = [0, 64], sizes = [2, 64], strides = [1, 1]} : vector<2x128xf32> to vector<2x64xf32>
    %54 = vector.extract_strided_slice %51 {offsets = [0, 0], sizes = [2, 64], strides = [1, 1]} : vector<2x192xf32> to vector<2x64xf32>
    %55 = vector.extract_strided_slice %52 {offsets = [0, 0], sizes = [2, 64], strides = [1, 1]} : vector<2x192xf32> to vector<2x64xf32>
    %56 = arith.addf %54, %55 : vector<2x64xf32>
    %57 = arith.negf %56 : vector<2x64xf32>
    %58 = math.exp %57 : vector<2x64xf32>
    %cst_22 = arith.constant 1.000000e+00 : f32
    %59 = vector.broadcast %cst_22 : f32 to vector<2x64xf32>
    %60 = arith.addf %59, %58 : vector<2x64xf32>
    %61 = arith.divf %59, %60 : vector<2x64xf32>
    %62 = vector.extract_strided_slice %51 {offsets = [0, 64], sizes = [2, 64], strides = [1, 1]} : vector<2x192xf32> to vector<2x64xf32>
    %63 = vector.extract_strided_slice %52 {offsets = [0, 64], sizes = [2, 64], strides = [1, 1]} : vector<2x192xf32> to vector<2x64xf32>
    %64 = arith.addf %62, %63 : vector<2x64xf32>
    %65 = arith.negf %64 : vector<2x64xf32>
    %66 = math.exp %65 : vector<2x64xf32>
    %cst_23 = arith.constant 1.000000e+00 : f32
    %67 = vector.broadcast %cst_23 : f32 to vector<2x64xf32>
    %68 = arith.addf %67, %66 : vector<2x64xf32>
    %69 = arith.divf %67, %68 : vector<2x64xf32>
    %70 = vector.extract_strided_slice %51 {offsets = [0, 128], sizes = [2, 64], strides = [1, 1]} : vector<2x192xf32> to vector<2x64xf32>
    %71 = vector.extract_strided_slice %52 {offsets = [0, 128], sizes = [2, 64], strides = [1, 1]} : vector<2x192xf32> to vector<2x64xf32>
    %72 = arith.mulf %61, %71 : vector<2x64xf32>
    %73 = arith.addf %70, %72 : vector<2x64xf32>
    %74 = math.tanh %73 : vector<2x64xf32>
    %cst_24 = arith.constant 1.000000e+00 : f32
    %75 = vector.broadcast %cst_24 : f32 to vector<2x64xf32>
    %76 = arith.subf %75, %69 : vector<2x64xf32>
    %77 = arith.mulf %76, %74 : vector<2x64xf32>
    %78 = arith.mulf %69, %53 : vector<2x64xf32>
    %79 = arith.addf %77, %78 : vector<2x64xf32>
    %80 = vector.shape_cast %50 : vector<2x64xf32> to vector<1x2x64xf32>
    %81 = arith.index_cast %c0_i32 : i32 to index
    %c0_25 = arith.constant 0 : index
    %c0_26 = arith.constant 0 : index
    %82 = vector.load %arg9[%81, %c0_25, %c0_26] : memref<8x2x128xf32, #tpu.memory_space<vmem>>, vector<1x2x64xf32>
    tpu.vector_store %arg9[%81, %c0_25, %c0_26], %80 {strides = array<i32>} : memref<8x2x128xf32, #tpu.memory_space<vmem>>, vector<1x2x64xf32>,
    %83 = vector.shape_cast %79 : vector<2x64xf32> to vector<1x2x64xf32>
    %84 = arith.index_cast %12 : i32 to index
    %c0_27 = arith.constant 0 : index
    %c64 = arith.constant 64 : index
    %85 = vector.load %arg9[%84, %c0_27, %c64] : memref<8x2x128xf32, #tpu.memory_space<vmem>>, vector<1x2x64xf32>
    tpu.vector_store %arg9[%84, %c0_27, %c64], %83 {strides = array<i32>} : memref<8x2x128xf32, #tpu.memory_space<vmem>>, vector<1x2x64xf32>,
    %86 = tpu.concatenate %50, %79 in 1 : vector<2x64xf32>, vector<2x64xf32> -> vector<2x128xf32>
    %c1_i32 = arith.constant 1 : i32
    %c7_i32_28 = arith.constant 7 : i32
    %87 = arith.subi %c7_i32_28, %c1_i32 : i32
    %cst_29 = arith.constant dense<0.000000e+00> : vector<2x384xf32>
    %88 = tpu.matmul %86, %9, %cst_29 {dimension_numbers = #tpu.dot_dimension_numbers<[1], [0], [0], [1], [0, 0, 1, 1], [], []>} : vector<2x128xf32>, vector<128x384xf32>, vector<2x384xf32> -> vector<2x384xf32>
    %89 = vector.broadcast %10 : vector<1x384xf32> to vector<2x384xf32>
    %90 = arith.addf %88, %89 : vector<2x384xf32>
    %91 = arith.index_cast %c1_i32 : i32 to index
    %c0_30 = arith.constant 0 : index
    %c0_31 = arith.constant 0 : index
    %92 = vector.load %arg11[%91, %c0_30, %c0_31] : memref<8x2x384xf32, #tpu.memory_space<vmem>>, vector<1x2x384xf32>
    %93 = vector.shape_cast %92 : vector<1x2x384xf32> to vector<2x384xf32>
    %94 = arith.index_cast %87 : i32 to index
    %c0_32 = arith.constant 0 : index
    %c0_33 = arith.constant 0 : index
    %95 = vector.load %arg11[%94, %c0_32, %c0_33] : memref<8x2x384xf32, #tpu.memory_space<vmem>>, vector<1x2x384xf32>
    %96 = vector.shape_cast %95 : vector<1x2x384xf32> to vector<2x384xf32>
    %97 = vector.extract_strided_slice %93 {offsets = [0, 0], sizes = [2, 192], strides = [1, 1]} : vector<2x384xf32> to vector<2x192xf32>
    %98 = vector.extract_strided_slice %90 {offsets = [0, 0], sizes = [2, 192], strides = [1, 1]} : vector<2x384xf32> to vector<2x192xf32>
    %99 = vector.extract_strided_slice %86 {offsets = [0, 0], sizes = [2, 64], strides = [1, 1]} : vector<2x128xf32> to vector<2x64xf32>
    %100 = vector.extract_strided_slice %97 {offsets = [0, 0], sizes = [2, 64], strides = [1, 1]} : vector<2x192xf32> to vector<2x64xf32>
    %101 = vector.extract_strided_slice %98 {offsets = [0, 0], sizes = [2, 64], strides = [1, 1]} : vector<2x192xf32> to vector<2x64xf32>
    %102 = arith.addf %100, %101 : vector<2x64xf32>
    %103 = arith.negf %102 : vector<2x64xf32>
    %104 = math.exp %103 : vector<2x64xf32>
    %cst_34 = arith.constant 1.000000e+00 : f32
    %105 = vector.broadcast %cst_34 : f32 to vector<2x64xf32>
    %106 = arith.addf %105, %104 : vector<2x64xf32>
    %107 = arith.divf %105, %106 : vector<2x64xf32>
    %108 = vector.extract_strided_slice %97 {offsets = [0, 64], sizes = [2, 64], strides = [1, 1]} : vector<2x192xf32> to vector<2x64xf32>
    %109 = vector.extract_strided_slice %98 {offsets = [0, 64], sizes = [2, 64], strides = [1, 1]} : vector<2x192xf32> to vector<2x64xf32>
    %110 = arith.addf %108, %109 : vector<2x64xf32>
    %111 = arith.negf %110 : vector<2x64xf32>
    %112 = math.exp %111 : vector<2x64xf32>
    %cst_35 = arith.constant 1.000000e+00 : f32
    %113 = vector.broadcast %cst_35 : f32 to vector<2x64xf32>
    %114 = arith.addf %113, %112 : vector<2x64xf32>
    %115 = arith.divf %113, %114 : vector<2x64xf32>
    %116 = vector.extract_strided_slice %97 {offsets = [0, 128], sizes = [2, 64], strides = [1, 1]} : vector<2x192xf32> to vector<2x64xf32>
    %117 = vector.extract_strided_slice %98 {offsets = [0, 128], sizes = [2, 64], strides = [1, 1]} : vector<2x192xf32> to vector<2x64xf32>
    %118 = arith.mulf %107, %117 : vector<2x64xf32>
    %119 = arith.addf %116, %118 : vector<2x64xf32>
    %120 = math.tanh %119 : vector<2x64xf32>
    %cst_36 = arith.constant 1.000000e+00 : f32
    %121 = vector.broadcast %cst_36 : f32 to vector<2x64xf32>
    %122 = arith.subf %121, %115 : vector<2x64xf32>
    %123 = arith.mulf %122, %120 : vector<2x64xf32>
    %124 = arith.mulf %115, %99 : vector<2x64xf32>
    %125 = arith.addf %123, %124 : vector<2x64xf32>
    %126 = vector.extract_strided_slice %96 {offsets = [0, 192], sizes = [2, 192], strides = [1, 1]} : vector<2x384xf32> to vector<2x192xf32>
    %127 = vector.extract_strided_slice %90 {offsets = [0, 192], sizes = [2, 192], strides = [1, 1]} : vector<2x384xf32> to vector<2x192xf32>
    %128 = vector.extract_strided_slice %86 {offsets = [0, 64], sizes = [2, 64], strides = [1, 1]} : vector<2x128xf32> to vector<2x64xf32>
    %129 = vector.extract_strided_slice %126 {offsets = [0, 0], sizes = [2, 64], strides = [1, 1]} : vector<2x192xf32> to vector<2x64xf32>
    %130 = vector.extract_strided_slice %127 {offsets = [0, 0], sizes = [2, 64], strides = [1, 1]} : vector<2x192xf32> to vector<2x64xf32>
    %131 = arith.addf %129, %130 : vector<2x64xf32>
    %132 = arith.negf %131 : vector<2x64xf32>
    %133 = math.exp %132 : vector<2x64xf32>
    %cst_37 = arith.constant 1.000000e+00 : f32
    %134 = vector.broadcast %cst_37 : f32 to vector<2x64xf32>
    %135 = arith.addf %134, %133 : vector<2x64xf32>
    %136 = arith.divf %134, %135 : vector<2x64xf32>
    %137 = vector.extract_strided_slice %126 {offsets = [0, 64], sizes = [2, 64], strides = [1, 1]} : vector<2x192xf32> to vector<2x64xf32>
    %138 = vector.extract_strided_slice %127 {offsets = [0, 64], sizes = [2, 64], strides = [1, 1]} : vector<2x192xf32> to vector<2x64xf32>
    %139 = arith.addf %137, %138 : vector<2x64xf32>
    %140 = arith.negf %139 : vector<2x64xf32>
    %141 = math.exp %140 : vector<2x64xf32>
    %cst_38 = arith.constant 1.000000e+00 : f32
    %142 = vector.broadcast %cst_38 : f32 to vector<2x64xf32>
    %143 = arith.addf %142, %141 : vector<2x64xf32>
    %144 = arith.divf %142, %143 : vector<2x64xf32>
    %145 = vector.extract_strided_slice %126 {offsets = [0, 128], sizes = [2, 64], strides = [1, 1]} : vector<2x192xf32> to vector<2x64xf32>
    %146 = vector.extract_strided_slice %127 {offsets = [0, 128], sizes = [2, 64], strides = [1, 1]} : vector<2x192xf32> to vector<2x64xf32>
    %147 = arith.mulf %136, %146 : vector<2x64xf32>
    %148 = arith.addf %145, %147 : vector<2x64xf32>
    %149 = math.tanh %148 : vector<2x64xf32>
    %cst_39 = arith.constant 1.000000e+00 : f32
    %150 = vector.broadcast %cst_39 : f32 to vector<2x64xf32>
    %151 = arith.subf %150, %144 : vector<2x64xf32>
    %152 = arith.mulf %151, %149 : vector<2x64xf32>
    %153 = arith.mulf %144, %128 : vector<2x64xf32>
    %154 = arith.addf %152, %153 : vector<2x64xf32>
    %155 = vector.shape_cast %125 : vector<2x64xf32> to vector<1x2x64xf32>
    %156 = arith.index_cast %c1_i32 : i32 to index
    %c0_40 = arith.constant 0 : index
    %c0_41 = arith.constant 0 : index
    %157 = vector.load %arg9[%156, %c0_40, %c0_41] : memref<8x2x128xf32, #tpu.memory_space<vmem>>, vector<1x2x64xf32>
    tpu.vector_store %arg9[%156, %c0_40, %c0_41], %155 {strides = array<i32>} : memref<8x2x128xf32, #tpu.memory_space<vmem>>, vector<1x2x64xf32>,
    %158 = vector.shape_cast %154 : vector<2x64xf32> to vector<1x2x64xf32>
    %159 = arith.index_cast %87 : i32 to index
    %c0_42 = arith.constant 0 : index
    %c64_43 = arith.constant 64 : index
    %160 = vector.load %arg9[%159, %c0_42, %c64_43] : memref<8x2x128xf32, #tpu.memory_space<vmem>>, vector<1x2x64xf32>
    tpu.vector_store %arg9[%159, %c0_42, %c64_43], %158 {strides = array<i32>} : memref<8x2x128xf32, #tpu.memory_space<vmem>>, vector<1x2x64xf32>,
    %161 = tpu.concatenate %125, %154 in 1 : vector<2x64xf32>, vector<2x64xf32> -> vector<2x128xf32>
    %c2_i32 = arith.constant 2 : i32
    %c7_i32_44 = arith.constant 7 : i32
    %162 = arith.subi %c7_i32_44, %c2_i32 : i32
    %cst_45 = arith.constant dense<0.000000e+00> : vector<2x384xf32>
    %163 = tpu.matmul %161, %9, %cst_45 {dimension_numbers = #tpu.dot_dimension_numbers<[1], [0], [0], [1], [0, 0, 1, 1], [], []>} : vector<2x128xf32>, vector<128x384xf32>, vector<2x384xf32> -> vector<2x384xf32>
    %164 = vector.broadcast %10 : vector<1x384xf32> to vector<2x384xf32>
    %165 = arith.addf %163, %164 : vector<2x384xf32>
    %166 = arith.index_cast %c2_i32 : i32 to index
    %c0_46 = arith.constant 0 : index
    %c0_47 = arith.constant 0 : index
    %167 = vector.load %arg11[%166, %c0_46, %c0_47] : memref<8x2x384xf32, #tpu.memory_space<vmem>>, vector<1x2x384xf32>
    %168 = vector.shape_cast %167 : vector<1x2x384xf32> to vector<2x384xf32>
    %169 = arith.index_cast %162 : i32 to index
    %c0_48 = arith.constant 0 : index
    %c0_49 = arith.constant 0 : index
    %170 = vector.load %arg11[%169, %c0_48, %c0_49] : memref<8x2x384xf32, #tpu.memory_space<vmem>>, vector<1x2x384xf32>
    %171 = vector.shape_cast %170 : vector<1x2x384xf32> to vector<2x384xf32>
    %172 = vector.extract_strided_slice %168 {offsets = [0, 0], sizes = [2, 192], strides = [1, 1]} : vector<2x384xf32> to vector<2x192xf32>
    %173 = vector.extract_strided_slice %165 {offsets = [0, 0], sizes = [2, 192], strides = [1, 1]} : vector<2x384xf32> to vector<2x192xf32>
    %174 = vector.extract_strided_slice %161 {offsets = [0, 0], sizes = [2, 64], strides = [1, 1]} : vector<2x128xf32> to vector<2x64xf32>
    %175 = vector.extract_strided_slice %172 {offsets = [0, 0], sizes = [2, 64], strides = [1, 1]} : vector<2x192xf32> to vector<2x64xf32>
    %176 = vector.extract_strided_slice %173 {offsets = [0, 0], sizes = [2, 64], strides = [1, 1]} : vector<2x192xf32> to vector<2x64xf32>
    %177 = arith.addf %175, %176 : vector<2x64xf32>
    %178 = arith.negf %177 : vector<2x64xf32>
    %179 = math.exp %178 : vector<2x64xf32>
    %cst_50 = arith.constant 1.000000e+00 : f32
    %180 = vector.broadcast %cst_50 : f32 to vector<2x64xf32>
    %181 = arith.addf %180, %179 : vector<2x64xf32>
    %182 = arith.divf %180, %181 : vector<2x64xf32>
    %183 = vector.extract_strided_slice %172 {offsets = [0, 64], sizes = [2, 64], strides = [1, 1]} : vector<2x192xf32> to vector<2x64xf32>
    %184 = vector.extract_strided_slice %173 {offsets = [0, 64], sizes = [2, 64], strides = [1, 1]} : vector<2x192xf32> to vector<2x64xf32>
    %185 = arith.addf %183, %184 : vector<2x64xf32>
    %186 = arith.negf %185 : vector<2x64xf32>
    %187 = math.exp %186 : vector<2x64xf32>
    %cst_51 = arith.constant 1.000000e+00 : f32
    %188 = vector.broadcast %cst_51 : f32 to vector<2x64xf32>
    %189 = arith.addf %188, %187 : vector<2x64xf32>
    %190 = arith.divf %188, %189 : vector<2x64xf32>
    %191 = vector.extract_strided_slice %172 {offsets = [0, 128], sizes = [2, 64], strides = [1, 1]} : vector<2x192xf32> to vector<2x64xf32>
    %192 = vector.extract_strided_slice %173 {offsets = [0, 128], sizes = [2, 64], strides = [1, 1]} : vector<2x192xf32> to vector<2x64xf32>
    %193 = arith.mulf %182, %192 : vector<2x64xf32>
    %194 = arith.addf %191, %193 : vector<2x64xf32>
    %195 = math.tanh %194 : vector<2x64xf32>
    %cst_52 = arith.constant 1.000000e+00 : f32
    %196 = vector.broadcast %cst_52 : f32 to vector<2x64xf32>
    %197 = arith.subf %196, %190 : vector<2x64xf32>
    %198 = arith.mulf %197, %195 : vector<2x64xf32>
    %199 = arith.mulf %190, %174 : vector<2x64xf32>
    %200 = arith.addf %198, %199 : vector<2x64xf32>
    %201 = vector.extract_strided_slice %171 {offsets = [0, 192], sizes = [2, 192], strides = [1, 1]} : vector<2x384xf32> to vector<2x192xf32>
    %202 = vector.extract_strided_slice %165 {offsets = [0, 192], sizes = [2, 192], strides = [1, 1]} : vector<2x384xf32> to vector<2x192xf32>
    %203 = vector.extract_strided_slice %161 {offsets = [0, 64], sizes = [2, 64], strides = [1, 1]} : vector<2x128xf32> to vector<2x64xf32>
    %204 = vector.extract_strided_slice %201 {offsets = [0, 0], sizes = [2, 64], strides = [1, 1]} : vector<2x192xf32> to vector<2x64xf32>
    %205 = vector.extract_strided_slice %202 {offsets = [0, 0], sizes = [2, 64], strides = [1, 1]} : vector<2x192xf32> to vector<2x64xf32>
    %206 = arith.addf %204, %205 : vector<2x64xf32>
    %207 = arith.negf %206 : vector<2x64xf32>
    %208 = math.exp %207 : vector<2x64xf32>
    %cst_53 = arith.constant 1.000000e+00 : f32
    %209 = vector.broadcast %cst_53 : f32 to vector<2x64xf32>
    %210 = arith.addf %209, %208 : vector<2x64xf32>
    %211 = arith.divf %209, %210 : vector<2x64xf32>
    %212 = vector.extract_strided_slice %201 {offsets = [0, 64], sizes = [2, 64], strides = [1, 1]} : vector<2x192xf32> to vector<2x64xf32>
    %213 = vector.extract_strided_slice %202 {offsets = [0, 64], sizes = [2, 64], strides = [1, 1]} : vector<2x192xf32> to vector<2x64xf32>
    %214 = arith.addf %212, %213 : vector<2x64xf32>
    %215 = arith.negf %214 : vector<2x64xf32>
    %216 = math.exp %215 : vector<2x64xf32>
    %cst_54 = arith.constant 1.000000e+00 : f32
    %217 = vector.broadcast %cst_54 : f32 to vector<2x64xf32>
    %218 = arith.addf %217, %216 : vector<2x64xf32>
    %219 = arith.divf %217, %218 : vector<2x64xf32>
    %220 = vector.extract_strided_slice %201 {offsets = [0, 128], sizes = [2, 64], strides = [1, 1]} : vector<2x192xf32> to vector<2x64xf32>
    %221 = vector.extract_strided_slice %202 {offsets = [0, 128], sizes = [2, 64], strides = [1, 1]} : vector<2x192xf32> to vector<2x64xf32>
    %222 = arith.mulf %211, %221 : vector<2x64xf32>
    %223 = arith.addf %220, %222 : vector<2x64xf32>
    %224 = math.tanh %223 : vector<2x64xf32>
    %cst_55 = arith.constant 1.000000e+00 : f32
    %225 = vector.broadcast %cst_55 : f32 to vector<2x64xf32>
    %226 = arith.subf %225, %219 : vector<2x64xf32>
    %227 = arith.mulf %226, %224 : vector<2x64xf32>
    %228 = arith.mulf %219, %203 : vector<2x64xf32>
    %229 = arith.addf %227, %228 : vector<2x64xf32>
    %230 = vector.shape_cast %200 : vector<2x64xf32> to vector<1x2x64xf32>
    %231 = arith.index_cast %c2_i32 : i32 to index
    %c0_56 = arith.constant 0 : index
    %c0_57 = arith.constant 0 : index
    %232 = vector.load %arg9[%231, %c0_56, %c0_57] : memref<8x2x128xf32, #tpu.memory_space<vmem>>, vector<1x2x64xf32>
    tpu.vector_store %arg9[%231, %c0_56, %c0_57], %230 {strides = array<i32>} : memref<8x2x128xf32, #tpu.memory_space<vmem>>, vector<1x2x64xf32>,
    %233 = vector.shape_cast %229 : vector<2x64xf32> to vector<1x2x64xf32>
    %234 = arith.index_cast %162 : i32 to index
    %c0_58 = arith.constant 0 : index
    %c64_59 = arith.constant 64 : index
    %235 = vector.load %arg9[%234, %c0_58, %c64_59] : memref<8x2x128xf32, #tpu.memory_space<vmem>>, vector<1x2x64xf32>
    tpu.vector_store %arg9[%234, %c0_58, %c64_59], %233 {strides = array<i32>} : memref<8x2x128xf32, #tpu.memory_space<vmem>>, vector<1x2x64xf32>,
    %236 = tpu.concatenate %200, %229 in 1 : vector<2x64xf32>, vector<2x64xf32> -> vector<2x128xf32>
    %c3_i32 = arith.constant 3 : i32
    %c7_i32_60 = arith.constant 7 : i32
    %237 = arith.subi %c7_i32_60, %c3_i32 : i32
    %cst_61 = arith.constant dense<0.000000e+00> : vector<2x384xf32>
    %238 = tpu.matmul %236, %9, %cst_61 {dimension_numbers = #tpu.dot_dimension_numbers<[1], [0], [0], [1], [0, 0, 1, 1], [], []>} : vector<2x128xf32>, vector<128x384xf32>, vector<2x384xf32> -> vector<2x384xf32>
    %239 = vector.broadcast %10 : vector<1x384xf32> to vector<2x384xf32>
    %240 = arith.addf %238, %239 : vector<2x384xf32>
    %241 = arith.index_cast %c3_i32 : i32 to index
    %c0_62 = arith.constant 0 : index
    %c0_63 = arith.constant 0 : index
    %242 = vector.load %arg11[%241, %c0_62, %c0_63] : memref<8x2x384xf32, #tpu.memory_space<vmem>>, vector<1x2x384xf32>
    %243 = vector.shape_cast %242 : vector<1x2x384xf32> to vector<2x384xf32>
    %244 = arith.index_cast %237 : i32 to index
    %c0_64 = arith.constant 0 : index
    %c0_65 = arith.constant 0 : index
    %245 = vector.load %arg11[%244, %c0_64, %c0_65] : memref<8x2x384xf32, #tpu.memory_space<vmem>>, vector<1x2x384xf32>
    %246 = vector.shape_cast %245 : vector<1x2x384xf32> to vector<2x384xf32>
    %247 = vector.extract_strided_slice %243 {offsets = [0, 0], sizes = [2, 192], strides = [1, 1]} : vector<2x384xf32> to vector<2x192xf32>
    %248 = vector.extract_strided_slice %240 {offsets = [0, 0], sizes = [2, 192], strides = [1, 1]} : vector<2x384xf32> to vector<2x192xf32>
    %249 = vector.extract_strided_slice %236 {offsets = [0, 0], sizes = [2, 64], strides = [1, 1]} : vector<2x128xf32> to vector<2x64xf32>
    %250 = vector.extract_strided_slice %247 {offsets = [0, 0], sizes = [2, 64], strides = [1, 1]} : vector<2x192xf32> to vector<2x64xf32>
    %251 = vector.extract_strided_slice %248 {offsets = [0, 0], sizes = [2, 64], strides = [1, 1]} : vector<2x192xf32> to vector<2x64xf32>
    %252 = arith.addf %250, %251 : vector<2x64xf32>
    %253 = arith.negf %252 : vector<2x64xf32>
    %254 = math.exp %253 : vector<2x64xf32>
    %cst_66 = arith.constant 1.000000e+00 : f32
    %255 = vector.broadcast %cst_66 : f32 to vector<2x64xf32>
    %256 = arith.addf %255, %254 : vector<2x64xf32>
    %257 = arith.divf %255, %256 : vector<2x64xf32>
    %258 = vector.extract_strided_slice %247 {offsets = [0, 64], sizes = [2, 64], strides = [1, 1]} : vector<2x192xf32> to vector<2x64xf32>
    %259 = vector.extract_strided_slice %248 {offsets = [0, 64], sizes = [2, 64], strides = [1, 1]} : vector<2x192xf32> to vector<2x64xf32>
    %260 = arith.addf %258, %259 : vector<2x64xf32>
    %261 = arith.negf %260 : vector<2x64xf32>
    %262 = math.exp %261 : vector<2x64xf32>
    %cst_67 = arith.constant 1.000000e+00 : f32
    %263 = vector.broadcast %cst_67 : f32 to vector<2x64xf32>
    %264 = arith.addf %263, %262 : vector<2x64xf32>
    %265 = arith.divf %263, %264 : vector<2x64xf32>
    %266 = vector.extract_strided_slice %247 {offsets = [0, 128], sizes = [2, 64], strides = [1, 1]} : vector<2x192xf32> to vector<2x64xf32>
    %267 = vector.extract_strided_slice %248 {offsets = [0, 128], sizes = [2, 64], strides = [1, 1]} : vector<2x192xf32> to vector<2x64xf32>
    %268 = arith.mulf %257, %267 : vector<2x64xf32>
    %269 = arith.addf %266, %268 : vector<2x64xf32>
    %270 = math.tanh %269 : vector<2x64xf32>
    %cst_68 = arith.constant 1.000000e+00 : f32
    %271 = vector.broadcast %cst_68 : f32 to vector<2x64xf32>
    %272 = arith.subf %271, %265 : vector<2x64xf32>
    %273 = arith.mulf %272, %270 : vector<2x64xf32>
    %274 = arith.mulf %265, %249 : vector<2x64xf32>
    %275 = arith.addf %273, %274 : vector<2x64xf32>
    %276 = vector.extract_strided_slice %246 {offsets = [0, 192], sizes = [2, 192], strides = [1, 1]} : vector<2x384xf32> to vector<2x192xf32>
    %277 = vector.extract_strided_slice %240 {offsets = [0, 192], sizes = [2, 192], strides = [1, 1]} : vector<2x384xf32> to vector<2x192xf32>
    %278 = vector.extract_strided_slice %236 {offsets = [0, 64], sizes = [2, 64], strides = [1, 1]} : vector<2x128xf32> to vector<2x64xf32>
    %279 = vector.extract_strided_slice %276 {offsets = [0, 0], sizes = [2, 64], strides = [1, 1]} : vector<2x192xf32> to vector<2x64xf32>
    %280 = vector.extract_strided_slice %277 {offsets = [0, 0], sizes = [2, 64], strides = [1, 1]} : vector<2x192xf32> to vector<2x64xf32>
    %281 = arith.addf %279, %280 : vector<2x64xf32>
    %282 = arith.negf %281 : vector<2x64xf32>
    %283 = math.exp %282 : vector<2x64xf32>
    %cst_69 = arith.constant 1.000000e+00 : f32
    %284 = vector.broadcast %cst_69 : f32 to vector<2x64xf32>
    %285 = arith.addf %284, %283 : vector<2x64xf32>
    %286 = arith.divf %284, %285 : vector<2x64xf32>
    %287 = vector.extract_strided_slice %276 {offsets = [0, 64], sizes = [2, 64], strides = [1, 1]} : vector<2x192xf32> to vector<2x64xf32>
    %288 = vector.extract_strided_slice %277 {offsets = [0, 64], sizes = [2, 64], strides = [1, 1]} : vector<2x192xf32> to vector<2x64xf32>
    %289 = arith.addf %287, %288 : vector<2x64xf32>
    %290 = arith.negf %289 : vector<2x64xf32>
    %291 = math.exp %290 : vector<2x64xf32>
    %cst_70 = arith.constant 1.000000e+00 : f32
    %292 = vector.broadcast %cst_70 : f32 to vector<2x64xf32>
    %293 = arith.addf %292, %291 : vector<2x64xf32>
    %294 = arith.divf %292, %293 : vector<2x64xf32>
    %295 = vector.extract_strided_slice %276 {offsets = [0, 128], sizes = [2, 64], strides = [1, 1]} : vector<2x192xf32> to vector<2x64xf32>
    %296 = vector.extract_strided_slice %277 {offsets = [0, 128], sizes = [2, 64], strides = [1, 1]} : vector<2x192xf32> to vector<2x64xf32>
    %297 = arith.mulf %286, %296 : vector<2x64xf32>
    %298 = arith.addf %295, %297 : vector<2x64xf32>
    %299 = math.tanh %298 : vector<2x64xf32>
    %cst_71 = arith.constant 1.000000e+00 : f32
    %300 = vector.broadcast %cst_71 : f32 to vector<2x64xf32>
    %301 = arith.subf %300, %294 : vector<2x64xf32>
    %302 = arith.mulf %301, %299 : vector<2x64xf32>
    %303 = arith.mulf %294, %278 : vector<2x64xf32>
    %304 = arith.addf %302, %303 : vector<2x64xf32>
    %305 = vector.shape_cast %275 : vector<2x64xf32> to vector<1x2x64xf32>
    %306 = arith.index_cast %c3_i32 : i32 to index
    %c0_72 = arith.constant 0 : index
    %c0_73 = arith.constant 0 : index
    %307 = vector.load %arg9[%306, %c0_72, %c0_73] : memref<8x2x128xf32, #tpu.memory_space<vmem>>, vector<1x2x64xf32>
    tpu.vector_store %arg9[%306, %c0_72, %c0_73], %305 {strides = array<i32>} : memref<8x2x128xf32, #tpu.memory_space<vmem>>, vector<1x2x64xf32>,
    %308 = vector.shape_cast %304 : vector<2x64xf32> to vector<1x2x64xf32>
    %309 = arith.index_cast %237 : i32 to index
    %c0_74 = arith.constant 0 : index
    %c64_75 = arith.constant 64 : index
    %310 = vector.load %arg9[%309, %c0_74, %c64_75] : memref<8x2x128xf32, #tpu.memory_space<vmem>>, vector<1x2x64xf32>
    tpu.vector_store %arg9[%309, %c0_74, %c64_75], %308 {strides = array<i32>} : memref<8x2x128xf32, #tpu.memory_space<vmem>>, vector<1x2x64xf32>,
    %311 = tpu.concatenate %275, %304 in 1 : vector<2x64xf32>, vector<2x64xf32> -> vector<2x128xf32>
    %c4_i32 = arith.constant 4 : i32
    %c7_i32_76 = arith.constant 7 : i32
    %312 = arith.subi %c7_i32_76, %c4_i32 : i32
    %cst_77 = arith.constant dense<0.000000e+00> : vector<2x384xf32>
    %313 = tpu.matmul %311, %9, %cst_77 {dimension_numbers = #tpu.dot_dimension_numbers<[1], [0], [0], [1], [0, 0, 1, 1], [], []>} : vector<2x128xf32>, vector<128x384xf32>, vector<2x384xf32> -> vector<2x384xf32>
    %314 = vector.broadcast %10 : vector<1x384xf32> to vector<2x384xf32>
    %315 = arith.addf %313, %314 : vector<2x384xf32>
    %316 = arith.index_cast %c4_i32 : i32 to index
    %c0_78 = arith.constant 0 : index
    %c0_79 = arith.constant 0 : index
    %317 = vector.load %arg11[%316, %c0_78, %c0_79] : memref<8x2x384xf32, #tpu.memory_space<vmem>>, vector<1x2x384xf32>
    %318 = vector.shape_cast %317 : vector<1x2x384xf32> to vector<2x384xf32>
    %319 = arith.index_cast %312 : i32 to index
    %c0_80 = arith.constant 0 : index
    %c0_81 = arith.constant 0 : index
    %320 = vector.load %arg11[%319, %c0_80, %c0_81] : memref<8x2x384xf32, #tpu.memory_space<vmem>>, vector<1x2x384xf32>
    %321 = vector.shape_cast %320 : vector<1x2x384xf32> to vector<2x384xf32>
    %322 = vector.extract_strided_slice %318 {offsets = [0, 0], sizes = [2, 192], strides = [1, 1]} : vector<2x384xf32> to vector<2x192xf32>
    %323 = vector.extract_strided_slice %315 {offsets = [0, 0], sizes = [2, 192], strides = [1, 1]} : vector<2x384xf32> to vector<2x192xf32>
    %324 = vector.extract_strided_slice %311 {offsets = [0, 0], sizes = [2, 64], strides = [1, 1]} : vector<2x128xf32> to vector<2x64xf32>
    %325 = vector.extract_strided_slice %322 {offsets = [0, 0], sizes = [2, 64], strides = [1, 1]} : vector<2x192xf32> to vector<2x64xf32>
    %326 = vector.extract_strided_slice %323 {offsets = [0, 0], sizes = [2, 64], strides = [1, 1]} : vector<2x192xf32> to vector<2x64xf32>
    %327 = arith.addf %325, %326 : vector<2x64xf32>
    %328 = arith.negf %327 : vector<2x64xf32>
    %329 = math.exp %328 : vector<2x64xf32>
    %cst_82 = arith.constant 1.000000e+00 : f32
    %330 = vector.broadcast %cst_82 : f32 to vector<2x64xf32>
    %331 = arith.addf %330, %329 : vector<2x64xf32>
    %332 = arith.divf %330, %331 : vector<2x64xf32>
    %333 = vector.extract_strided_slice %322 {offsets = [0, 64], sizes = [2, 64], strides = [1, 1]} : vector<2x192xf32> to vector<2x64xf32>
    %334 = vector.extract_strided_slice %323 {offsets = [0, 64], sizes = [2, 64], strides = [1, 1]} : vector<2x192xf32> to vector<2x64xf32>
    %335 = arith.addf %333, %334 : vector<2x64xf32>
    %336 = arith.negf %335 : vector<2x64xf32>
    %337 = math.exp %336 : vector<2x64xf32>
    %cst_83 = arith.constant 1.000000e+00 : f32
    %338 = vector.broadcast %cst_83 : f32 to vector<2x64xf32>
    %339 = arith.addf %338, %337 : vector<2x64xf32>
    %340 = arith.divf %338, %339 : vector<2x64xf32>
    %341 = vector.extract_strided_slice %322 {offsets = [0, 128], sizes = [2, 64], strides = [1, 1]} : vector<2x192xf32> to vector<2x64xf32>
    %342 = vector.extract_strided_slice %323 {offsets = [0, 128], sizes = [2, 64], strides = [1, 1]} : vector<2x192xf32> to vector<2x64xf32>
    %343 = arith.mulf %332, %342 : vector<2x64xf32>
    %344 = arith.addf %341, %343 : vector<2x64xf32>
    %345 = math.tanh %344 : vector<2x64xf32>
    %cst_84 = arith.constant 1.000000e+00 : f32
    %346 = vector.broadcast %cst_84 : f32 to vector<2x64xf32>
    %347 = arith.subf %346, %340 : vector<2x64xf32>
    %348 = arith.mulf %347, %345 : vector<2x64xf32>
    %349 = arith.mulf %340, %324 : vector<2x64xf32>
    %350 = arith.addf %348, %349 : vector<2x64xf32>
    %351 = vector.extract_strided_slice %321 {offsets = [0, 192], sizes = [2, 192], strides = [1, 1]} : vector<2x384xf32> to vector<2x192xf32>
    %352 = vector.extract_strided_slice %315 {offsets = [0, 192], sizes = [2, 192], strides = [1, 1]} : vector<2x384xf32> to vector<2x192xf32>
    %353 = vector.extract_strided_slice %311 {offsets = [0, 64], sizes = [2, 64], strides = [1, 1]} : vector<2x128xf32> to vector<2x64xf32>
    %354 = vector.extract_strided_slice %351 {offsets = [0, 0], sizes = [2, 64], strides = [1, 1]} : vector<2x192xf32> to vector<2x64xf32>
    %355 = vector.extract_strided_slice %352 {offsets = [0, 0], sizes = [2, 64], strides = [1, 1]} : vector<2x192xf32> to vector<2x64xf32>
    %356 = arith.addf %354, %355 : vector<2x64xf32>
    %357 = arith.negf %356 : vector<2x64xf32>
    %358 = math.exp %357 : vector<2x64xf32>
    %cst_85 = arith.constant 1.000000e+00 : f32
    %359 = vector.broadcast %cst_85 : f32 to vector<2x64xf32>
    %360 = arith.addf %359, %358 : vector<2x64xf32>
    %361 = arith.divf %359, %360 : vector<2x64xf32>
    %362 = vector.extract_strided_slice %351 {offsets = [0, 64], sizes = [2, 64], strides = [1, 1]} : vector<2x192xf32> to vector<2x64xf32>
    %363 = vector.extract_strided_slice %352 {offsets = [0, 64], sizes = [2, 64], strides = [1, 1]} : vector<2x192xf32> to vector<2x64xf32>
    %364 = arith.addf %362, %363 : vector<2x64xf32>
    %365 = arith.negf %364 : vector<2x64xf32>
    %366 = math.exp %365 : vector<2x64xf32>
    %cst_86 = arith.constant 1.000000e+00 : f32
    %367 = vector.broadcast %cst_86 : f32 to vector<2x64xf32>
    %368 = arith.addf %367, %366 : vector<2x64xf32>
    %369 = arith.divf %367, %368 : vector<2x64xf32>
    %370 = vector.extract_strided_slice %351 {offsets = [0, 128], sizes = [2, 64], strides = [1, 1]} : vector<2x192xf32> to vector<2x64xf32>
    %371 = vector.extract_strided_slice %352 {offsets = [0, 128], sizes = [2, 64], strides = [1, 1]} : vector<2x192xf32> to vector<2x64xf32>
    %372 = arith.mulf %361, %371 : vector<2x64xf32>
    %373 = arith.addf %370, %372 : vector<2x64xf32>
    %374 = math.tanh %373 : vector<2x64xf32>
    %cst_87 = arith.constant 1.000000e+00 : f32
    %375 = vector.broadcast %cst_87 : f32 to vector<2x64xf32>
    %376 = arith.subf %375, %369 : vector<2x64xf32>
    %377 = arith.mulf %376, %374 : vector<2x64xf32>
    %378 = arith.mulf %369, %353 : vector<2x64xf32>
    %379 = arith.addf %377, %378 : vector<2x64xf32>
    %380 = vector.shape_cast %350 : vector<2x64xf32> to vector<1x2x64xf32>
    %381 = arith.index_cast %c4_i32 : i32 to index
    %c0_88 = arith.constant 0 : index
    %c0_89 = arith.constant 0 : index
    %382 = vector.load %arg9[%381, %c0_88, %c0_89] : memref<8x2x128xf32, #tpu.memory_space<vmem>>, vector<1x2x64xf32>
    tpu.vector_store %arg9[%381, %c0_88, %c0_89], %380 {strides = array<i32>} : memref<8x2x128xf32, #tpu.memory_space<vmem>>, vector<1x2x64xf32>,
    %383 = vector.shape_cast %379 : vector<2x64xf32> to vector<1x2x64xf32>
    %384 = arith.index_cast %312 : i32 to index
    %c0_90 = arith.constant 0 : index
    %c64_91 = arith.constant 64 : index
    %385 = vector.load %arg9[%384, %c0_90, %c64_91] : memref<8x2x128xf32, #tpu.memory_space<vmem>>, vector<1x2x64xf32>
    tpu.vector_store %arg9[%384, %c0_90, %c64_91], %383 {strides = array<i32>} : memref<8x2x128xf32, #tpu.memory_space<vmem>>, vector<1x2x64xf32>,
    %386 = tpu.concatenate %350, %379 in 1 : vector<2x64xf32>, vector<2x64xf32> -> vector<2x128xf32>
    %c5_i32 = arith.constant 5 : i32
    %c7_i32_92 = arith.constant 7 : i32
    %387 = arith.subi %c7_i32_92, %c5_i32 : i32
    %cst_93 = arith.constant dense<0.000000e+00> : vector<2x384xf32>
    %388 = tpu.matmul %386, %9, %cst_93 {dimension_numbers = #tpu.dot_dimension_numbers<[1], [0], [0], [1], [0, 0, 1, 1], [], []>} : vector<2x128xf32>, vector<128x384xf32>, vector<2x384xf32> -> vector<2x384xf32>
    %389 = vector.broadcast %10 : vector<1x384xf32> to vector<2x384xf32>
    %390 = arith.addf %388, %389 : vector<2x384xf32>
    %391 = arith.index_cast %c5_i32 : i32 to index
    %c0_94 = arith.constant 0 : index
    %c0_95 = arith.constant 0 : index
    %392 = vector.load %arg11[%391, %c0_94, %c0_95] : memref<8x2x384xf32, #tpu.memory_space<vmem>>, vector<1x2x384xf32>
    %393 = vector.shape_cast %392 : vector<1x2x384xf32> to vector<2x384xf32>
    %394 = arith.index_cast %387 : i32 to index
    %c0_96 = arith.constant 0 : index
    %c0_97 = arith.constant 0 : index
    %395 = vector.load %arg11[%394, %c0_96, %c0_97] : memref<8x2x384xf32, #tpu.memory_space<vmem>>, vector<1x2x384xf32>
    %396 = vector.shape_cast %395 : vector<1x2x384xf32> to vector<2x384xf32>
    %397 = vector.extract_strided_slice %393 {offsets = [0, 0], sizes = [2, 192], strides = [1, 1]} : vector<2x384xf32> to vector<2x192xf32>
    %398 = vector.extract_strided_slice %390 {offsets = [0, 0], sizes = [2, 192], strides = [1, 1]} : vector<2x384xf32> to vector<2x192xf32>
    %399 = vector.extract_strided_slice %386 {offsets = [0, 0], sizes = [2, 64], strides = [1, 1]} : vector<2x128xf32> to vector<2x64xf32>
    %400 = vector.extract_strided_slice %397 {offsets = [0, 0], sizes = [2, 64], strides = [1, 1]} : vector<2x192xf32> to vector<2x64xf32>
    %401 = vector.extract_strided_slice %398 {offsets = [0, 0], sizes = [2, 64], strides = [1, 1]} : vector<2x192xf32> to vector<2x64xf32>
    %402 = arith.addf %400, %401 : vector<2x64xf32>
    %403 = arith.negf %402 : vector<2x64xf32>
    %404 = math.exp %403 : vector<2x64xf32>
    %cst_98 = arith.constant 1.000000e+00 : f32
    %405 = vector.broadcast %cst_98 : f32 to vector<2x64xf32>
    %406 = arith.addf %405, %404 : vector<2x64xf32>
    %407 = arith.divf %405, %406 : vector<2x64xf32>
    %408 = vector.extract_strided_slice %397 {offsets = [0, 64], sizes = [2, 64], strides = [1, 1]} : vector<2x192xf32> to vector<2x64xf32>
    %409 = vector.extract_strided_slice %398 {offsets = [0, 64], sizes = [2, 64], strides = [1, 1]} : vector<2x192xf32> to vector<2x64xf32>
    %410 = arith.addf %408, %409 : vector<2x64xf32>
    %411 = arith.negf %410 : vector<2x64xf32>
    %412 = math.exp %411 : vector<2x64xf32>
    %cst_99 = arith.constant 1.000000e+00 : f32
    %413 = vector.broadcast %cst_99 : f32 to vector<2x64xf32>
    %414 = arith.addf %413, %412 : vector<2x64xf32>
    %415 = arith.divf %413, %414 : vector<2x64xf32>
    %416 = vector.extract_strided_slice %397 {offsets = [0, 128], sizes = [2, 64], strides = [1, 1]} : vector<2x192xf32> to vector<2x64xf32>
    %417 = vector.extract_strided_slice %398 {offsets = [0, 128], sizes = [2, 64], strides = [1, 1]} : vector<2x192xf32> to vector<2x64xf32>
    %418 = arith.mulf %407, %417 : vector<2x64xf32>
    %419 = arith.addf %416, %418 : vector<2x64xf32>
    %420 = math.tanh %419 : vector<2x64xf32>
    %cst_100 = arith.constant 1.000000e+00 : f32
    %421 = vector.broadcast %cst_100 : f32 to vector<2x64xf32>
    %422 = arith.subf %421, %415 : vector<2x64xf32>
    %423 = arith.mulf %422, %420 : vector<2x64xf32>
    %424 = arith.mulf %415, %399 : vector<2x64xf32>
    %425 = arith.addf %423, %424 : vector<2x64xf32>
    %426 = vector.extract_strided_slice %396 {offsets = [0, 192], sizes = [2, 192], strides = [1, 1]} : vector<2x384xf32> to vector<2x192xf32>
    %427 = vector.extract_strided_slice %390 {offsets = [0, 192], sizes = [2, 192], strides = [1, 1]} : vector<2x384xf32> to vector<2x192xf32>
    %428 = vector.extract_strided_slice %386 {offsets = [0, 64], sizes = [2, 64], strides = [1, 1]} : vector<2x128xf32> to vector<2x64xf32>
    %429 = vector.extract_strided_slice %426 {offsets = [0, 0], sizes = [2, 64], strides = [1, 1]} : vector<2x192xf32> to vector<2x64xf32>
    %430 = vector.extract_strided_slice %427 {offsets = [0, 0], sizes = [2, 64], strides = [1, 1]} : vector<2x192xf32> to vector<2x64xf32>
    %431 = arith.addf %429, %430 : vector<2x64xf32>
    %432 = arith.negf %431 : vector<2x64xf32>
    %433 = math.exp %432 : vector<2x64xf32>
    %cst_101 = arith.constant 1.000000e+00 : f32
    %434 = vector.broadcast %cst_101 : f32 to vector<2x64xf32>
    %435 = arith.addf %434, %433 : vector<2x64xf32>
    %436 = arith.divf %434, %435 : vector<2x64xf32>
    %437 = vector.extract_strided_slice %426 {offsets = [0, 64], sizes = [2, 64], strides = [1, 1]} : vector<2x192xf32> to vector<2x64xf32>
    %438 = vector.extract_strided_slice %427 {offsets = [0, 64], sizes = [2, 64], strides = [1, 1]} : vector<2x192xf32> to vector<2x64xf32>
    %439 = arith.addf %437, %438 : vector<2x64xf32>
    %440 = arith.negf %439 : vector<2x64xf32>
    %441 = math.exp %440 : vector<2x64xf32>
    %cst_102 = arith.constant 1.000000e+00 : f32
    %442 = vector.broadcast %cst_102 : f32 to vector<2x64xf32>
    %443 = arith.addf %442, %441 : vector<2x64xf32>
    %444 = arith.divf %442, %443 : vector<2x64xf32>
    %445 = vector.extract_strided_slice %426 {offsets = [0, 128], sizes = [2, 64], strides = [1, 1]} : vector<2x192xf32> to vector<2x64xf32>
    %446 = vector.extract_strided_slice %427 {offsets = [0, 128], sizes = [2, 64], strides = [1, 1]} : vector<2x192xf32> to vector<2x64xf32>
    %447 = arith.mulf %436, %446 : vector<2x64xf32>
    %448 = arith.addf %445, %447 : vector<2x64xf32>
    %449 = math.tanh %448 : vector<2x64xf32>
    %cst_103 = arith.constant 1.000000e+00 : f32
    %450 = vector.broadcast %cst_103 : f32 to vector<2x64xf32>
    %451 = arith.subf %450, %444 : vector<2x64xf32>
    %452 = arith.mulf %451, %449 : vector<2x64xf32>
    %453 = arith.mulf %444, %428 : vector<2x64xf32>
    %454 = arith.addf %452, %453 : vector<2x64xf32>
    %455 = vector.shape_cast %425 : vector<2x64xf32> to vector<1x2x64xf32>
    %456 = arith.index_cast %c5_i32 : i32 to index
    %c0_104 = arith.constant 0 : index
    %c0_105 = arith.constant 0 : index
    %457 = vector.load %arg9[%456, %c0_104, %c0_105] : memref<8x2x128xf32, #tpu.memory_space<vmem>>, vector<1x2x64xf32>
    tpu.vector_store %arg9[%456, %c0_104, %c0_105], %455 {strides = array<i32>} : memref<8x2x128xf32, #tpu.memory_space<vmem>>, vector<1x2x64xf32>,
    %458 = vector.shape_cast %454 : vector<2x64xf32> to vector<1x2x64xf32>
    %459 = arith.index_cast %387 : i32 to index
    %c0_106 = arith.constant 0 : index
    %c64_107 = arith.constant 64 : index
    %460 = vector.load %arg9[%459, %c0_106, %c64_107] : memref<8x2x128xf32, #tpu.memory_space<vmem>>, vector<1x2x64xf32>
    tpu.vector_store %arg9[%459, %c0_106, %c64_107], %458 {strides = array<i32>} : memref<8x2x128xf32, #tpu.memory_space<vmem>>, vector<1x2x64xf32>,
    %461 = tpu.concatenate %425, %454 in 1 : vector<2x64xf32>, vector<2x64xf32> -> vector<2x128xf32>
    %c6_i32 = arith.constant 6 : i32
    %c7_i32_108 = arith.constant 7 : i32
    %462 = arith.subi %c7_i32_108, %c6_i32 : i32
    %cst_109 = arith.constant dense<0.000000e+00> : vector<2x384xf32>
    %463 = tpu.matmul %461, %9, %cst_109 {dimension_numbers = #tpu.dot_dimension_numbers<[1], [0], [0], [1], [0, 0, 1, 1], [], []>} : vector<2x128xf32>, vector<128x384xf32>, vector<2x384xf32> -> vector<2x384xf32>
    %464 = vector.broadcast %10 : vector<1x384xf32> to vector<2x384xf32>
    %465 = arith.addf %463, %464 : vector<2x384xf32>
    %466 = arith.index_cast %c6_i32 : i32 to index
    %c0_110 = arith.constant 0 : index
    %c0_111 = arith.constant 0 : index
    %467 = vector.load %arg11[%466, %c0_110, %c0_111] : memref<8x2x384xf32, #tpu.memory_space<vmem>>, vector<1x2x384xf32>
    %468 = vector.shape_cast %467 : vector<1x2x384xf32> to vector<2x384xf32>
    %469 = arith.index_cast %462 : i32 to index
    %c0_112 = arith.constant 0 : index
    %c0_113 = arith.constant 0 : index
    %470 = vector.load %arg11[%469, %c0_112, %c0_113] : memref<8x2x384xf32, #tpu.memory_space<vmem>>, vector<1x2x384xf32>
    %471 = vector.shape_cast %470 : vector<1x2x384xf32> to vector<2x384xf32>
    %472 = vector.extract_strided_slice %468 {offsets = [0, 0], sizes = [2, 192], strides = [1, 1]} : vector<2x384xf32> to vector<2x192xf32>
    %473 = vector.extract_strided_slice %465 {offsets = [0, 0], sizes = [2, 192], strides = [1, 1]} : vector<2x384xf32> to vector<2x192xf32>
    %474 = vector.extract_strided_slice %461 {offsets = [0, 0], sizes = [2, 64], strides = [1, 1]} : vector<2x128xf32> to vector<2x64xf32>
    %475 = vector.extract_strided_slice %472 {offsets = [0, 0], sizes = [2, 64], strides = [1, 1]} : vector<2x192xf32> to vector<2x64xf32>
    %476 = vector.extract_strided_slice %473 {offsets = [0, 0], sizes = [2, 64], strides = [1, 1]} : vector<2x192xf32> to vector<2x64xf32>
    %477 = arith.addf %475, %476 : vector<2x64xf32>
    %478 = arith.negf %477 : vector<2x64xf32>
    %479 = math.exp %478 : vector<2x64xf32>
    %cst_114 = arith.constant 1.000000e+00 : f32
    %480 = vector.broadcast %cst_114 : f32 to vector<2x64xf32>
    %481 = arith.addf %480, %479 : vector<2x64xf32>
    %482 = arith.divf %480, %481 : vector<2x64xf32>
    %483 = vector.extract_strided_slice %472 {offsets = [0, 64], sizes = [2, 64], strides = [1, 1]} : vector<2x192xf32> to vector<2x64xf32>
    %484 = vector.extract_strided_slice %473 {offsets = [0, 64], sizes = [2, 64], strides = [1, 1]} : vector<2x192xf32> to vector<2x64xf32>
    %485 = arith.addf %483, %484 : vector<2x64xf32>
    %486 = arith.negf %485 : vector<2x64xf32>
    %487 = math.exp %486 : vector<2x64xf32>
    %cst_115 = arith.constant 1.000000e+00 : f32
    %488 = vector.broadcast %cst_115 : f32 to vector<2x64xf32>
    %489 = arith.addf %488, %487 : vector<2x64xf32>
    %490 = arith.divf %488, %489 : vector<2x64xf32>
    %491 = vector.extract_strided_slice %472 {offsets = [0, 128], sizes = [2, 64], strides = [1, 1]} : vector<2x192xf32> to vector<2x64xf32>
    %492 = vector.extract_strided_slice %473 {offsets = [0, 128], sizes = [2, 64], strides = [1, 1]} : vector<2x192xf32> to vector<2x64xf32>
    %493 = arith.mulf %482, %492 : vector<2x64xf32>
    %494 = arith.addf %491, %493 : vector<2x64xf32>
    %495 = math.tanh %494 : vector<2x64xf32>
    %cst_116 = arith.constant 1.000000e+00 : f32
    %496 = vector.broadcast %cst_116 : f32 to vector<2x64xf32>
    %497 = arith.subf %496, %490 : vector<2x64xf32>
    %498 = arith.mulf %497, %495 : vector<2x64xf32>
    %499 = arith.mulf %490, %474 : vector<2x64xf32>
    %500 = arith.addf %498, %499 : vector<2x64xf32>
    %501 = vector.extract_strided_slice %471 {offsets = [0, 192], sizes = [2, 192], strides = [1, 1]} : vector<2x384xf32> to vector<2x192xf32>
    %502 = vector.extract_strided_slice %465 {offsets = [0, 192], sizes = [2, 192], strides = [1, 1]} : vector<2x384xf32> to vector<2x192xf32>
    %503 = vector.extract_strided_slice %461 {offsets = [0, 64], sizes = [2, 64], strides = [1, 1]} : vector<2x128xf32> to vector<2x64xf32>
    %504 = vector.extract_strided_slice %501 {offsets = [0, 0], sizes = [2, 64], strides = [1, 1]} : vector<2x192xf32> to vector<2x64xf32>
    %505 = vector.extract_strided_slice %502 {offsets = [0, 0], sizes = [2, 64], strides = [1, 1]} : vector<2x192xf32> to vector<2x64xf32>
    %506 = arith.addf %504, %505 : vector<2x64xf32>
    %507 = arith.negf %506 : vector<2x64xf32>
    %508 = math.exp %507 : vector<2x64xf32>
    %cst_117 = arith.constant 1.000000e+00 : f32
    %509 = vector.broadcast %cst_117 : f32 to vector<2x64xf32>
    %510 = arith.addf %509, %508 : vector<2x64xf32>
    %511 = arith.divf %509, %510 : vector<2x64xf32>
    %512 = vector.extract_strided_slice %501 {offsets = [0, 64], sizes = [2, 64], strides = [1, 1]} : vector<2x192xf32> to vector<2x64xf32>
    %513 = vector.extract_strided_slice %502 {offsets = [0, 64], sizes = [2, 64], strides = [1, 1]} : vector<2x192xf32> to vector<2x64xf32>
    %514 = arith.addf %512, %513 : vector<2x64xf32>
    %515 = arith.negf %514 : vector<2x64xf32>
    %516 = math.exp %515 : vector<2x64xf32>
    %cst_118 = arith.constant 1.000000e+00 : f32
    %517 = vector.broadcast %cst_118 : f32 to vector<2x64xf32>
    %518 = arith.addf %517, %516 : vector<2x64xf32>
    %519 = arith.divf %517, %518 : vector<2x64xf32>
    %520 = vector.extract_strided_slice %501 {offsets = [0, 128], sizes = [2, 64], strides = [1, 1]} : vector<2x192xf32> to vector<2x64xf32>
    %521 = vector.extract_strided_slice %502 {offsets = [0, 128], sizes = [2, 64], strides = [1, 1]} : vector<2x192xf32> to vector<2x64xf32>
    %522 = arith.mulf %511, %521 : vector<2x64xf32>
    %523 = arith.addf %520, %522 : vector<2x64xf32>
    %524 = math.tanh %523 : vector<2x64xf32>
    %cst_119 = arith.constant 1.000000e+00 : f32
    %525 = vector.broadcast %cst_119 : f32 to vector<2x64xf32>
    %526 = arith.subf %525, %519 : vector<2x64xf32>
    %527 = arith.mulf %526, %524 : vector<2x64xf32>
    %528 = arith.mulf %519, %503 : vector<2x64xf32>
    %529 = arith.addf %527, %528 : vector<2x64xf32>
    %530 = vector.shape_cast %500 : vector<2x64xf32> to vector<1x2x64xf32>
    %531 = arith.index_cast %c6_i32 : i32 to index
    %c0_120 = arith.constant 0 : index
    %c0_121 = arith.constant 0 : index
    %532 = vector.load %arg9[%531, %c0_120, %c0_121] : memref<8x2x128xf32, #tpu.memory_space<vmem>>, vector<1x2x64xf32>
    tpu.vector_store %arg9[%531, %c0_120, %c0_121], %530 {strides = array<i32>} : memref<8x2x128xf32, #tpu.memory_space<vmem>>, vector<1x2x64xf32>,
    %533 = vector.shape_cast %529 : vector<2x64xf32> to vector<1x2x64xf32>
    %534 = arith.index_cast %462 : i32 to index
    %c0_122 = arith.constant 0 : index
    %c64_123 = arith.constant 64 : index
    %535 = vector.load %arg9[%534, %c0_122, %c64_123] : memref<8x2x128xf32, #tpu.memory_space<vmem>>, vector<1x2x64xf32>
    tpu.vector_store %arg9[%534, %c0_122, %c64_123], %533 {strides = array<i32>} : memref<8x2x128xf32, #tpu.memory_space<vmem>>, vector<1x2x64xf32>,
    %536 = tpu.concatenate %500, %529 in 1 : vector<2x64xf32>, vector<2x64xf32> -> vector<2x128xf32>
    %c7_i32_124 = arith.constant 7 : i32
    %c7_i32_125 = arith.constant 7 : i32
    %537 = arith.subi %c7_i32_125, %c7_i32_124 : i32
    %cst_126 = arith.constant dense<0.000000e+00> : vector<2x384xf32>
    %538 = tpu.matmul %536, %9, %cst_126 {dimension_numbers = #tpu.dot_dimension_numbers<[1], [0], [0], [1], [0, 0, 1, 1], [], []>} : vector<2x128xf32>, vector<128x384xf32>, vector<2x384xf32> -> vector<2x384xf32>
    %539 = vector.broadcast %10 : vector<1x384xf32> to vector<2x384xf32>
    %540 = arith.addf %538, %539 : vector<2x384xf32>
    %541 = arith.index_cast %c7_i32_124 : i32 to index
    %c0_127 = arith.constant 0 : index
    %c0_128 = arith.constant 0 : index
    %542 = vector.load %arg11[%541, %c0_127, %c0_128] : memref<8x2x384xf32, #tpu.memory_space<vmem>>, vector<1x2x384xf32>
    %543 = vector.shape_cast %542 : vector<1x2x384xf32> to vector<2x384xf32>
    %544 = arith.index_cast %537 : i32 to index
    %c0_129 = arith.constant 0 : index
    %c0_130 = arith.constant 0 : index
    %545 = vector.load %arg11[%544, %c0_129, %c0_130] : memref<8x2x384xf32, #tpu.memory_space<vmem>>, vector<1x2x384xf32>
    %546 = vector.shape_cast %545 : vector<1x2x384xf32> to vector<2x384xf32>
    %547 = vector.extract_strided_slice %543 {offsets = [0, 0], sizes = [2, 192], strides = [1, 1]} : vector<2x384xf32> to vector<2x192xf32>
    %548 = vector.extract_strided_slice %540 {offsets = [0, 0], sizes = [2, 192], strides = [1, 1]} : vector<2x384xf32> to vector<2x192xf32>
    %549 = vector.extract_strided_slice %536 {offsets = [0, 0], sizes = [2, 64], strides = [1, 1]} : vector<2x128xf32> to vector<2x64xf32>
    %550 = vector.extract_strided_slice %547 {offsets = [0, 0], sizes = [2, 64], strides = [1, 1]} : vector<2x192xf32> to vector<2x64xf32>
    %551 = vector.extract_strided_slice %548 {offsets = [0, 0], sizes = [2, 64], strides = [1, 1]} : vector<2x192xf32> to vector<2x64xf32>
    %552 = arith.addf %550, %551 : vector<2x64xf32>
    %553 = arith.negf %552 : vector<2x64xf32>
    %554 = math.exp %553 : vector<2x64xf32>
    %cst_131 = arith.constant 1.000000e+00 : f32
    %555 = vector.broadcast %cst_131 : f32 to vector<2x64xf32>
    %556 = arith.addf %555, %554 : vector<2x64xf32>
    %557 = arith.divf %555, %556 : vector<2x64xf32>
    %558 = vector.extract_strided_slice %547 {offsets = [0, 64], sizes = [2, 64], strides = [1, 1]} : vector<2x192xf32> to vector<2x64xf32>
    %559 = vector.extract_strided_slice %548 {offsets = [0, 64], sizes = [2, 64], strides = [1, 1]} : vector<2x192xf32> to vector<2x64xf32>
    %560 = arith.addf %558, %559 : vector<2x64xf32>
    %561 = arith.negf %560 : vector<2x64xf32>
    %562 = math.exp %561 : vector<2x64xf32>
    %cst_132 = arith.constant 1.000000e+00 : f32
    %563 = vector.broadcast %cst_132 : f32 to vector<2x64xf32>
    %564 = arith.addf %563, %562 : vector<2x64xf32>
    %565 = arith.divf %563, %564 : vector<2x64xf32>
    %566 = vector.extract_strided_slice %547 {offsets = [0, 128], sizes = [2, 64], strides = [1, 1]} : vector<2x192xf32> to vector<2x64xf32>
    %567 = vector.extract_strided_slice %548 {offsets = [0, 128], sizes = [2, 64], strides = [1, 1]} : vector<2x192xf32> to vector<2x64xf32>
    %568 = arith.mulf %557, %567 : vector<2x64xf32>
    %569 = arith.addf %566, %568 : vector<2x64xf32>
    %570 = math.tanh %569 : vector<2x64xf32>
    %cst_133 = arith.constant 1.000000e+00 : f32
    %571 = vector.broadcast %cst_133 : f32 to vector<2x64xf32>
    %572 = arith.subf %571, %565 : vector<2x64xf32>
    %573 = arith.mulf %572, %570 : vector<2x64xf32>
    %574 = arith.mulf %565, %549 : vector<2x64xf32>
    %575 = arith.addf %573, %574 : vector<2x64xf32>
    %576 = vector.extract_strided_slice %546 {offsets = [0, 192], sizes = [2, 192], strides = [1, 1]} : vector<2x384xf32> to vector<2x192xf32>
    %577 = vector.extract_strided_slice %540 {offsets = [0, 192], sizes = [2, 192], strides = [1, 1]} : vector<2x384xf32> to vector<2x192xf32>
    %578 = vector.extract_strided_slice %536 {offsets = [0, 64], sizes = [2, 64], strides = [1, 1]} : vector<2x128xf32> to vector<2x64xf32>
    %579 = vector.extract_strided_slice %576 {offsets = [0, 0], sizes = [2, 64], strides = [1, 1]} : vector<2x192xf32> to vector<2x64xf32>
    %580 = vector.extract_strided_slice %577 {offsets = [0, 0], sizes = [2, 64], strides = [1, 1]} : vector<2x192xf32> to vector<2x64xf32>
    %581 = arith.addf %579, %580 : vector<2x64xf32>
    %582 = arith.negf %581 : vector<2x64xf32>
    %583 = math.exp %582 : vector<2x64xf32>
    %cst_134 = arith.constant 1.000000e+00 : f32
    %584 = vector.broadcast %cst_134 : f32 to vector<2x64xf32>
    %585 = arith.addf %584, %583 : vector<2x64xf32>
    %586 = arith.divf %584, %585 : vector<2x64xf32>
    %587 = vector.extract_strided_slice %576 {offsets = [0, 64], sizes = [2, 64], strides = [1, 1]} : vector<2x192xf32> to vector<2x64xf32>
    %588 = vector.extract_strided_slice %577 {offsets = [0, 64], sizes = [2, 64], strides = [1, 1]} : vector<2x192xf32> to vector<2x64xf32>
    %589 = arith.addf %587, %588 : vector<2x64xf32>
    %590 = arith.negf %589 : vector<2x64xf32>
    %591 = math.exp %590 : vector<2x64xf32>
    %cst_135 = arith.constant 1.000000e+00 : f32
    %592 = vector.broadcast %cst_135 : f32 to vector<2x64xf32>
    %593 = arith.addf %592, %591 : vector<2x64xf32>
    %594 = arith.divf %592, %593 : vector<2x64xf32>
    %595 = vector.extract_strided_slice %576 {offsets = [0, 128], sizes = [2, 64], strides = [1, 1]} : vector<2x192xf32> to vector<2x64xf32>
    %596 = vector.extract_strided_slice %577 {offsets = [0, 128], sizes = [2, 64], strides = [1, 1]} : vector<2x192xf32> to vector<2x64xf32>
    %597 = arith.mulf %586, %596 : vector<2x64xf32>
    %598 = arith.addf %595, %597 : vector<2x64xf32>
    %599 = math.tanh %598 : vector<2x64xf32>
    %cst_136 = arith.constant 1.000000e+00 : f32
    %600 = vector.broadcast %cst_136 : f32 to vector<2x64xf32>
    %601 = arith.subf %600, %594 : vector<2x64xf32>
    %602 = arith.mulf %601, %599 : vector<2x64xf32>
    %603 = arith.mulf %594, %578 : vector<2x64xf32>
    %604 = arith.addf %602, %603 : vector<2x64xf32>
    %605 = vector.shape_cast %575 : vector<2x64xf32> to vector<1x2x64xf32>
    %606 = arith.index_cast %c7_i32_124 : i32 to index
    %c0_137 = arith.constant 0 : index
    %c0_138 = arith.constant 0 : index
    %607 = vector.load %arg9[%606, %c0_137, %c0_138] : memref<8x2x128xf32, #tpu.memory_space<vmem>>, vector<1x2x64xf32>
    tpu.vector_store %arg9[%606, %c0_137, %c0_138], %605 {strides = array<i32>} : memref<8x2x128xf32, #tpu.memory_space<vmem>>, vector<1x2x64xf32>,
    %608 = vector.shape_cast %604 : vector<2x64xf32> to vector<1x2x64xf32>
    %609 = arith.index_cast %537 : i32 to index
    %c0_139 = arith.constant 0 : index
    %c64_140 = arith.constant 64 : index
    %610 = vector.load %arg9[%609, %c0_139, %c64_140] : memref<8x2x128xf32, #tpu.memory_space<vmem>>, vector<1x2x64xf32>
    tpu.vector_store %arg9[%609, %c0_139, %c64_140], %608 {strides = array<i32>} : memref<8x2x128xf32, #tpu.memory_space<vmem>>, vector<1x2x64xf32>,
    %611 = tpu.concatenate %575, %604 in 1 : vector<2x64xf32>, vector<2x64xf32> -> vector<2x128xf32>
    %c8_i32 = arith.constant 8 : i32
    %c0_141 = arith.constant 0 : index
    %c0_142 = arith.constant 0 : index
    %c0_143 = arith.constant 0 : index
    %612 = vector.load %arg9[%c0_141, %c0_142, %c0_143] : memref<8x2x128xf32, #tpu.memory_space<vmem>>, vector<8x2x128xf32>
    %613 = vector.shape_cast %612 : vector<8x2x128xf32> to vector<16x128xf32>
    %c0_144 = arith.constant 0 : index
    %c0_145 = arith.constant 0 : index
    %614 = vector.load %arg5[%c0_144, %c0_145] : memref<128x128xf32, #tpu.memory_space<vmem>>, vector<128x128xf32>
    %cst_146 = arith.constant dense<0.000000e+00> : vector<16x128xf32>
    %615 = tpu.matmul %613, %614, %cst_146 {dimension_numbers = #tpu.dot_dimension_numbers<[1], [0], [0], [1], [0, 0, 1, 1], [], []>} : vector<16x128xf32>, vector<128x128xf32>, vector<16x128xf32> -> vector<16x128xf32>
    %c0_147 = arith.constant 0 : index
    %c0_148 = arith.constant 0 : index
    %616 = vector.load %arg6[%c0_147, %c0_148] : memref<1x128xf32, #tpu.memory_space<vmem>>, vector<1x128xf32>
    %617 = vector.broadcast %616 : vector<1x128xf32> to vector<16x128xf32>
    %618 = arith.addf %615, %617 : vector<16x128xf32>
    %619 = math.tanh %618 : vector<16x128xf32>
    %c0_149 = arith.constant 0 : index
    %c0_150 = arith.constant 0 : index
    %620 = vector.load %arg7[%c0_149, %c0_150] : memref<1x128xf32, #tpu.memory_space<vmem>>, vector<1x128xf32>
    %621 = vector.broadcast %620 : vector<1x128xf32> to vector<16x128xf32>
    %622 = arith.mulf %619, %621 : vector<16x128xf32>
    %cst_151 = arith.constant dense<0.000000e+00> : vector<16xf32>
    %623 = vector.multi_reduction <add>, %622, %cst_151 [1] : vector<16x128xf32> to vector<16xf32>
    %624 = vector.shape_cast %623 : vector<16xf32> to vector<16x1xf32>
    %625 = vector.shape_cast %624 : vector<16x1xf32> to vector<8x2xf32>
    %c0_152 = arith.constant 0 : index
    %c0_153 = arith.constant 0 : index
    %626 = vector.load %arg8[%c0_152, %c0_153] : memref<1x1xf32, #tpu.memory_space<vmem>>, vector<1x1xf32>
    %627 = vector.broadcast %626 : vector<1x1xf32> to vector<8x2xf32>
    %628 = arith.addf %625, %627 : vector<8x2xf32>
    %cst_154 = arith.constant dense<0xFF800000> : vector<8xf32>
    %629 = vector.multi_reduction <maximumf>, %628, %cst_154 [1] : vector<8x2xf32> to vector<8xf32>
    %630 = vector.shape_cast %629 : vector<8xf32> to vector<8x1xf32>
    %631 = vector.broadcast %630 : vector<8x1xf32> to vector<8x2xf32>
    %632 = arith.subf %628, %631 : vector<8x2xf32>
    %633 = math.exp %632 : vector<8x2xf32>
    %cst_155 = arith.constant dense<0.000000e+00> : vector<8xf32>
    %634 = vector.multi_reduction <add>, %633, %cst_155 [1] : vector<8x2xf32> to vector<8xf32>
    %635 = vector.shape_cast %634 : vector<8xf32> to vector<8x1xf32>
    %636 = tpu.reciprocal %635 {approx = true} : vector<8x1xf32> -> vector<8x1xf32>
    %637 = vector.broadcast %636 : vector<8x1xf32> to vector<8x2xf32>
    %638 = arith.mulf %633, %637 : vector<8x2xf32>
    %639 = vector.shape_cast %638 : vector<8x2xf32> to vector<8x2x1xf32>
    %640 = vector.broadcast %639 : vector<8x2x1xf32> to vector<8x2x128xf32>
    %641 = arith.mulf %640, %612 : vector<8x2x128xf32>
    %cst_156 = arith.constant dense<0.000000e+00> : vector<8x128xf32>
    %642 = vector.multi_reduction <add>, %641, %cst_156 [1] : vector<8x2x128xf32> to vector<8x128xf32>
    %643 = vector.shape_cast %642 : vector<8x128xf32> to vector<8x1x128xf32>
    %c0_157 = arith.constant 0 : index
    %c0_158 = arith.constant 0 : index
    %c0_159 = arith.constant 0 : index
    %644 = vector.load %arg10[%c0_157, %c0_158, %c0_159] : memref<8x1x128xf32, #tpu.memory_space<vmem>>, vector<8x1x128xf32>
    tpu.vector_store %arg10[%c0_157, %c0_158, %c0_159], %643 {strides = array<i32>} : memref<8x1x128xf32, #tpu.memory_space<vmem>>, vector<8x1x128xf32>,
    return
  }
}

</mosaic_0001>

<bundles_post_ra>
// kernel: encoder_forward.1
= control target key start
LH: loop header
LB: loop body
LE: loop exit
PB: predicated region body
PF: predicated region fallthrough
CT: control target
= control target key end

     0   :  { %s5839_s0 = inlined_call_operand.vmem [shape: f32[8,2,32], index: 0, kind: input, shape index: {}]   ;;  %s5840_s1 = inlined_call_operand.vmem [shape: f32[32,384], index: 1, kind: input, shape index: {}]   ;;  %s5841_s2 = inlined_call_operand.vmem [shape: f32[1,384], index: 2, kind: input, shape index: {}]   ;;  %s5842_s3 = inlined_call_operand.hbm [shape: f32[128,384], index: 3, kind: input, shape index: {}]   ;;  %s5843_s4 = inlined_call_operand.vmem [shape: f32[1,384], index: 4, kind: input, shape index: {}]   ;;  %s5844_s5 = inlined_call_operand.vmem [shape: f32[128,128], index: 5, kind: input, shape index: {}]   ;;  %s5845_s6 = inlined_call_operand.vmem [shape: f32[1,128], index: 6, kind: input, shape index: {}]   ;;  %s5846_s7 = inlined_call_operand.vmem [shape: f32[1,128], index: 7, kind: input, shape index: {}]   ;;  %s5847_s8 = inlined_call_operand.<no memory space> [shape: f32[1,1], index: 8, kind: input, shape index: {}]   ;;  %s5848_s9 = inlined_call_operand.hbm [shape: f32[8,2,128], index: 9, kind: output, shape index: {0}]   ;;  %s5849_s10 = inlined_call_operand.hbm [shape: f32[8,1,128], index: 10, kind: output, shape index: {1}]  }
   0x1   :  { %v16_v0 = vstv %s5847_s8 }
   0x2   :  { %17 = vst [vmem:[#allocation3] sm:$0x1] %v16_v0 }
   0x3   :  { %18 = vsyncpa [#allocation5], 0 }
   0x4   :  { %19 = vsyncpa [#allocation6], 0 }
   0x5   :  { %20 = vsyncpa [#allocation9], 0  ;;  %s4810_s15 = smov [#allocation4]   ;;  %s4738_s19 = scalar_lea.hbm %s5842_s3, 6144 }
   0x6   :  { %s32_s16 = sshll.u32 %s4810_s15, 4  ;;  %p4739_p0 = scmp.ne.s32.totalorder %s5842_s3, %s4738_s19  ;;  %s33_s16 = int_to_ptr.vmem [resolvable:$true] %s32_s16 }
   0x7   :  { %p4742_p1 = scmp.lt.u32.totalorder %s4738_s19, %s5842_s3 }
   0x9   :  { %p4744_p2 = pnand %p4742_p1, %p4739_p0 }
   0xb   :  { %4747 = shalt.err (!%p4744_p2)
}
   0xc   :  { %s4748_s8 = scalar_lea.vmem %s33_s16, 6144  ;;  %p4753_p4 = scmp.lt.s32.totalorder %s33_s16, %s33_s16 }
   0xd   :  { %p4749_p3 = scmp.ne.s32.totalorder %s33_s16, %s4748_s8  ;;  %p4754_p5 = scmp.lt.s32.totalorder %s4748_s8, %s4748_s8 }
   0xf   :  { %p4755_p6 = por %p4754_p5, %p4753_p4 }
  0x11   :  { %p4756_p7 = pnand %p4755_p6, %p4749_p3 }
  0x13   :  { %4759 = shalt.err (!%p4756_p7)
}
  0x14   :  { %s4811_s24 = smov 384   ;;  %s4812_s25 = smov 24  }
  0x15   :  { %38 = dma.hbm_to_vmem [thread:$0]  %s5842_s3, 6144, %s33_s16, [#allocation5], %s4811_s24, %s4811_s24, %s4812_s25  }
  0x16   :  { %4804 = dma.done.wait [#allocation5], 6144  }
  0x17   :  { %4805 = vsyncadd [#allocation5], 4294961152  ;;  %v4813_v1 = vmov 0.0   ;;  %v74_v2 = vlaneseq  ;;  %v4814_v3 = vmov 1983009808   ;;  %v61_v5 = vld [vmem:[%s5840_s1 + $0x8] sm:$0xff] }
  0x18   :  { %200 = vmatprep.mubr.f32.mxu1 %v4813_v1  ;;  %509 = vmatprep.mubr.f32.mxu0 %v4813_v1  ;;  %v100_v4 = vunpack.c.l.s4 %v4814_v3  ;;  %v64_v6 = vld [vmem:[%s5840_s1 + $0x20] sm:$0xff]  ;;  %v384_v11 = vld [vmem:[#allocation4 + $0x20] sm:$0xff]  ;;  %v383_v17 = vld [vmem:[#allocation4 + $0x18] sm:$0xff]  ;;  %vm131_vm0 = vcmask 261120   ;;  %vm4816_vm1 = vmmov 0   ;;  %s4817_s25 = smov 64  }
  0x19   :  { %v381_v7 = vld [vmem:[#allocation4 + $0x8] sm:$0xff]  ;;  %v4908_v8 = vshrl.u32 %v74_v2, 7  ;;  %v4071_v10 = vpack.c.bf16 %v64_v6, %v61_v5  ;;  %v380_v16 = vld [vmem:[#allocation4] sm:$0xff]  ;;  %v387_v21 = vld [vmem:[#allocation4 + $0x38] sm:$0xff]  ;;  %vm673_vm2 = vcmask 517120   ;;  %vm687_vm3 = vcmask 1041920  }
  0x1a   :  { %v101_v9 = vunpack.c.0.s8 %v100_v4  ;;  %v60_v12 = vld [vmem:[%s5840_s1] sm:$0xff]  ;;  %v63_v13 = vld [vmem:[%s5840_s1 + $0x18] sm:$0xff]  ;;  %v4916_v14 = vpack.c.bf16 %v384_v11, %v381_v7  ;;  %v4921_v19 = vpack.c.bf16 %v383_v17, %v380_v16  ;;  %v70_v20 = vld [vmem:[%s5840_s1 + $0x50] sm:$0xff]  ;;  %vm689_vm4 = vcmask 523264  }
  0x1b   :  { %v4073_v15 = vpack.c.bf16 %v63_v13, %v60_v12  ;;  %v67_v18 = vld [vmem:[%s5840_s1 + $0x38] sm:$0xff]  ;;  %4072 = vmatprep.subr.bf16.mxu1 %v4071_v10  ;;  %v390_v22 = vld [vmem:[#allocation4 + $0x50] sm:$0xff]  ;;  %v66_v25 = vld [vmem:[%s5840_s1 + $0x30] sm:$0xff]  ;;  %vm2837_vm5 = vcmask 1041409   ;;  %vm2839_vm6 = vcmask 1042434   ;;  %vm2841_vm7 = vcmask 1043459  }
  0x1c   :  { %4088 = vmatprep.subr.bf16.mxu0 %v4916_v14  ;;  %v4075_v23 = vpack.c.bf16 %v70_v20, %v67_v18  ;;  %v4927_v24 = vpack.c.bf16 %v390_v22, %v387_v21  ;;  %v69_v26 = vld [vmem:[%s5840_s1 + $0x48] sm:$0xff]  ;;  %v4936_v28 = vsub.s32 %v101_v9, %v4908_v8  ;;  %v389_v30 = vld [vmem:[#allocation4 + $0x48] sm:$0xff]  ;;  %v53_v32 = vld [vmem:[%s5839_s0 + $0x2] sm:$0x3]  ;;  %vm2843_vm8 = vcmask 1044484  }
  0x1d   :  { %4074 = vmatpush1.bf16.msra.mxu1 %v4073_v15  ;;  %v386_v27 = vld [vmem:[#allocation4 + $0x30] sm:$0xff]  ;;  %4090 = vmatpush1.bf16.msra.mxu0 %v4921_v19  ;;  %v4077_v29 = vpack.c.bf16 %v69_v26, %v66_v25  ;;  %v62_v37 = vld [vmem:[%s5840_s1 + $0x10] sm:$0xff]  ;;  %v393_v40 = vld [vmem:[#allocation4 + $0x68] sm:$0xff]  ;;  %v4815_v25 = vmov 0.0|0.0   ;;  %vm2845_vm9 = vcmask 1045509   ;;  %vm2847_vm10 = vcmask 1046534  }
  0x1e   :  { %v52_v31 = vld [vmem:[%s5839_s0] sm:$0x3]  ;;  %4076 = vmatprep.subr.bf16.mxu1 %v4075_v23  ;;  %4092 = vmatprep.subr.bf16.mxu0 %v4927_v24  ;;  %v4946_v33 = vpack.c.bf16 %v389_v30, %v386_v27  ;;  %v54_v34 = vld [vmem:[%s5839_s0 + $0x4] sm:$0x3]  ;;  %v55_v35 = vld [vmem:[%s5839_s0 + $0x6] sm:$0x3] }
  0x1f   :  { %v97_v36 = vcombine.low %v52_v31, %v53_v32  ;;  %v98_v38 = vcombine.low %v54_v34, %v55_v35  ;;  %v65_v39 = vld [vmem:[%s5840_s1 + $0x28] sm:$0xff]  ;;  %v396_v41 = vld [vmem:[#allocation4 + $0x80] sm:$0xff]  ;;  %v68_v55 = vld [vmem:[%s5840_s1 + $0x40] sm:$0xff]  ;;  %vm2849_vm11 = vcmask 1047559   ;;  %vm2852_vm12 = vcmask 15360  }
  0x20   :  { %v4079_v43 = vpack.c.bf16 %v65_v39, %v62_v37  ;;  %v4961_v44 = vpack.c.bf16 %v396_v41, %v393_v40  ;;  %v392_v45 = vld [vmem:[#allocation4 + $0x60] sm:$0xff]  ;;  %v395_v46 = vld [vmem:[#allocation4 + $0x78] sm:$0xff]  ;;  %v402_v60 = vld [vmem:[#allocation4 + $0xb0] sm:$0xff] }
  0x21   :  { %4078 = vmatpush1.bf16.msra.mxu1 %v4077_v29  ;;  %v105_v42 = vrot.slane %v97_v36, %v4936_v28  ;;  %v56_v47 = vld [vmem:[%s5839_s0 + $0x8] sm:$0x3]  ;;  %4094 = vmatpush1.bf16.msra.mxu0 %v4946_v33  ;;  %v112_v48 = vrot.slane %v98_v38, %v4936_v28  ;;  %v4968_v49 = vpack.c.bf16 %v395_v46, %v392_v45  ;;  %v57_v50 = vld [vmem:[%s5839_s0 + $0xa] sm:$0x3]  ;;  %v58_v51 = vld [vmem:[%s5839_s0 + $0xc] sm:$0x3] }
  0x22   :  { %v59_v52 = vld [vmem:[%s5839_s0 + $0xe] sm:$0x3]  ;;  %4080 = vmatprep.subr.bf16.mxu1 %v4079_v43  ;;  %4096 = vmatprep.subr.bf16.mxu0 %v4961_v44  ;;  %v114_v53 = vcombine.low %v56_v47, %v57_v50  ;;  %v71_v56 = vld [vmem:[%s5840_s1 + $0x58] sm:$0xff]  ;;  %v398_v61 = vld [vmem:[#allocation4 + $0x90] sm:$0xff] }
  0x23   :  { %v115_v54 = vcombine.low %v58_v51, %v59_v52  ;;  %v399_v57 = vld [vmem:[#allocation4 + $0x98] sm:$0xff]  ;;  %v113_v58 = vcombine.low %v105_v42, %v112_v48  ;;  %v4083_v59 = vpack.c.bf16 %v71_v56, %v68_v55  ;;  %v401_v62 = vld [vmem:[#allocation4 + $0xa8] sm:$0xff]  ;;  %v408_v5 = vld [vmem:[#allocation4 + $0xe0] sm:$0xff] }
  0x24   :  { %v122_v63 = vrot.slane %v114_v53, %v4936_v28  ;;  %v4988_v3 = vpack.c.bf16 %v402_v60, %v399_v57  ;;  %v405_v4 = vld [vmem:[#allocation4 + $0xc8] sm:$0xff]  ;;  %v4992_v6 = vpack.c.bf16 %v401_v62, %v398_v61  ;;  %v404_v9 = vld [vmem:[#allocation4 + $0xc0] sm:$0xff]  ;;  %v407_v10 = vld [vmem:[#allocation4 + $0xd8] sm:$0xff] }
  0x25   :  { %v129_v0 = vrot.slane %v115_v54, %v4936_v28  ;;  %3554 = vmatmul.mubr.msk.f32.vlgmr.msra.gmra.mrb[0].mxu1 %vm131_vm0, %v113_v58  ;;  %4098 = vmatpush1.bf16.msra.mxu0 %v4968_v49  ;;  %v382_v11 = vld [vmem:[#allocation4 + $0x10] sm:$0xff]  ;;  %v4996_v12 = vpack.c.bf16 %v408_v5, %v405_v4  ;;  %v385_v13 = vld [vmem:[#allocation4 + $0x28] sm:$0xff]  ;;  %v411_v15 = vld [vmem:[#allocation4 + $0xf8] sm:$0xff]  ;;  %v5000_v17 = vpack.c.bf16 %v407_v10, %v404_v9  ;;  %v5104_v4 = vsub.s32 1, %v4908_v8 }
  0x26   :  { %4082 = vmatpush3.bf16.msra.mxu1 %v4079_v43  ;;  %206 = vmatprep.mubr.f32.mxu1 %v4813_v1  ;;  %v414_v16 = vld [vmem:[#allocation4 + $0x110] sm:$0xff]  ;;  %v5003_v18 = vpack.c.bf16 %v385_v13, %v382_v11  ;;  %v413_v22 = vld [vmem:[#allocation4 + $0x108] sm:$0xff]  ;;  %v388_v23 = vld [vmem:[#allocation4 + $0x40] sm:$0xff]  ;;  %v5109_v13 = vsub.s32 2, %v4908_v8 }
  0x27   :  { %v130_v7 = vcombine.low %v122_v63, %v129_v0  ;;  %4084 = vmatprep.subr.bf16.mxu1 %v4083_v59  ;;  %4100 = vmatprep.subr.bf16.mxu0 %v4988_v3  ;;  %v5005_v20 = vpack.c.bf16 %v414_v16, %v411_v15  ;;  %v410_v21 = vld [vmem:[#allocation4 + $0xf0] sm:$0xff]  ;;  %v391_v26 = vld [vmem:[#allocation4 + $0x58] sm:$0xff]  ;;  %v417_v27 = vld [vmem:[#allocation4 + $0x128] sm:$0xff]  ;;  %v5098_v63 = vsub.s32 0, %v4908_v8 }
  0x28   :  { %v420_v29 = vld [vmem:[#allocation4 + $0x140] sm:$0xff]  ;;  %v5011_v30 = vpack.c.bf16 %v413_v22, %v410_v21  ;;  %v5015_v31 = vpack.c.bf16 %v391_v26, %v388_v23  ;;  %v419_v35 = vld [vmem:[#allocation4 + $0x138] sm:$0xff]  ;;  %v394_v36 = vld [vmem:[#allocation4 + $0x70] sm:$0xff] }
  0x29   :  { %3555 = vmatmul.mubr.msk.f32.gmra.mrb[2].mxu1 %vm131_vm0, %v130_v7  ;;  %4102 = vmatpush1.bf16.msra.mxu0 %v4992_v6  ;;  %v5017_v32 = vpack.c.bf16 %v420_v29, %v417_v27  ;;  %v416_v34 = vld [vmem:[#allocation4 + $0x120] sm:$0xff]  ;;  %v397_v37 = vld [vmem:[#allocation4 + $0x88] sm:$0xff]  ;;  %v423_v38 = vld [vmem:[#allocation4 + $0x158] sm:$0xff] }
  0x2a   :  { %4086 = vmatpush3.bf16.msra.mxu1 %v4083_v59  ;;  %3753 = vmatprep.mubr.msk.f32.mxu1 %vm131_vm0, %v113_v58  ;;  %v426_v39 = vld [vmem:[#allocation4 + $0x170] sm:$0xff]  ;;  %v5023_v40 = vpack.c.bf16 %v419_v35, %v416_v34  ;;  %v5027_v41 = vpack.c.bf16 %v397_v37, %v394_v36  ;;  %v425_v45 = vld [vmem:[#allocation4 + $0x168] sm:$0xff]  ;;  %v400_v46 = vld [vmem:[#allocation4 + $0xa0] sm:$0xff] }
  0x2b   :  { %4104 = vmatprep.subr.bf16.mxu0 %v4996_v12  ;;  %4119 = vmatprep.subr.bf16.mxu1 %v4815_v25  ;;  %v5029_v42 = vpack.c.bf16 %v426_v39, %v423_v38  ;;  %v422_v43 = vld [vmem:[#allocation4 + $0x150] sm:$0xff]  ;;  %v403_v47 = vld [vmem:[#allocation4 + $0xb8] sm:$0xff]  ;;  %v409_v52 = vld [vmem:[#allocation4 + $0xe8] sm:$0xff] }
  0x2c   :  { %v5033_v48 = vpack.c.bf16 %v425_v45, %v422_v43  ;;  %v5037_v50 = vpack.c.bf16 %v403_v47, %v400_v46  ;;  %v406_v51 = vld [vmem:[#allocation4 + $0xd0] sm:$0xff]  ;;  %v412_v54 = vld [vmem:[#allocation4 + $0x100] sm:$0xff]  ;;  %v415_v55 = vld [vmem:[#allocation4 + $0x118] sm:$0xff] }
  0x2d   :  { %3754 = vmatmul.mubr.msk.f32.vlgmr.msra.gmra.mrb[4].mxu1 %vm131_vm0, %v130_v7  ;;  %4106 = vmatpush1.bf16.msra.mxu0 %v5000_v17  ;;  %v5042_v53 = vpack.c.bf16 %v409_v52, %v406_v51  ;;  %v5050_v56 = vpack.c.bf16 %v415_v55, %v412_v54  ;;  %v418_v57 = vld [vmem:[#allocation4 + $0x130] sm:$0xff]  ;;  %v421_v58 = vld [vmem:[#allocation4 + $0x148] sm:$0xff]  ;;  %v424_v60 = vld [vmem:[#allocation4 + $0x160] sm:$0xff] }
  0x2e   :  { %4121 = vmatpush3.bf16.msra.mxu1 %v5003_v18  ;;  %4108 = vmatprep.subr.bf16.mxu0 %v5005_v20  ;;  %v5056_v59 = vpack.c.bf16 %v421_v58, %v418_v57  ;;  %v427_v61 = vld [vmem:[#allocation4 + $0x178] sm:$0xff]  ;;  %v72_v0 = vld [vmem:[%s5841_s2] sm:$0x7] }
  0x2f   :  { %4122 = vmatprep.subr.bf16.mxu1 %v4815_v25  ;;  %3788 = vmatprep.mubr.msk.f32.mxu1 %vm4816_vm1, %v4813_v1  ;;  %v5062_v62 = vpack.c.bf16 %v427_v61, %v424_v60  ;;  %v77_v5 = vrot.slane %v72_v0, %v5098_v63  ;;  %v81_v7 = vrot.slane %v72_v0, %v5104_v4 }
  0x30   :  { %v85_v27 = vrot.slane %v72_v0, %v5109_v13 }
  0x31   :  { %4110 = vmatpush1.bf16.msra.mxu0 %v5011_v30 }
  0x32   :  { %4124 = vmatpush3.bf16.msra.mxu1 %v5015_v31  ;;  %4112 = vmatprep.subr.bf16.mxu0 %v5017_v32 }
  0x33   :  { %4125 = vmatprep.subr.bf16.mxu1 %v4815_v25 }
  0x35   :  { %4114 = vmatpush1.bf16.msra.mxu0 %v5023_v40 }
  0x36   :  { %4127 = vmatpush3.bf16.msra.mxu1 %v5027_v41  ;;  %4116 = vmatprep.subr.bf16.mxu0 %v5029_v42 }
  0x37   :  { %4128 = vmatprep.subr.bf16.mxu1 %v4815_v25 }
  0x39   :  { %4118 = vmatpush1.bf16.msra.mxu0 %v5033_v48 }
  0x3a   :  { %4130 = vmatpush3.bf16.msra.mxu1 %v5037_v50  ;;  %4144 = vmatprep.subr.bf16.mxu0 %v4916_v14 }
  0x3b   :  { %4131 = vmatprep.subr.bf16.mxu1 %v4815_v25 }
  0x3c   :  { %510 = vmatmul.mubr.f32.vlgmr.msra.gmra.mrb[0].mxu0 %v4813_v1 }
  0x3d   :  { %4146 = vmatpush1.bf16.msra.mxu0 %v4921_v19  ;;  %755 = vmatprep.mubr.f32.mxu0 %v4813_v1 }
  0x3e   :  { %4133 = vmatpush3.bf16.msra.mxu1 %v5042_v53  ;;  %4148 = vmatprep.subr.bf16.mxu0 %v4927_v24 }
  0x3f   :  { %4134 = vmatprep.subr.bf16.mxu1 %v4815_v25 }
  0x41   :  { %4150 = vmatpush1.bf16.msra.mxu0 %v4946_v33 }
  0x42   :  { %4136 = vmatpush3.bf16.msra.mxu1 %v5050_v56  ;;  %4152 = vmatprep.subr.bf16.mxu0 %v4961_v44 }
  0x43   :  { %4137 = vmatprep.subr.bf16.mxu1 %v4815_v25 }
  0x45   :  { %4154 = vmatpush1.bf16.msra.mxu0 %v4968_v49 }
  0x46   :  { %4139 = vmatpush3.bf16.msra.mxu1 %v5056_v59  ;;  %4156 = vmatprep.subr.bf16.mxu0 %v4988_v3 }
  0x47   :  { %4140 = vmatprep.subr.bf16.mxu1 %v4815_v25 }
  0x49   :  { %4158 = vmatpush1.bf16.msra.mxu0 %v4992_v6 }
  0x4a   :  { %4142 = vmatpush3.bf16.msra.mxu1 %v5062_v62  ;;  %4160 = vmatprep.subr.bf16.mxu0 %v4996_v12 }
  0x4b   :  { %4175 = vmatprep.subr.bf16.mxu1 %v4815_v25 }
  0x4d   :  { %3789 = vmatmul.mubr.f32.vlgmr.msra.gmra.mrb[6].mxu1 %v4813_v1  ;;  %4162 = vmatpush1.bf16.msra.mxu0 %v5000_v17 }
  0x4e   :  { %4177 = vmatpush3.bf16.msra.mxu1 %v5003_v18  ;;  %4164 = vmatprep.subr.bf16.mxu0 %v5005_v20 }
  0x4f   :  { %4178 = vmatprep.subr.bf16.mxu1 %v4815_v25  ;;  %3823 = vmatprep.mubr.msk.f32.mxu1 %vm4816_vm1, %v4813_v1 }
  0x51   :  { %4166 = vmatpush1.bf16.msra.mxu0 %v5011_v30 }
  0x52   :  { %4180 = vmatpush3.bf16.msra.mxu1 %v5015_v31  ;;  %4168 = vmatprep.subr.bf16.mxu0 %v5017_v32 }
  0x53   :  { %4181 = vmatprep.subr.bf16.mxu1 %v4815_v25 }
  0x55   :  { %4170 = vmatpush1.bf16.msra.mxu0 %v5023_v40 }
  0x56   :  { %4183 = vmatpush3.bf16.msra.mxu1 %v5027_v41  ;;  %4172 = vmatprep.subr.bf16.mxu0 %v5029_v42 }
  0x57   :  { %4184 = vmatprep.subr.bf16.mxu1 %v4815_v25 }
  0x59   :  { %4174 = vmatpush1.bf16.msra.mxu0 %v5033_v48 }
  0x5a   :  { %4186 = vmatpush3.bf16.msra.mxu1 %v5037_v50  ;;  %4200 = vmatprep.subr.bf16.mxu0 %v4916_v14 }
  0x5b   :  { %4187 = vmatprep.subr.bf16.mxu1 %v4815_v25 }
  0x5e   :  { %4189 = vmatpush3.bf16.msra.mxu1 %v5042_v53 }
  0x5f   :  { %4190 = vmatprep.subr.bf16.mxu1 %v4815_v25 }
  0x62   :  { %4192 = vmatpush3.bf16.msra.mxu1 %v5050_v56 }
  0x63   :  { %4193 = vmatprep.subr.bf16.mxu1 %v4815_v25 }
  0x66   :  { %4195 = vmatpush3.bf16.msra.mxu1 %v5056_v59 }
  0x67   :  { %4196 = vmatprep.subr.bf16.mxu1 %v4815_v25 }
  0x6a   :  { %4198 = vmatpush3.bf16.msra.mxu1 %v5062_v62 }
  0x6b   :  { %4231 = vmatprep.subr.bf16.mxu1 %v4815_v25 }
  0xf8   :  { %v202_v9 = vpop.f32.mrb[0].mxu1 }
  0xf9   :  { %v203_v10 = vadd.f32 %v202_v9, %v77_v5  ;;  %v204_v11 = vpop.f32.mrb[1].mxu1 }
  0xfa   :  { %v205_v15 = vadd.f32 %v204_v11, %v81_v7 }
  0xfc   :  { %v294_v16 = vcombine.low %v203_v10, %v205_v15  ;;  %v295_v21 = vcombine.high %v203_v10, %v205_v15  ;;  %v208_v22 = vpop.f32.mrb[2].mxu1  ;;  %v428_v15 = vld [vmem:[%s5843_s4] sm:$0x7] }
  0xfd   :  { %v209_v23 = vadd.f32 %v208_v22, %v77_v5  ;;  %v210_v26 = vpop.f32.mrb[3].mxu1 }
  0xfe   :  { %v211_v29 = vadd.f32 %v210_v26, %v81_v7  ;;  %v303_v47 = vrot.slane %v294_v16, %v4936_v28  ;;  %v310_v60 = vrot.slane %v295_v21, %v4936_v28  ;;  %v5124_v16 = vrot.slane %v428_v15, %v5098_v63 }
  0xff   :  { %v5127_v21 = vrot.slane %v428_v15, %v5104_v4 }
 0x100   :  { %v329_v34 = vcombine.low %v209_v23, %v211_v29  ;;  %v330_v35 = vcombine.high %v209_v23, %v211_v29  ;;  %v3755_v36 = vpop.f32.mrb[4].mxu1 }
 0x101   :  { %v285_v37 = vadd.f32 %v3755_v36, %v85_v27  ;;  %v279_v38 = vpop.f32.mrb[5].mxu1 }
 0x102   :  { %v338_v39 = vrot.slane %v329_v34, %v4936_v28  ;;  %v280_v43 = vadd.f32 %v279_v38, %v85_v27  ;;  %v345_v54 = vrot.slane %v330_v35, %v4936_v28  ;;  %v5135_v38 = vrot.slane %v428_v15, %v5109_v13 }
 0x103   :  { %v331_v45 = vcombine.high %v285_v37, %v285_v37  ;;  %v352_v46 = vrot.slane %v285_v37, %v4936_v28 }
 0x104   :  { %v296_v51 = vcombine.high %v280_v43, %v280_v43  ;;  %v317_v52 = vrot.slane %v280_v43, %v4936_v28 }
 0x105   :  { %v359_v55 = vrot.slane %v331_v45, %v4936_v28  ;;  %v360_v57 = vcombine.low %v338_v39, %v352_v46  ;;  %v361_v58 = vcombine.high %v338_v39, %v352_v46 }
 0x106   :  { %v324_v61 = vrot.slane %v296_v51, %v4936_v28  ;;  %v325_v0 = vcombine.low %v303_v47, %v317_v52  ;;  %v326_v5 = vcombine.high %v303_v47, %v317_v52 }
 0x107   :  { %v362_v7 = vcombine.low %v345_v54, %v359_v55  ;;  %v363_v9 = vcombine.high %v345_v54, %v359_v55  ;;  %376 = vst [vmem:[#allocation2 + $0x18] sm:$0x3f] %v360_v57  ;;  %377 = vst [vmem:[#allocation2 + $0x1e] sm:$0x3f] %v361_v58 }
 0x108   :  { %v327_v10 = vcombine.low %v310_v60, %v324_v61  ;;  %v328_v11 = vcombine.high %v310_v60, %v324_v61  ;;  %372 = vst [vmem:[#allocation2] sm:$0x3f] %v325_v0  ;;  %373 = vst [vmem:[#allocation2 + $0x6] sm:$0x3f] %v326_v5 }
 0x109   :  { %378 = vst [vmem:[#allocation2 + $0x24] sm:$0x3f] %v362_v7  ;;  %379 = vst [vmem:[#allocation2 + $0x2a] sm:$0x3f] %v363_v9 }
 0x10a   :  { %374 = vst [vmem:[#allocation2 + $0xc] sm:$0x3f] %v327_v10  ;;  %375 = vst [vmem:[#allocation2 + $0x12] sm:$0x3f] %v328_v11 }
 0x10f   :  { %v511_v22 = vpop.f32.mrb[0].mxu0  ;;  %v586_v29 = vld [vmem:[#allocation2] sm:$0x3f] }
 0x110   :  { %v512_v23 = vadd.f32 %v511_v22, %v5124_v16  ;;  %v513_v26 = vpop.f32.mrb[1].mxu0  ;;  %v588_v27 = vld [vmem:[#allocation2 + $0x2a] sm:$0x3f]  ;;  %v598_v57 = vrot.slane %v586_v29, 2 }
 0x111   :  { %v514_v34 = vadd.f32 %v513_v26, %v5127_v21  ;;  %611 = vrot.lane.b32.xlu0 %v588_v27, %s4817_s25  ;;  %v633_v46 = vrot.slane %v588_v27, 4 }
 0x112   :  { %v589_v35 = vadd.f32 %v586_v29, %v512_v23 }
 0x113   :  { %v622_v36 = vrot.slane %v514_v34, %v4936_v28 }
 0x114   :  { %v3558_v37 = vmul.f32 -1.442695, %v589_v35 }
 0x115   :  { %623 = vrot.lane.b32.xlu0 %v622_v36, %s4817_s25 }
 0x116   :  { %4588 = vpow2.f32 %v3558_v37 }
 0x120   :  { %v4589_v39 = vpop.eup %4588  ;;  %v582_v43 = vpop.f32.mrb[6].mxu1 }
 0x121   :  { %v593_v45 = vadd.f32 1.0, %v4589_v39  ;;  %v583_v47 = vadd.f32 %v582_v43, %v5135_v38  ;;  %v3790_v51 = vpop.f32.mrb[7].mxu1 }
 0x123   :  { %4590 = vrcp.f32 %v593_v45  ;;  %v635_v52 = vadd.f32 %v633_v46, %v583_v47  ;;  %v649_v54 = vrot.slane %v583_v47, %v4936_v28 }
 0x125   :  { %650 = vrot.lane.b32.xlu1 %v649_v54, %s4817_s25  ;;  %v3560_v11 = vmul.f32 -1.442695, %v635_v52 }
 0x12d   :  { %v4591_v55 = vpop.eup %4590 }
 0x12e   :  { %v596_v58 = vmul.f32 %v4591_v55, %v514_v34  ;;  %v602_v39 = vsub.f32 1.0, %v4591_v55  ;;  %v608_v45 = vmul.f32 0.0, %v4591_v55 }
 0x130   :  { %v600_v60 = vadd.f32 %v598_v57, %v596_v58 }
 0x132   :  { %4592 = vtanh.f32 %v600_v60 }
 0x13c   :  { %v4593_v61 = vpop.eup %4592 }
 0x13d   :  { %604 = vrot.lane.b32.xlu1 %v4593_v61, %s4817_s25 }
 0x183   :  { %v612_v0 = vpop.permute.xlu0 %611 }
 0x184   :  { %v613_v5 = vrot.slane %v612_v0, 2  ;;  %v654_v34 = vrot.slane %v612_v0, 4  ;;  %v5145_v0 = vld [vmem:[#allocation2 + $0x24] sm:$0x3f] }
 0x187   :  { %v624_v7 = vpop.permute.xlu0 %623 }
 0x188   :  { %v626_v9 = vadd.f32 %v624_v7, %v613_v5 }
 0x18a   :  { %v3559_v10 = vmul.f32 -1.442695, %v626_v9 }
 0x18c   :  { %4594 = vpow2.f32 %v3559_v10 }
 0x18d   :  { %4596 = vpow2.f32 %v3560_v11 }
 0x196   :  { %v4595_v15 = vpop.eup %4594 }
 0x197   :  { %v630_v22 = vadd.f32 1.0, %v4595_v15  ;;  %v4597_v23 = vpop.eup %4596  ;;  %v651_v27 = vpop.permute.xlu1 %650 }
 0x198   :  { %v639_v26 = vadd.f32 1.0, %v4597_v23 }
 0x199   :  { %4598 = vrcp.f32 %v630_v22 }
 0x19a   :  { %4600 = vrcp.f32 %v639_v26  ;;  %v833_v26 = vld [vmem:[#allocation2 + $0x6] sm:$0x3f] }
 0x1a3   :  { %v4599_v29 = vpop.eup %4598 }
 0x1a4   :  { %v653_v35 = vmul.f32 %v4599_v29, %v651_v27  ;;  %v4601_v37 = vpop.eup %4600 }
 0x1a5   :  { %v658_v47 = vsub.f32 1.0, %v4601_v37  ;;  %v660_v57 = vmul.f32 0.0, %v4601_v37 }
 0x1a6   :  { %v656_v36 = vadd.f32 %v654_v34, %v653_v35 }
 0x1a8   :  { %4602 = vtanh.f32 %v656_v36 }
 0x1af   :  { %v605_v43 = vpop.permute.xlu1 %604 }
 0x1b0   :  { %v607_v46 = vmul.f32 %v605_v43, %v602_v39 }
 0x1b2   :  { %v4603_v51 = vpop.eup %4602  ;;  %v609_v52 = vadd.f32 %v608_v45, %v607_v46  ;;  %v845_v46 = vrot.slane %v833_v26, 2 }
 0x1b3   :  { %v659_v54 = vmul.f32 %v4603_v51, %v658_v47 }
 0x1b4   :  { %v669_v58 = vrot.slane %v609_v52, %v4936_v28 }
 0x1b5   :  { %v661_v60 = vadd.f32 %v660_v57, %v659_v54 }
 0x1b6   :  { %670 = vrot.lane.b32.xlu0 %v669_v58, %s4817_s25 }
 0x1b7   :  { %v682_v61 = vrot.slane %v661_v60, %v4936_v28 }
 0x1b9   :  { %683 = vrot.lane.b32.xlu1 %v682_v61, %s4817_s25  ;;  %v891_v61 = vrot.slane %v5145_v0, 4 }
 0x1ba   :  { %869 = vrot.lane.b32.xlu0 %v5145_v0, %s4817_s25 }
 0x228   :  { %v671_v55 = vpop.permute.xlu0 %670 }
 0x229   :  { %674 = vst.msk [vmem:[#allocation7] sm:$0x3] %vm673_vm2, %v671_v55 }
 0x22b   :  { %v684_v5 = vpop.permute.xlu1 %683 }
 0x22c   :  { %688 = vst.msk [vmem:[#allocation7 + $0xe] sm:$0x3] %vm687_vm3, %v684_v5  ;;  %v690_v7 = vsel %vm689_vm4, %v671_v55, %v684_v5  ;;  %v870_v54 = vpop.permute.xlu0 %869 }
 0x22d   :  { %756 = vmatmul.mubr.f32.vlgmr.msra.gmra.mrb[2].mxu0 %v690_v7  ;;  %3824 = vmatmul.mubr.f32.vlgmr.msra.gmra.mrb[8].mxu1 %v690_v7  ;;  %v862_v37 = vrot.slane %v690_v7, %v4936_v28  ;;  %v871_v57 = vrot.slane %v870_v54, 2 }
 0x22e   :  { %4202 = vmatpush1.bf16.msra.mxu0 %v4921_v19  ;;  %4233 = vmatpush3.bf16.msra.mxu1 %v5003_v18 }
 0x22f   :  { %4204 = vmatprep.subr.bf16.mxu0 %v4927_v24  ;;  %4234 = vmatprep.subr.bf16.mxu1 %v4815_v25 }
 0x230   :  { %1011 = vmatprep.mubr.f32.mxu0 %v4813_v1  ;;  %3858 = vmatprep.mubr.msk.f32.mxu1 %vm4816_vm1, %v4813_v1 }
 0x232   :  { %4206 = vmatpush1.bf16.msra.mxu0 %v4946_v33  ;;  %4236 = vmatpush3.bf16.msra.mxu1 %v5015_v31 }
 0x233   :  { %4208 = vmatprep.subr.bf16.mxu0 %v4961_v44  ;;  %4237 = vmatprep.subr.bf16.mxu1 %v4815_v25 }
 0x236   :  { %4210 = vmatpush1.bf16.msra.mxu0 %v4968_v49  ;;  %4239 = vmatpush3.bf16.msra.mxu1 %v5027_v41 }
 0x237   :  { %4212 = vmatprep.subr.bf16.mxu0 %v4988_v3  ;;  %4240 = vmatprep.subr.bf16.mxu1 %v4815_v25 }
 0x23a   :  { %4214 = vmatpush1.bf16.msra.mxu0 %v4992_v6  ;;  %4242 = vmatpush3.bf16.msra.mxu1 %v5037_v50 }
 0x23b   :  { %4216 = vmatprep.subr.bf16.mxu0 %v4996_v12  ;;  %4243 = vmatprep.subr.bf16.mxu1 %v4815_v25 }
 0x23e   :  { %4218 = vmatpush1.bf16.msra.mxu0 %v5000_v17  ;;  %4245 = vmatpush3.bf16.msra.mxu1 %v5042_v53 }
 0x23f   :  { %4220 = vmatprep.subr.bf16.mxu0 %v5005_v20  ;;  %4246 = vmatprep.subr.bf16.mxu1 %v4815_v25 }
 0x242   :  { %4222 = vmatpush1.bf16.msra.mxu0 %v5011_v30  ;;  %4248 = vmatpush3.bf16.msra.mxu1 %v5050_v56 }
 0x243   :  { %4224 = vmatprep.subr.bf16.mxu0 %v5017_v32  ;;  %4249 = vmatprep.subr.bf16.mxu1 %v4815_v25 }
 0x246   :  { %4226 = vmatpush1.bf16.msra.mxu0 %v5023_v40  ;;  %4251 = vmatpush3.bf16.msra.mxu1 %v5056_v59 }
 0x247   :  { %4228 = vmatprep.subr.bf16.mxu0 %v5029_v42  ;;  %4252 = vmatprep.subr.bf16.mxu1 %v4815_v25 }
 0x24a   :  { %4230 = vmatpush1.bf16.msra.mxu0 %v5033_v48  ;;  %4254 = vmatpush3.bf16.msra.mxu1 %v5062_v62 }
 0x24b   :  { %4256 = vmatprep.subr.bf16.mxu0 %v4916_v14  ;;  %4287 = vmatprep.subr.bf16.mxu1 %v4815_v25 }
 0x300   :  { %v757_v9 = vpop.f32.mrb[2].mxu0  ;;  %v828_v10 = vpop.f32.mrb[8].mxu1 }
 0x301   :  { %v758_v11 = vadd.f32 %v757_v9, %v5124_v16  ;;  %v829_v15 = vadd.f32 %v828_v10, %v5135_v38  ;;  %v759_v22 = vpop.f32.mrb[3].mxu0  ;;  %v3825_v23 = vpop.f32.mrb[9].mxu1 }
 0x302   :  { %v760_v27 = vadd.f32 %v759_v22, %v5127_v21 }
 0x303   :  { %v836_v29 = vadd.f32 %v833_v26, %v758_v11  ;;  %v907_v34 = vrot.slane %v829_v15, %v4936_v28  ;;  %v893_v5 = vadd.f32 %v891_v61, %v829_v15 }
 0x304   :  { %v880_v35 = vrot.slane %v760_v27, %v4936_v28 }
 0x305   :  { %v3561_v36 = vmul.f32 -1.442695, %v836_v29  ;;  %908 = vrot.lane.b32.xlu0 %v907_v34, %s4817_s25  ;;  %v3563_v7 = vmul.f32 -1.442695, %v893_v5 }
 0x306   :  { %881 = vrot.lane.b32.xlu1 %v880_v35, %s4817_s25 }
 0x307   :  { %4604 = vpow2.f32 %v3561_v36 }
 0x309   :  { %863 = vrot.lane.b32.xlu0 %v862_v37, %s4817_s25 }
 0x311   :  { %v4605_v39 = vpop.eup %4604 }
 0x312   :  { %v840_v43 = vadd.f32 1.0, %v4605_v39 }
 0x314   :  { %4606 = vrcp.f32 %v840_v43 }
 0x31e   :  { %v4607_v45 = vpop.eup %4606 }
 0x31f   :  { %v843_v47 = vmul.f32 %v4607_v45, %v760_v27  ;;  %v912_v27 = vrot.slane %v870_v54, 4  ;;  %v849_v0 = vsub.f32 1.0, %v4607_v45 }
 0x321   :  { %v847_v51 = vadd.f32 %v845_v46, %v843_v47 }
 0x323   :  { %4608 = vtanh.f32 %v847_v51 }
 0x32d   :  { %v4609_v52 = vpop.eup %4608 }
 0x32e   :  { %851 = vrot.lane.b32.xlu1 %v4609_v52, %s4817_s25 }
 0x377   :  { %v909_v26 = vpop.permute.xlu0 %908 }
 0x378   :  { %v882_v58 = vpop.permute.xlu1 %881 }
 0x379   :  { %v884_v60 = vadd.f32 %v882_v58, %v871_v57 }
 0x37b   :  { %v3562_v55 = vmul.f32 -1.442695, %v884_v60  ;;  %v864_v35 = vpop.permute.xlu0 %863  ;;  %v5202_v60 = vld [vmem:[#allocation2 + $0x1e] sm:$0x3f] }
 0x37c   :  { %v866_v15 = vmul.f32 %v4607_v45, %v864_v35 }
 0x37d   :  { %4610 = vpow2.f32 %v3562_v55 }
 0x37e   :  { %4612 = vpow2.f32 %v3563_v7 }
 0x387   :  { %v4611_v9 = vpop.eup %4610 }
 0x388   :  { %v888_v10 = vadd.f32 1.0, %v4611_v9  ;;  %v4613_v11 = vpop.eup %4612 }
 0x389   :  { %v897_v22 = vadd.f32 1.0, %v4613_v11 }
 0x38a   :  { %4614 = vrcp.f32 %v888_v10 }
 0x38b   :  { %4616 = vrcp.f32 %v897_v22 }
 0x394   :  { %v4615_v23 = vpop.eup %4614 }
 0x395   :  { %v911_v29 = vmul.f32 %v4615_v23, %v909_v26  ;;  %v4617_v36 = vpop.eup %4616  ;;  %v1089_v23 = vld [vmem:[#allocation2 + $0xc] sm:$0x3f] }
 0x396   :  { %v916_v43 = vsub.f32 1.0, %v4617_v36  ;;  %v918_v52 = vmul.f32 %v4617_v36, %v864_v35 }
 0x397   :  { %v914_v34 = vadd.f32 %v912_v27, %v911_v29 }
 0x399   :  { %4618 = vtanh.f32 %v914_v34 }
 0x3a0   :  { %v852_v37 = vpop.permute.xlu1 %851 }
 0x3a1   :  { %v854_v39 = vmul.f32 %v852_v37, %v849_v0 }
 0x3a3   :  { %v4619_v46 = vpop.eup %4618  ;;  %v867_v47 = vadd.f32 %v866_v15, %v854_v39  ;;  %v1101_v39 = vrot.slane %v1089_v23, 2 }
 0x3a4   :  { %v917_v51 = vmul.f32 %v4619_v46, %v916_v43 }
 0x3a5   :  { %v927_v57 = vrot.slane %v867_v47, %v4936_v28 }
 0x3a6   :  { %v919_v58 = vadd.f32 %v918_v52, %v917_v51 }
 0x3a7   :  { %928 = vrot.lane.b32.xlu1 %v927_v57, %s4817_s25 }
 0x3a8   :  { %v940_v54 = vrot.slane %v919_v58, %v4936_v28 }
 0x3aa   :  { %941 = vrot.lane.b32.xlu0 %v940_v54, %s4817_s25  ;;  %v1147_v54 = vrot.slane %v5202_v60, 4 }
 0x3ab   :  { %1125 = vrot.lane.b32.xlu1 %v5202_v60, %s4817_s25 }
 0x419   :  { %v929_v45 = vpop.permute.xlu1 %928 }
 0x41a   :  { %932 = vst.msk [vmem:[#allocation7 + $0x2] sm:$0x3] %vm673_vm2, %v929_v45 }
 0x41c   :  { %v942_v61 = vpop.permute.xlu0 %941 }
 0x41d   :  { %945 = vst.msk [vmem:[#allocation7 + $0xc] sm:$0x3] %vm687_vm3, %v942_v61  ;;  %v946_v55 = vsel %vm689_vm4, %v929_v45, %v942_v61  ;;  %v1126_v51 = vpop.permute.xlu1 %1125 }
 0x41e   :  { %1012 = vmatmul.mubr.f32.vlgmr.msra.gmra.mrb[4].mxu0 %v946_v55  ;;  %3859 = vmatmul.mubr.f32.vlgmr.msra.gmra.mrb[10].mxu1 %v946_v55  ;;  %v1118_v36 = vrot.slane %v946_v55, %v4936_v28  ;;  %v1127_v52 = vrot.slane %v1126_v51, 2 }
 0x41f   :  { %4258 = vmatpush1.bf16.msra.mxu0 %v4921_v19  ;;  %4289 = vmatpush3.bf16.msra.mxu1 %v5003_v18 }
 0x420   :  { %4260 = vmatprep.subr.bf16.mxu0 %v4927_v24  ;;  %4290 = vmatprep.subr.bf16.mxu1 %v4815_v25 }
 0x421   :  { %1267 = vmatprep.mubr.f32.mxu0 %v4813_v1  ;;  %3893 = vmatprep.mubr.msk.f32.mxu1 %vm4816_vm1, %v4813_v1 }
 0x423   :  { %4262 = vmatpush1.bf16.msra.mxu0 %v4946_v33  ;;  %4292 = vmatpush3.bf16.msra.mxu1 %v5015_v31 }
 0x424   :  { %4264 = vmatprep.subr.bf16.mxu0 %v4961_v44  ;;  %4293 = vmatprep.subr.bf16.mxu1 %v4815_v25 }
 0x427   :  { %4266 = vmatpush1.bf16.msra.mxu0 %v4968_v49  ;;  %4295 = vmatpush3.bf16.msra.mxu1 %v5027_v41 }
 0x428   :  { %4268 = vmatprep.subr.bf16.mxu0 %v4988_v3  ;;  %4296 = vmatprep.subr.bf16.mxu1 %v4815_v25 }
 0x42b   :  { %4270 = vmatpush1.bf16.msra.mxu0 %v4992_v6  ;;  %4298 = vmatpush3.bf16.msra.mxu1 %v5037_v50 }
 0x42c   :  { %4272 = vmatprep.subr.bf16.mxu0 %v4996_v12  ;;  %4299 = vmatprep.subr.bf16.mxu1 %v4815_v25 }
 0x42f   :  { %4274 = vmatpush1.bf16.msra.mxu0 %v5000_v17  ;;  %4301 = vmatpush3.bf16.msra.mxu1 %v5042_v53 }
 0x430   :  { %4276 = vmatprep.subr.bf16.mxu0 %v5005_v20  ;;  %4302 = vmatprep.subr.bf16.mxu1 %v4815_v25 }
 0x433   :  { %4278 = vmatpush1.bf16.msra.mxu0 %v5011_v30  ;;  %4304 = vmatpush3.bf16.msra.mxu1 %v5050_v56 }
 0x434   :  { %4280 = vmatprep.subr.bf16.mxu0 %v5017_v32  ;;  %4305 = vmatprep.subr.bf16.mxu1 %v4815_v25 }
 0x437   :  { %4282 = vmatpush1.bf16.msra.mxu0 %v5023_v40  ;;  %4307 = vmatpush3.bf16.msra.mxu1 %v5056_v59 }
 0x438   :  { %4284 = vmatprep.subr.bf16.mxu0 %v5029_v42  ;;  %4308 = vmatprep.subr.bf16.mxu1 %v4815_v25 }
 0x43b   :  { %4286 = vmatpush1.bf16.msra.mxu0 %v5033_v48  ;;  %4310 = vmatpush3.bf16.msra.mxu1 %v5062_v62 }
 0x43c   :  { %4312 = vmatprep.subr.bf16.mxu0 %v4916_v14  ;;  %4343 = vmatprep.subr.bf16.mxu1 %v4815_v25 }
 0x4f1   :  { %v1013_v5 = vpop.f32.mrb[4].mxu0  ;;  %v1084_v7 = vpop.f32.mrb[10].mxu1 }
 0x4f2   :  { %v1014_v9 = vadd.f32 %v1013_v5, %v5124_v16  ;;  %v1085_v10 = vadd.f32 %v1084_v7, %v5135_v38  ;;  %v1015_v11 = vpop.f32.mrb[5].mxu0  ;;  %v3860_v22 = vpop.f32.mrb[11].mxu1 }
 0x4f3   :  { %v1016_v26 = vadd.f32 %v1015_v11, %v5127_v21 }
 0x4f4   :  { %v1092_v27 = vadd.f32 %v1089_v23, %v1014_v9  ;;  %v1163_v29 = vrot.slane %v1085_v10, %v4936_v28  ;;  %v1149_v61 = vadd.f32 %v1147_v54, %v1085_v10 }
 0x4f5   :  { %v1136_v34 = vrot.slane %v1016_v26, %v4936_v28 }
 0x4f6   :  { %v3564_v35 = vmul.f32 -1.442695, %v1092_v27  ;;  %1164 = vrot.lane.b32.xlu1 %v1163_v29, %s4817_s25  ;;  %v3566_v55 = vmul.f32 -1.442695, %v1149_v61 }
 0x4f7   :  { %1137 = vrot.lane.b32.xlu0 %v1136_v34, %s4817_s25 }
 0x4f8   :  { %4620 = vpow2.f32 %v3564_v35 }
 0x4fa   :  { %1119 = vrot.lane.b32.xlu1 %v1118_v36, %s4817_s25 }
 0x502   :  { %v4621_v0 = vpop.eup %4620 }
 0x503   :  { %v1096_v37 = vadd.f32 1.0, %v4621_v0 }
 0x505   :  { %4622 = vrcp.f32 %v1096_v37 }
 0x50f   :  { %v4623_v15 = vpop.eup %4622 }
 0x510   :  { %v1099_v43 = vmul.f32 %v4623_v15, %v1016_v26  ;;  %v1168_v26 = vrot.slane %v1126_v51, 4  ;;  %v1105_v60 = vsub.f32 1.0, %v4623_v15 }
 0x512   :  { %v1103_v46 = vadd.f32 %v1101_v39, %v1099_v43 }
 0x514   :  { %4624 = vtanh.f32 %v1103_v46 }
 0x51e   :  { %v4625_v47 = vpop.eup %4624 }
 0x51f   :  { %1107 = vrot.lane.b32.xlu0 %v4625_v47, %s4817_s25 }
 0x568   :  { %v1165_v23 = vpop.permute.xlu1 %1164 }
 0x569   :  { %v1138_v57 = vpop.permute.xlu0 %1137 }
 0x56a   :  { %v1140_v58 = vadd.f32 %v1138_v57, %v1127_v52 }
 0x56c   :  { %v3565_v45 = vmul.f32 -1.442695, %v1140_v58  ;;  %v1120_v34 = vpop.permute.xlu1 %1119  ;;  %v5259_v58 = vld [vmem:[#allocation2 + $0x18] sm:$0x3f] }
 0x56d   :  { %v1122_v10 = vmul.f32 %v4623_v15, %v1120_v34 }
 0x56e   :  { %4626 = vpow2.f32 %v3565_v45 }
 0x56f   :  { %4628 = vpow2.f32 %v3566_v55 }
 0x578   :  { %v4627_v5 = vpop.eup %4626 }
 0x579   :  { %v1144_v7 = vadd.f32 1.0, %v4627_v5  ;;  %v4629_v9 = vpop.eup %4628 }
 0x57a   :  { %v1153_v11 = vadd.f32 1.0, %v4629_v9 }
 0x57b   :  { %4630 = vrcp.f32 %v1144_v7 }
 0x57c   :  { %4632 = vrcp.f32 %v1153_v11 }
 0x585   :  { %v4631_v22 = vpop.eup %4630 }
 0x586   :  { %v1167_v27 = vmul.f32 %v4631_v22, %v1165_v23  ;;  %v4633_v35 = vpop.eup %4632  ;;  %v1345_v22 = vld [vmem:[#allocation2 + $0x12] sm:$0x3f] }
 0x587   :  { %v1172_v37 = vsub.f32 1.0, %v4633_v35  ;;  %v1174_v47 = vmul.f32 %v4633_v35, %v1120_v34 }
 0x588   :  { %v1170_v29 = vadd.f32 %v1168_v26, %v1167_v27 }
 0x58a   :  { %4634 = vtanh.f32 %v1170_v29 }
 0x591   :  { %v1108_v36 = vpop.permute.xlu0 %1107 }
 0x592   :  { %v1110_v0 = vmul.f32 %v1108_v36, %v1105_v60 }
 0x594   :  { %v4635_v39 = vpop.eup %4634  ;;  %v1123_v43 = vadd.f32 %v1122_v10, %v1110_v0  ;;  %v1357_v0 = vrot.slane %v1345_v22, 2 }
 0x595   :  { %v1173_v46 = vmul.f32 %v4635_v39, %v1172_v37 }
 0x596   :  { %v1183_v52 = vrot.slane %v1123_v43, %v4936_v28 }
 0x597   :  { %v1175_v57 = vadd.f32 %v1174_v47, %v1173_v46 }
 0x598   :  { %1184 = vrot.lane.b32.xlu0 %v1183_v52, %s4817_s25 }
 0x599   :  { %v1196_v51 = vrot.slane %v1175_v57, %v4936_v28 }
 0x59b   :  { %1197 = vrot.lane.b32.xlu1 %v1196_v51, %s4817_s25  ;;  %v1403_v51 = vrot.slane %v5259_v58, 4 }
 0x59c   :  { %1381 = vrot.lane.b32.xlu0 %v5259_v58, %s4817_s25 }
 0x60a   :  { %v1185_v15 = vpop.permute.xlu0 %1184 }
 0x60b   :  { %1188 = vst.msk [vmem:[#allocation7 + $0x4] sm:$0x3] %vm673_vm2, %v1185_v15 }
 0x60d   :  { %v1198_v54 = vpop.permute.xlu1 %1197 }
 0x60e   :  { %1201 = vst.msk [vmem:[#allocation7 + $0xa] sm:$0x3] %vm687_vm3, %v1198_v54  ;;  %v1202_v45 = vsel %vm689_vm4, %v1185_v15, %v1198_v54  ;;  %v1382_v46 = vpop.permute.xlu0 %1381 }
 0x60f   :  { %1268 = vmatmul.mubr.f32.vlgmr.msra.gmra.mrb[6].mxu0 %v1202_v45  ;;  %3894 = vmatmul.mubr.f32.vlgmr.msra.gmra.mrb[12].mxu1 %v1202_v45  ;;  %v1374_v35 = vrot.slane %v1202_v45, %v4936_v28  ;;  %v1383_v47 = vrot.slane %v1382_v46, 2 }
 0x610   :  { %4314 = vmatpush1.bf16.msra.mxu0 %v4921_v19  ;;  %4345 = vmatpush3.bf16.msra.mxu1 %v5003_v18 }
 0x611   :  { %4316 = vmatprep.subr.bf16.mxu0 %v4927_v24  ;;  %4346 = vmatprep.subr.bf16.mxu1 %v4815_v25 }
 0x612   :  { %1523 = vmatprep.mubr.f32.mxu0 %v4813_v1  ;;  %3928 = vmatprep.mubr.msk.f32.mxu1 %vm4816_vm1, %v4813_v1 }
 0x614   :  { %4318 = vmatpush1.bf16.msra.mxu0 %v4946_v33  ;;  %4348 = vmatpush3.bf16.msra.mxu1 %v5015_v31 }
 0x615   :  { %4320 = vmatprep.subr.bf16.mxu0 %v4961_v44  ;;  %4349 = vmatprep.subr.bf16.mxu1 %v4815_v25 }
 0x618   :  { %4322 = vmatpush1.bf16.msra.mxu0 %v4968_v49  ;;  %4351 = vmatpush3.bf16.msra.mxu1 %v5027_v41 }
 0x619   :  { %4324 = vmatprep.subr.bf16.mxu0 %v4988_v3  ;;  %4352 = vmatprep.subr.bf16.mxu1 %v4815_v25 }
 0x61c   :  { %4326 = vmatpush1.bf16.msra.mxu0 %v4992_v6  ;;  %4354 = vmatpush3.bf16.msra.mxu1 %v5037_v50 }
 0x61d   :  { %4328 = vmatprep.subr.bf16.mxu0 %v4996_v12  ;;  %4355 = vmatprep.subr.bf16.mxu1 %v4815_v25 }
 0x620   :  { %4330 = vmatpush1.bf16.msra.mxu0 %v5000_v17  ;;  %4357 = vmatpush3.bf16.msra.mxu1 %v5042_v53 }
 0x621   :  { %4332 = vmatprep.subr.bf16.mxu0 %v5005_v20  ;;  %4358 = vmatprep.subr.bf16.mxu1 %v4815_v25 }
 0x624   :  { %4334 = vmatpush1.bf16.msra.mxu0 %v5011_v30  ;;  %4360 = vmatpush3.bf16.msra.mxu1 %v5050_v56 }
 0x625   :  { %4336 = vmatprep.subr.bf16.mxu0 %v5017_v32  ;;  %4361 = vmatprep.subr.bf16.mxu1 %v4815_v25 }
 0x628   :  { %4338 = vmatpush1.bf16.msra.mxu0 %v5023_v40  ;;  %4363 = vmatpush3.bf16.msra.mxu1 %v5056_v59 }
 0x629   :  { %4340 = vmatprep.subr.bf16.mxu0 %v5029_v42  ;;  %4364 = vmatprep.subr.bf16.mxu1 %v4815_v25 }
 0x62c   :  { %4342 = vmatpush1.bf16.msra.mxu0 %v5033_v48  ;;  %4366 = vmatpush3.bf16.msra.mxu1 %v5062_v62 }
 0x62d   :  { %4368 = vmatprep.subr.bf16.mxu0 %v4916_v14  ;;  %4399 = vmatprep.subr.bf16.mxu1 %v4815_v25 }
 0x6e2   :  { %v1269_v61 = vpop.f32.mrb[6].mxu0  ;;  %v1340_v55 = vpop.f32.mrb[12].mxu1 }
 0x6e3   :  { %v1270_v5 = vadd.f32 %v1269_v61, %v5124_v16  ;;  %v1341_v7 = vadd.f32 %v1340_v55, %v5135_v38  ;;  %v1271_v9 = vpop.f32.mrb[7].mxu0  ;;  %v3895_v11 = vpop.f32.mrb[13].mxu1 }
 0x6e4   :  { %v1272_v23 = vadd.f32 %v1271_v9, %v5127_v21 }
 0x6e5   :  { %v1348_v26 = vadd.f32 %v1345_v22, %v1270_v5  ;;  %v1419_v27 = vrot.slane %v1341_v7, %v4936_v28  ;;  %v1405_v54 = vadd.f32 %v1403_v51, %v1341_v7 }
 0x6e6   :  { %v1392_v29 = vrot.slane %v1272_v23, %v4936_v28 }
 0x6e7   :  { %v3567_v34 = vmul.f32 -1.442695, %v1348_v26  ;;  %1420 = vrot.lane.b32.xlu0 %v1419_v27, %s4817_s25  ;;  %v3569_v45 = vmul.f32 -1.442695, %v1405_v54 }
 0x6e8   :  { %1393 = vrot.lane.b32.xlu1 %v1392_v29, %s4817_s25 }
 0x6e9   :  { %4636 = vpow2.f32 %v3567_v34 }
 0x6eb   :  { %1375 = vrot.lane.b32.xlu0 %v1374_v35, %s4817_s25 }
 0x6f3   :  { %v4637_v60 = vpop.eup %4636 }
 0x6f4   :  { %v1352_v36 = vadd.f32 1.0, %v4637_v60 }
 0x6f6   :  { %4638 = vrcp.f32 %v1352_v36 }
 0x700   :  { %v4639_v10 = vpop.eup %4638 }
 0x701   :  { %v1355_v37 = vmul.f32 %v4639_v10, %v1272_v23  ;;  %v1424_v23 = vrot.slane %v1382_v46, 4  ;;  %v1361_v58 = vsub.f32 1.0, %v4639_v10 }
 0x703   :  { %v1359_v39 = vadd.f32 %v1357_v0, %v1355_v37 }
 0x705   :  { %4640 = vtanh.f32 %v1359_v39 }
 0x70f   :  { %v4641_v43 = vpop.eup %4640 }
 0x710   :  { %1363 = vrot.lane.b32.xlu1 %v4641_v43, %s4817_s25 }
 0x759   :  { %v1421_v22 = vpop.permute.xlu0 %1420 }
 0x75a   :  { %v1394_v52 = vpop.permute.xlu1 %1393 }
 0x75b   :  { %v1396_v57 = vadd.f32 %v1394_v52, %v1383_v47 }
 0x75d   :  { %v3568_v15 = vmul.f32 -1.442695, %v1396_v57  ;;  %v1376_v29 = vpop.permute.xlu0 %1375  ;;  %v5316_v57 = vld [vmem:[#allocation2 + $0x12] sm:$0x3f] }
 0x75e   :  { %v1378_v7 = vmul.f32 %v4639_v10, %v1376_v29 }
 0x75f   :  { %4642 = vpow2.f32 %v3568_v15 }
 0x760   :  { %4644 = vpow2.f32 %v3569_v45 }
 0x769   :  { %v4643_v61 = vpop.eup %4642 }
 0x76a   :  { %v1400_v55 = vadd.f32 1.0, %v4643_v61  ;;  %v4645_v5 = vpop.eup %4644 }
 0x76b   :  { %v1409_v9 = vadd.f32 1.0, %v4645_v5 }
 0x76c   :  { %4646 = vrcp.f32 %v1400_v55 }
 0x76d   :  { %4648 = vrcp.f32 %v1409_v9 }
 0x776   :  { %v4647_v11 = vpop.eup %4646 }
 0x777   :  { %v1423_v26 = vmul.f32 %v4647_v11, %v1421_v22  ;;  %v4649_v34 = vpop.eup %4648  ;;  %v1600_v11 = vld [vmem:[#allocation2 + $0x18] sm:$0x3f] }
 0x778   :  { %v1428_v36 = vsub.f32 1.0, %v4649_v34  ;;  %v1430_v43 = vmul.f32 %v4649_v34, %v1376_v29 }
 0x779   :  { %v1426_v27 = vadd.f32 %v1424_v23, %v1423_v26 }
 0x77b   :  { %4650 = vtanh.f32 %v1426_v27 }
 0x782   :  { %v1364_v35 = vpop.permute.xlu1 %1363 }
 0x783   :  { %v1366_v60 = vmul.f32 %v1364_v35, %v1361_v58 }
 0x785   :  { %v4651_v0 = vpop.eup %4650  ;;  %v1379_v37 = vadd.f32 %v1378_v7, %v1366_v60  ;;  %v1611_v60 = vrot.slane %v1600_v11, 2 }
 0x786   :  { %v1429_v39 = vmul.f32 %v4651_v0, %v1428_v36 }
 0x787   :  { %v1439_v47 = vrot.slane %v1379_v37, %v4936_v28 }
 0x788   :  { %v1431_v52 = vadd.f32 %v1430_v43, %v1429_v39 }
 0x789   :  { %1440 = vrot.lane.b32.xlu1 %v1439_v47, %s4817_s25 }
 0x78a   :  { %v1452_v46 = vrot.slane %v1431_v52, %v4936_v28 }
 0x78c   :  { %1453 = vrot.lane.b32.xlu0 %v1452_v46, %s4817_s25  ;;  %v1657_v46 = vrot.slane %v5316_v57, 4 }
 0x78d   :  { %1635 = vrot.lane.b32.xlu1 %v5316_v57, %s4817_s25 }
 0x7fb   :  { %v1441_v10 = vpop.permute.xlu1 %1440 }
 0x7fc   :  { %1444 = vst.msk [vmem:[#allocation7 + $0x6] sm:$0x3] %vm673_vm2, %v1441_v10 }
 0x7fe   :  { %v1454_v51 = vpop.permute.xlu0 %1453 }
 0x7ff   :  { %1457 = vst.msk [vmem:[#allocation7 + $0x8] sm:$0x3] %vm687_vm3, %v1454_v51  ;;  %v1458_v15 = vsel %vm689_vm4, %v1441_v10, %v1454_v51  ;;  %v1636_v39 = vpop.permute.xlu1 %1635 }
 0x800   :  { %1524 = vmatmul.mubr.f32.vlgmr.msra.gmra.mrb[8].mxu0 %v1458_v15  ;;  %3929 = vmatmul.mubr.f32.vlgmr.msra.gmra.mrb[14].mxu1 %v1458_v15  ;;  %v1628_v34 = vrot.slane %v1458_v15, %v4936_v28  ;;  %v1637_v43 = vrot.slane %v1636_v39, 2 }
 0x801   :  { %4370 = vmatpush1.bf16.msra.mxu0 %v4921_v19  ;;  %4401 = vmatpush3.bf16.msra.mxu1 %v5003_v18 }
 0x802   :  { %4372 = vmatprep.subr.bf16.mxu0 %v4927_v24  ;;  %4402 = vmatprep.subr.bf16.mxu1 %v4815_v25 }
 0x803   :  { %1775 = vmatprep.mubr.f32.mxu0 %v4813_v1  ;;  %3963 = vmatprep.mubr.msk.f32.mxu1 %vm4816_vm1, %v4813_v1 }
 0x805   :  { %4374 = vmatpush1.bf16.msra.mxu0 %v4946_v33  ;;  %4404 = vmatpush3.bf16.msra.mxu1 %v5015_v31 }
 0x806   :  { %4376 = vmatprep.subr.bf16.mxu0 %v4961_v44  ;;  %4405 = vmatprep.subr.bf16.mxu1 %v4815_v25 }
 0x809   :  { %4378 = vmatpush1.bf16.msra.mxu0 %v4968_v49  ;;  %4407 = vmatpush3.bf16.msra.mxu1 %v5027_v41 }
 0x80a   :  { %4380 = vmatprep.subr.bf16.mxu0 %v4988_v3  ;;  %4408 = vmatprep.subr.bf16.mxu1 %v4815_v25 }
 0x80d   :  { %4382 = vmatpush1.bf16.msra.mxu0 %v4992_v6  ;;  %4410 = vmatpush3.bf16.msra.mxu1 %v5037_v50 }
 0x80e   :  { %4384 = vmatprep.subr.bf16.mxu0 %v4996_v12  ;;  %4411 = vmatprep.subr.bf16.mxu1 %v4815_v25 }
 0x811   :  { %4386 = vmatpush1.bf16.msra.mxu0 %v5000_v17  ;;  %4413 = vmatpush3.bf16.msra.mxu1 %v5042_v53 }
 0x812   :  { %4388 = vmatprep.subr.bf16.mxu0 %v5005_v20  ;;  %4414 = vmatprep.subr.bf16.mxu1 %v4815_v25 }
 0x815   :  { %4390 = vmatpush1.bf16.msra.mxu0 %v5011_v30  ;;  %4416 = vmatpush3.bf16.msra.mxu1 %v5050_v56 }
 0x816   :  { %4392 = vmatprep.subr.bf16.mxu0 %v5017_v32  ;;  %4417 = vmatprep.subr.bf16.mxu1 %v4815_v25 }
 0x819   :  { %4394 = vmatpush1.bf16.msra.mxu0 %v5023_v40  ;;  %4419 = vmatpush3.bf16.msra.mxu1 %v5056_v59 }
 0x81a   :  { %4396 = vmatprep.subr.bf16.mxu0 %v5029_v42  ;;  %4420 = vmatprep.subr.bf16.mxu1 %v4815_v25 }
 0x81d   :  { %4398 = vmatpush1.bf16.msra.mxu0 %v5033_v48  ;;  %4422 = vmatpush3.bf16.msra.mxu1 %v5062_v62 }
 0x81e   :  { %4424 = vmatprep.subr.bf16.mxu0 %v4916_v14  ;;  %4455 = vmatprep.subr.bf16.mxu1 %v4815_v25 }
 0x8d3   :  { %v1525_v54 = vpop.f32.mrb[8].mxu0  ;;  %v1596_v45 = vpop.f32.mrb[14].mxu1 }
 0x8d4   :  { %v1526_v61 = vadd.f32 %v1525_v54, %v5124_v16  ;;  %v1597_v55 = vadd.f32 %v1596_v45, %v5135_v38  ;;  %v1527_v5 = vpop.f32.mrb[9].mxu0  ;;  %v3930_v9 = vpop.f32.mrb[15].mxu1 }
 0x8d5   :  { %v1528_v22 = vadd.f32 %v1527_v5, %v5127_v21 }
 0x8d6   :  { %v1602_v23 = vadd.f32 %v1600_v11, %v1526_v61  ;;  %v1673_v26 = vrot.slane %v1597_v55, %v4936_v28  ;;  %v1659_v51 = vadd.f32 %v1657_v46, %v1597_v55 }
 0x8d7   :  { %v1646_v27 = vrot.slane %v1528_v22, %v4936_v28 }
 0x8d8   :  { %v3570_v29 = vmul.f32 -1.442695, %v1602_v23  ;;  %1674 = vrot.lane.b32.xlu1 %v1673_v26, %s4817_s25  ;;  %v3572_v15 = vmul.f32 -1.442695, %v1659_v51 }
 0x8d9   :  { %1647 = vrot.lane.b32.xlu0 %v1646_v27, %s4817_s25 }
 0x8da   :  { %4652 = vpow2.f32 %v3570_v29 }
 0x8dc   :  { %1629 = vrot.lane.b32.xlu1 %v1628_v34, %s4817_s25 }
 0x8e4   :  { %v4653_v58 = vpop.eup %4652 }
 0x8e5   :  { %v1606_v35 = vadd.f32 1.0, %v4653_v58 }
 0x8e7   :  { %4654 = vrcp.f32 %v1606_v35 }
 0x8f1   :  { %v4655_v7 = vpop.eup %4654 }
 0x8f2   :  { %v1609_v36 = vmul.f32 %v4655_v7, %v1528_v22  ;;  %v1678_v22 = vrot.slane %v1636_v39, 4  ;;  %v1615_v57 = vsub.f32 1.0, %v4655_v7 }
 0x8f4   :  { %v1613_v0 = vadd.f32 %v1611_v60, %v1609_v36 }
 0x8f6   :  { %4656 = vtanh.f32 %v1613_v0 }
 0x900   :  { %v4657_v37 = vpop.eup %4656 }
 0x901   :  { %1617 = vrot.lane.b32.xlu0 %v4657_v37, %s4817_s25 }
 0x94a   :  { %v1675_v11 = vpop.permute.xlu1 %1674 }
 0x94b   :  { %v1648_v47 = vpop.permute.xlu0 %1647 }
 0x94c   :  { %v1650_v52 = vadd.f32 %v1648_v47, %v1637_v43 }
 0x94e   :  { %v3571_v10 = vmul.f32 -1.442695, %v1650_v52  ;;  %v1630_v27 = vpop.permute.xlu1 %1629  ;;  %v5373_v52 = vld [vmem:[#allocation2 + $0xc] sm:$0x3f] }
 0x94f   :  { %v1632_v55 = vmul.f32 %v4655_v7, %v1630_v27 }
 0x950   :  { %4658 = vpow2.f32 %v3571_v10 }
 0x951   :  { %4660 = vpow2.f32 %v3572_v15 }
 0x95a   :  { %v4659_v54 = vpop.eup %4658 }
 0x95b   :  { %v1654_v45 = vadd.f32 1.0, %v4659_v54  ;;  %v4661_v61 = vpop.eup %4660 }
 0x95c   :  { %v1663_v5 = vadd.f32 1.0, %v4661_v61 }
 0x95d   :  { %4662 = vrcp.f32 %v1654_v45 }
 0x95e   :  { %4664 = vrcp.f32 %v1663_v5 }
 0x967   :  { %v4663_v9 = vpop.eup %4662 }
 0x968   :  { %v1677_v23 = vmul.f32 %v4663_v9, %v1675_v11  ;;  %v4665_v29 = vpop.eup %4664  ;;  %v1852_v9 = vld [vmem:[#allocation2 + $0x1e] sm:$0x3f] }
 0x969   :  { %v1682_v35 = vsub.f32 1.0, %v4665_v29  ;;  %v1684_v37 = vmul.f32 %v4665_v29, %v1630_v27 }
 0x96a   :  { %v1680_v26 = vadd.f32 %v1678_v22, %v1677_v23 }
 0x96c   :  { %4666 = vtanh.f32 %v1680_v26 }
 0x973   :  { %v1618_v34 = vpop.permute.xlu0 %1617 }
 0x974   :  { %v1620_v58 = vmul.f32 %v1618_v34, %v1615_v57 }
 0x976   :  { %v4667_v60 = vpop.eup %4666  ;;  %v1633_v36 = vadd.f32 %v1632_v55, %v1620_v58  ;;  %v1863_v55 = vrot.slane %v1852_v9, 2 }
 0x977   :  { %v1683_v0 = vmul.f32 %v4667_v60, %v1682_v35 }
 0x978   :  { %v1693_v43 = vrot.slane %v1633_v36, %v4936_v28 }
 0x979   :  { %v1685_v47 = vadd.f32 %v1684_v37, %v1683_v0 }
 0x97a   :  { %1694 = vrot.lane.b32.xlu0 %v1693_v43, %s4817_s25 }
 0x97b   :  { %v1705_v39 = vrot.slane %v1685_v47, %v4936_v28  ;;  %v1909_v47 = vrot.slane %v5373_v52, 4 }
 0x97d   :  { %1706 = vrot.lane.b32.xlu1 %v1705_v39, %s4817_s25 }
 0x97e   :  { %1887 = vrot.lane.b32.xlu0 %v5373_v52, %s4817_s25 }
 0x9ec   :  { %v1695_v7 = vpop.permute.xlu0 %1694 }
 0x9ed   :  { %1697 = vst.msk [vmem:[#allocation7 + $0x8] sm:$0x3] %vm673_vm2, %v1695_v7 }
 0x9ef   :  { %v1707_v46 = vpop.permute.xlu1 %1706 }
 0x9f0   :  { %1709 = vst.msk [vmem:[#allocation7 + $0x6] sm:$0x3] %vm687_vm3, %v1707_v46  ;;  %v1710_v10 = vsel %vm689_vm4, %v1695_v7, %v1707_v46  ;;  %v1888_v36 = vpop.permute.xlu0 %1887 }
 0x9f1   :  { %1776 = vmatmul.mubr.f32.vlgmr.msra.gmra.mrb[10].mxu0 %v1710_v10  ;;  %3964 = vmatmul.mubr.f32.vlgmr.msra.gmra.mrb[16].mxu1 %v1710_v10  ;;  %v1889_v0 = vrot.slane %v1888_v36, 2 }
 0x9f2   :  { %4426 = vmatpush1.bf16.msra.mxu0 %v4921_v19  ;;  %4457 = vmatpush3.bf16.msra.mxu1 %v5003_v18 }
 0x9f3   :  { %4428 = vmatprep.subr.bf16.mxu0 %v4927_v24  ;;  %4458 = vmatprep.subr.bf16.mxu1 %v4815_v25 }
 0x9f4   :  { %2027 = vmatprep.mubr.f32.mxu0 %v4813_v1  ;;  %3998 = vmatprep.mubr.msk.f32.mxu1 %vm4816_vm1, %v4813_v1 }
 0x9f6   :  { %4430 = vmatpush1.bf16.msra.mxu0 %v4946_v33  ;;  %4460 = vmatpush3.bf16.msra.mxu1 %v5015_v31 }
 0x9f7   :  { %4432 = vmatprep.subr.bf16.mxu0 %v4961_v44  ;;  %4461 = vmatprep.subr.bf16.mxu1 %v4815_v25 }
 0x9fa   :  { %4434 = vmatpush1.bf16.msra.mxu0 %v4968_v49  ;;  %4463 = vmatpush3.bf16.msra.mxu1 %v5027_v41 }
 0x9fb   :  { %4436 = vmatprep.subr.bf16.mxu0 %v4988_v3  ;;  %4464 = vmatprep.subr.bf16.mxu1 %v4815_v25 }
 0x9fe   :  { %4438 = vmatpush1.bf16.msra.mxu0 %v4992_v6  ;;  %4466 = vmatpush3.bf16.msra.mxu1 %v5037_v50 }
 0x9ff   :  { %4440 = vmatprep.subr.bf16.mxu0 %v4996_v12  ;;  %4467 = vmatprep.subr.bf16.mxu1 %v4815_v25 }
 0xa02   :  { %4442 = vmatpush1.bf16.msra.mxu0 %v5000_v17  ;;  %4469 = vmatpush3.bf16.msra.mxu1 %v5042_v53 }
 0xa03   :  { %4444 = vmatprep.subr.bf16.mxu0 %v5005_v20  ;;  %4470 = vmatprep.subr.bf16.mxu1 %v4815_v25 }
 0xa06   :  { %4446 = vmatpush1.bf16.msra.mxu0 %v5011_v30  ;;  %4472 = vmatpush3.bf16.msra.mxu1 %v5050_v56 }
 0xa07   :  { %4448 = vmatprep.subr.bf16.mxu0 %v5017_v32  ;;  %4473 = vmatprep.subr.bf16.mxu1 %v4815_v25 }
 0xa0a   :  { %4450 = vmatpush1.bf16.msra.mxu0 %v5023_v40  ;;  %4475 = vmatpush3.bf16.msra.mxu1 %v5056_v59 }
 0xa0b   :  { %4452 = vmatprep.subr.bf16.mxu0 %v5029_v42  ;;  %4476 = vmatprep.subr.bf16.mxu1 %v4815_v25 }
 0xa0e   :  { %4454 = vmatpush1.bf16.msra.mxu0 %v5033_v48  ;;  %4478 = vmatpush3.bf16.msra.mxu1 %v5062_v62 }
 0xa0f   :  { %4480 = vmatprep.subr.bf16.mxu0 %v4916_v14  ;;  %4511 = vmatprep.subr.bf16.mxu1 %v4815_v25  ;;  %v1880_v14 = vrot.slane %v1710_v10, %v4936_v28 }
 0xac4   :  { %v1777_v51 = vpop.f32.mrb[10].mxu0  ;;  %v1848_v15 = vpop.f32.mrb[16].mxu1 }
 0xac5   :  { %v1778_v54 = vadd.f32 %v1777_v51, %v5124_v16  ;;  %v1849_v45 = vadd.f32 %v1848_v15, %v5135_v38  ;;  %v1779_v61 = vpop.f32.mrb[11].mxu0  ;;  %v3965_v5 = vpop.f32.mrb[17].mxu1 }
 0xac6   :  { %v1780_v11 = vadd.f32 %v1779_v61, %v5127_v21 }
 0xac7   :  { %v1854_v22 = vadd.f32 %v1852_v9, %v1778_v54  ;;  %v1925_v23 = vrot.slane %v1849_v45, %v4936_v28  ;;  %v1911_v7 = vadd.f32 %v1909_v47, %v1849_v45  ;;  %v1930_v9 = vrot.slane %v1888_v36, 4 }
 0xac8   :  { %v1898_v26 = vrot.slane %v1780_v11, %v4936_v28 }
 0xac9   :  { %v3573_v27 = vmul.f32 -1.442695, %v1854_v22  ;;  %1926 = vrot.lane.b32.xlu0 %v1925_v23, %s4817_s25  ;;  %v3575_v46 = vmul.f32 -1.442695, %v1911_v7 }
 0xaca   :  { %1899 = vrot.lane.b32.xlu1 %v1898_v26, %s4817_s25 }
 0xacb   :  { %4668 = vpow2.f32 %v3573_v27 }
 0xacd   :  { %1881 = vrot.lane.b32.xlu0 %v1880_v14, %s4817_s25 }
 0xad5   :  { %v4669_v29 = vpop.eup %4668 }
 0xad6   :  { %v1858_v57 = vadd.f32 1.0, %v4669_v29 }
 0xad8   :  { %4670 = vrcp.f32 %v1858_v57 }
 0xae2   :  { %v4671_v34 = vpop.eup %4670 }
 0xae3   :  { %v1861_v58 = vmul.f32 %v4671_v34, %v1780_v11  ;;  %v1867_v52 = vsub.f32 1.0, %v4671_v34 }
 0xae5   :  { %v1865_v35 = vadd.f32 %v1863_v55, %v1861_v58 }
 0xae7   :  { %4672 = vtanh.f32 %v1865_v35 }
 0xaf1   :  { %v4673_v60 = vpop.eup %4672 }
 0xaf2   :  { %1869 = vrot.lane.b32.xlu1 %v4673_v60, %s4817_s25 }
 0xb3b   :  { %v1927_v5 = vpop.permute.xlu0 %1926 }
 0xb3c   :  { %v1900_v37 = vpop.permute.xlu1 %1899 }
 0xb3d   :  { %v1902_v43 = vadd.f32 %v1900_v37, %v1889_v0  ;;  %v5430_v37 = vld [vmem:[#allocation2 + $0x6] sm:$0x3f] }
 0xb3f   :  { %v3574_v39 = vmul.f32 -1.442695, %v1902_v43  ;;  %v1882_v23 = vpop.permute.xlu0 %1881 }
 0xb40   :  { %v1884_v45 = vmul.f32 %v4671_v34, %v1882_v23 }
 0xb41   :  { %4674 = vpow2.f32 %v3574_v39 }
 0xb42   :  { %4676 = vpow2.f32 %v3575_v46 }
 0xb4b   :  { %v4675_v10 = vpop.eup %4674 }
 0xb4c   :  { %v1906_v51 = vadd.f32 1.0, %v4675_v10  ;;  %v4677_v15 = vpop.eup %4676 }
 0xb4d   :  { %v1915_v54 = vadd.f32 1.0, %v4677_v15 }
 0xb4e   :  { %4678 = vrcp.f32 %v1906_v51 }
 0xb4f   :  { %4680 = vrcp.f32 %v1915_v54 }
 0xb58   :  { %v4679_v61 = vpop.eup %4678 }
 0xb59   :  { %v1929_v11 = vmul.f32 %v4679_v61, %v1927_v5  ;;  %v4681_v26 = vpop.eup %4680 }
 0xb5a   :  { %v1934_v29 = vsub.f32 1.0, %v4681_v26  ;;  %v1936_v35 = vmul.f32 %v4681_v26, %v1882_v23 }
 0xb5b   :  { %v1932_v22 = vadd.f32 %v1930_v9, %v1929_v11 }
 0xb5d   :  { %4682 = vtanh.f32 %v1932_v22 }
 0xb64   :  { %v1870_v27 = vpop.permute.xlu1 %1869 }
 0xb65   :  { %v1872_v14 = vmul.f32 %v1870_v27, %v1867_v52 }
 0xb67   :  { %v4683_v57 = vpop.eup %4682  ;;  %v1885_v55 = vadd.f32 %v1884_v45, %v1872_v14 }
 0xb68   :  { %v1935_v58 = vmul.f32 %v4683_v57, %v1934_v29 }
 0xb69   :  { %v1945_v60 = vrot.slane %v1885_v55, %v4936_v28 }
 0xb6a   :  { %v1937_v0 = vadd.f32 %v1936_v35, %v1935_v58 }
 0xb6b   :  { %1946 = vrot.lane.b32.xlu1 %v1945_v60, %s4817_s25 }
 0xb6c   :  { %v1957_v36 = vrot.slane %v1937_v0, %v4936_v28 }
 0xb6e   :  { %1958 = vrot.lane.b32.xlu0 %v1957_v36, %s4817_s25 }
 0xb6f   :  { %2139 = vrot.lane.b32.xlu1 %v5430_v37, %s4817_s25 }
 0xbdd   :  { %v1947_v34 = vpop.permute.xlu1 %1946 }
 0xbde   :  { %1949 = vst.msk [vmem:[#allocation7 + $0xa] sm:$0x3] %vm673_vm2, %v1947_v34 }
 0xbe0   :  { %v1959_v43 = vpop.permute.xlu0 %1958 }
 0xbe1   :  { %1961 = vst.msk [vmem:[#allocation7 + $0x4] sm:$0x3] %vm687_vm3, %v1959_v43  ;;  %v1962_v47 = vsel %vm689_vm4, %v1947_v34, %v1959_v43 }
 0xbe2   :  { %2028 = vmatmul.mubr.f32.vlgmr.msra.gmra.mrb[12].mxu0 %v1962_v47  ;;  %3999 = vmatmul.mubr.f32.vlgmr.msra.gmra.mrb[18].mxu1 %v1962_v47 }
 0xbe3   :  { %4482 = vmatpush1.bf16.msra.mxu0 %v4921_v19  ;;  %4513 = vmatpush3.bf16.msra.mxu1 %v5003_v18 }
 0xbe4   :  { %4484 = vmatprep.subr.bf16.mxu0 %v4927_v24  ;;  %4514 = vmatprep.subr.bf16.mxu1 %v4815_v25 }
 0xbe5   :  { %2279 = vmatprep.mubr.f32.mxu0 %v4813_v1  ;;  %4033 = vmatprep.mubr.msk.f32.mxu1 %vm4816_vm1, %v4813_v1 }
 0xbe7   :  { %4486 = vmatpush1.bf16.msra.mxu0 %v4946_v33  ;;  %4516 = vmatpush3.bf16.msra.mxu1 %v5015_v31 }
 0xbe8   :  { %4488 = vmatprep.subr.bf16.mxu0 %v4961_v44  ;;  %4517 = vmatprep.subr.bf16.mxu1 %v4815_v25 }
 0xbeb   :  { %4490 = vmatpush1.bf16.msra.mxu0 %v4968_v49  ;;  %4519 = vmatpush3.bf16.msra.mxu1 %v5027_v41 }
 0xbec   :  { %4492 = vmatprep.subr.bf16.mxu0 %v4988_v3  ;;  %4520 = vmatprep.subr.bf16.mxu1 %v4815_v25  ;;  %v2104_v3 = vld [vmem:[#allocation2 + $0x24] sm:$0x3f] }
 0xbef   :  { %4494 = vmatpush1.bf16.msra.mxu0 %v4992_v6  ;;  %4522 = vmatpush3.bf16.msra.mxu1 %v5037_v50  ;;  %v2140_v50 = vpop.permute.xlu1 %2139 }
 0xbf0   :  { %4496 = vmatprep.subr.bf16.mxu0 %v4996_v12  ;;  %4523 = vmatprep.subr.bf16.mxu1 %v4815_v25  ;;  %v2182_v9 = vrot.slane %v2140_v50, 4 }
 0xbf3   :  { %4498 = vmatpush1.bf16.msra.mxu0 %v5000_v17  ;;  %4525 = vmatpush3.bf16.msra.mxu1 %v5042_v53  ;;  %v2141_v53 = vrot.slane %v2140_v50, 2  ;;  %v2477_v50 = vld [vmem:[%s5844_s5 + $0x18] sm:$0xff] }
 0xbf4   :  { %4500 = vmatprep.subr.bf16.mxu0 %v5005_v20  ;;  %4526 = vmatprep.subr.bf16.mxu1 %v4815_v25 }
 0xbf7   :  { %4502 = vmatpush1.bf16.msra.mxu0 %v5011_v30  ;;  %4528 = vmatpush3.bf16.msra.mxu1 %v5050_v56 }
 0xbf8   :  { %4504 = vmatprep.subr.bf16.mxu0 %v5017_v32  ;;  %4529 = vmatprep.subr.bf16.mxu1 %v4815_v25 }
 0xbfb   :  { %4506 = vmatpush1.bf16.msra.mxu0 %v5023_v40  ;;  %4531 = vmatpush3.bf16.msra.mxu1 %v5056_v59  ;;  %v2115_v40 = vrot.slane %v2104_v3, 2 }
 0xbfc   :  { %4508 = vmatprep.subr.bf16.mxu0 %v5029_v42  ;;  %4532 = vmatprep.subr.bf16.mxu1 %v4815_v25  ;;  %v2132_v25 = vrot.slane %v1962_v47, %v4936_v28 }
 0xbff   :  { %4510 = vmatpush1.bf16.msra.mxu0 %v5033_v48  ;;  %4534 = vmatpush3.bf16.msra.mxu1 %v5062_v62  ;;  %v2161_v62 = vrot.slane %v5430_v37, 4  ;;  %v5485_v37 = vld [vmem:[#allocation2] sm:$0x3f] }
 0xcb5   :  { %v2029_v1 = vpop.f32.mrb[12].mxu0  ;;  %v2100_v19 = vpop.f32.mrb[18].mxu1 }
 0xcb6   :  { %v2030_v24 = vadd.f32 %v2029_v1, %v5124_v16  ;;  %v2101_v33 = vadd.f32 %v2100_v19, %v5135_v38  ;;  %v2031_v44 = vpop.f32.mrb[13].mxu0  ;;  %v4000_v49 = vpop.f32.mrb[19].mxu1 }
 0xcb7   :  { %v2032_v6 = vadd.f32 %v2031_v44, %v5127_v21 }
 0xcb8   :  { %v2106_v12 = vadd.f32 %v2104_v3, %v2030_v24  ;;  %v2177_v17 = vrot.slane %v2101_v33, %v4936_v28  ;;  %v2163_v7 = vadd.f32 %v2161_v62, %v2101_v33  ;;  %v2356_v3 = vld [vmem:[#allocation2 + $0x2a] sm:$0x3f] }
 0xcb9   :  { %v2150_v18 = vrot.slane %v2032_v6, %v4936_v28 }
 0xcba   :  { %v3576_v20 = vmul.f32 -1.442695, %v2106_v12  ;;  %2178 = vrot.lane.b32.xlu1 %v2177_v17, %s4817_s25  ;;  %v3578_v46 = vmul.f32 -1.442695, %v2163_v7  ;;  %v2480_v7 = vld [vmem:[%s5844_s5 + $0x30] sm:$0xff] }
 0xcbb   :  { %2151 = vrot.lane.b32.xlu0 %v2150_v18, %s4817_s25 }
 0xcbc   :  { %4684 = vpow2.f32 %v3576_v20 }
 0xcbe   :  { %2133 = vrot.lane.b32.xlu1 %v2132_v25, %s4817_s25 }
 0xcc6   :  { %v4685_v30 = vpop.eup %4684 }
 0xcc7   :  { %v2110_v31 = vadd.f32 1.0, %v4685_v30 }
 0xcc9   :  { %4686 = vrcp.f32 %v2110_v31 }
 0xcd3   :  { %v4687_v32 = vpop.eup %4686 }
 0xcd4   :  { %v2113_v41 = vmul.f32 %v4687_v32, %v2032_v6  ;;  %v2119_v52 = vsub.f32 1.0, %v4687_v32 }
 0xcd6   :  { %v2117_v42 = vadd.f32 %v2115_v40, %v2113_v41  ;;  %v2474_v40 = vld [vmem:[%s5844_s5] sm:$0xff]  ;;  %v2475_v41 = vld [vmem:[%s5844_s5 + $0x8] sm:$0xff] }
 0xcd8   :  { %4688 = vtanh.f32 %v2117_v42  ;;  %v2476_v42 = vld [vmem:[%s5844_s5 + $0x10] sm:$0xff] }
 0xce2   :  { %v4689_v48 = vpop.eup %4688 }
 0xce3   :  { %2121 = vrot.lane.b32.xlu0 %v4689_v48, %s4817_s25  ;;  %v4535_v48 = vpack.c.bf16 %v2475_v41, %v2474_v40  ;;  %v5562_v40 = vld [vmem:[#allocation7 + $0x4] sm:$0x3]  ;;  %v5564_v41 = vld [vmem:[#allocation7 + $0xa] sm:$0x3] }
 0xce5   :  { %4536 = vmatprep.subr.bf16.mxu0 %v4535_v48 }
 0xd2c   :  { %v2179_v5 = vpop.permute.xlu1 %2178 }
 0xd2d   :  { %v2152_v56 = vpop.permute.xlu0 %2151 }
 0xd2e   :  { %v2154_v59 = vadd.f32 %v2152_v56, %v2141_v53  ;;  %v4539_v53 = vpack.c.bf16 %v2477_v50, %v2476_v42  ;;  %v2478_v56 = vld [vmem:[%s5844_s5 + $0x20] sm:$0xff]  ;;  %v5570_v50 = vld [vmem:[#allocation7 + $0x6] sm:$0x3] }
 0xd30   :  { %v3577_v39 = vmul.f32 -1.442695, %v2154_v59  ;;  %v2134_v23 = vpop.permute.xlu1 %2133  ;;  %v2479_v59 = vld [vmem:[%s5844_s5 + $0x28] sm:$0xff] }
 0xd31   :  { %v2136_v45 = vmul.f32 %v4687_v32, %v2134_v23 }
 0xd32   :  { %4690 = vpow2.f32 %v3577_v39  ;;  %v4543_v39 = vpack.c.bf16 %v2479_v59, %v2478_v56  ;;  %v2506_v56 = vcombine.low %v5562_v40, %v5570_v50  ;;  %v5576_v59 = vld [vmem:[#allocation7 + $0x8] sm:$0x3] }
 0xd33   :  { %4692 = vpow2.f32 %v3578_v46  ;;  %v2481_v46 = vld [vmem:[%s5844_s5 + $0x38] sm:$0xff] }
 0xd3c   :  { %v4691_v10 = vpop.eup %4690 }
 0xd3d   :  { %v2158_v51 = vadd.f32 1.0, %v4691_v10  ;;  %v4693_v15 = vpop.eup %4692  ;;  %v4547_v10 = vpack.c.bf16 %v2481_v46, %v2480_v7  ;;  %v2522_v7 = vcombine.low %v5576_v59, %v5564_v41 }
 0xd3e   :  { %v2167_v54 = vadd.f32 1.0, %v4693_v15 }
 0xd3f   :  { %4694 = vrcp.f32 %v2158_v51 }
 0xd40   :  { %4696 = vrcp.f32 %v2167_v54 }
 0xd49   :  { %v4695_v61 = vpop.eup %4694 }
 0xd4a   :  { %v2181_v11 = vmul.f32 %v4695_v61, %v2179_v5  ;;  %v4697_v26 = vpop.eup %4696  ;;  %v2413_v5 = vrot.slane %v5485_v37, 4 }
 0xd4b   :  { %v2186_v29 = vsub.f32 1.0, %v4697_v26  ;;  %v2188_v35 = vmul.f32 %v4697_v26, %v2134_v23 }
 0xd4c   :  { %v2184_v22 = vadd.f32 %v2182_v9, %v2181_v11 }
 0xd4e   :  { %4698 = vtanh.f32 %v2184_v22 }
 0xd55   :  { %v2122_v27 = vpop.permute.xlu0 %2121 }
 0xd56   :  { %v2124_v14 = vmul.f32 %v2122_v27, %v2119_v52 }
 0xd58   :  { %v4699_v57 = vpop.eup %4698  ;;  %v2137_v55 = vadd.f32 %v2136_v45, %v2124_v14 }
 0xd59   :  { %v2187_v58 = vmul.f32 %v4699_v57, %v2186_v29 }
 0xd5a   :  { %v2197_v60 = vrot.slane %v2137_v55, %v4936_v28 }
 0xd5b   :  { %v2189_v0 = vadd.f32 %v2188_v35, %v2187_v58  ;;  %v2482_v58 = vld [vmem:[%s5844_s5 + $0x40] sm:$0xff]  ;;  %v2483_v35 = vld [vmem:[%s5844_s5 + $0x48] sm:$0xff] }
 0xd5c   :  { %2198 = vrot.lane.b32.xlu0 %v2197_v60, %s4817_s25  ;;  %v4551_v60 = vpack.c.bf16 %v2483_v35, %v2482_v58  ;;  %v4819_v58 = vmov 269488144  }
 0xd5d   :  { %v2209_v36 = vrot.slane %v2189_v0, %v4936_v28  ;;  %v2484_v0 = vld [vmem:[%s5844_s5 + $0x50] sm:$0xff]  ;;  %v2634_v35 = vunpack.c.l.s4 %v4819_v58 }
 0xd5f   :  { %2210 = vrot.lane.b32.xlu1 %v2209_v36, %s4817_s25  ;;  %v2485_v36 = vld [vmem:[%s5844_s5 + $0x58] sm:$0xff] }
 0xd60   :  { %2391 = vrot.lane.b32.xlu0 %v5485_v37, %s4817_s25  ;;  %v2486_v37 = vld [vmem:[%s5844_s5 + $0x60] sm:$0xff] }
 0xdce   :  { %v2199_v34 = vpop.permute.xlu0 %2198 }
 0xdcf   :  { %2201 = vst.msk [vmem:[#allocation7 + $0xc] sm:$0x3] %vm673_vm2, %v2199_v34 }
 0xdd1   :  { %v2211_v43 = vpop.permute.xlu1 %2210 }
 0xdd2   :  { %2213 = vst.msk [vmem:[#allocation7 + $0x2] sm:$0x3] %vm687_vm3, %v2211_v43  ;;  %v2214_v47 = vsel %vm689_vm4, %v2199_v34, %v2211_v43  ;;  %v2392_v51 = vpop.permute.xlu0 %2391  ;;  %v4555_v43 = vpack.c.bf16 %v2485_v36, %v2484_v0  ;;  %v2635_v36 = vunpack.c.0.s8 %v2634_v35 }
 0xdd3   :  { %2280 = vmatmul.mubr.f32.vlgmr.msra.gmra.mrb[14].mxu0 %v2214_v47  ;;  %4034 = vmatmul.mubr.f32.vlgmr.msra.gmra.mrb[20].mxu1 %v2214_v47  ;;  %v2393_v15 = vrot.slane %v2392_v51, 2  ;;  %v2434_v29 = vrot.slane %v2392_v51, 4 }
 0xdd4   :  { %4538 = vmatpush3.bf16.msra.mxu0 %v4535_v48 }
 0xdd5   :  { %4540 = vmatprep.subr.bf16.mxu0 %v4539_v53 }
 0xdd6   :  { %v5566_v42 = vld [vmem:[#allocation7 + $0xc] sm:$0x3] }
 0xdd8   :  { %4542 = vmatpush3.bf16.msra.mxu0 %v4539_v53 }
 0xdd9   :  { %4544 = vmatprep.subr.bf16.mxu0 %v4543_v39 }
 0xddc   :  { %4546 = vmatpush3.bf16.msra.mxu0 %v4543_v39  ;;  %v5580_v39 = vld [vmem:[#allocation7 + $0x2] sm:$0x3] }
 0xddd   :  { %4548 = vmatprep.subr.bf16.mxu0 %v4547_v10 }
 0xde0   :  { %4550 = vmatpush3.bf16.msra.mxu0 %v4547_v10 }
 0xde1   :  { %4552 = vmatprep.subr.bf16.mxu0 %v4551_v60 }
 0xde4   :  { %4554 = vmatpush3.bf16.msra.mxu0 %v4551_v60  ;;  %v4820_v60 = vmov 842150450  }
 0xde5   :  { %4556 = vmatprep.subr.bf16.mxu0 %v4555_v43  ;;  %v2641_v0 = vunpack.c.l.s4 %v4820_v60 }
 0xde8   :  { %4558 = vmatpush3.bf16.msra.mxu0 %v4555_v43 }
 0xea6   :  { %v2281_v1 = vpop.f32.mrb[14].mxu0  ;;  %v2352_v19 = vpop.f32.mrb[20].mxu1 }
 0xea7   :  { %v2282_v24 = vadd.f32 %v2281_v1, %v5124_v16  ;;  %v2353_v33 = vadd.f32 %v2352_v19, %v5135_v38  ;;  %v2283_v44 = vpop.f32.mrb[15].mxu0  ;;  %v4035_v49 = vpop.f32.mrb[21].mxu1  ;;  %v2384_v16 = vrot.slane %v2214_v47, %v4936_v28  ;;  %v2487_v47 = vld [vmem:[%s5844_s5 + $0x68] sm:$0xff] }
 0xea8   :  { %v2284_v6 = vadd.f32 %v2283_v44, %v5127_v21  ;;  %v2367_v21 = vrot.slane %v2356_v3, 2  ;;  %v2488_v44 = vld [vmem:[%s5844_s5 + $0x70] sm:$0xff]  ;;  %v2489_v49 = vld [vmem:[%s5844_s5 + $0x78] sm:$0xff] }
 0xea9   :  { %v2358_v12 = vadd.f32 %v2356_v3, %v2282_v24  ;;  %v2429_v17 = vrot.slane %v2353_v33, %v4936_v28  ;;  %v2415_v11 = vadd.f32 %v2413_v5, %v2353_v33  ;;  %v4559_v24 = vpack.c.bf16 %v2487_v47, %v2486_v37 }
 0xeaa   :  { %v2402_v18 = vrot.slane %v2284_v6, %v4936_v28  ;;  %v2642_v37 = vunpack.c.0.s8 %v2641_v0  ;;  %v5597_v47 = vsub.s32 %v2635_v36, %v4908_v8 }
 0xeab   :  { %v3579_v20 = vmul.f32 -1.442695, %v2358_v12  ;;  %2430 = vrot.lane.b32.xlu0 %v2429_v17, %s4817_s25  ;;  %v3581_v22 = vmul.f32 -1.442695, %v2415_v11  ;;  %4560 = vmatprep.subr.bf16.mxu0 %v4559_v24  ;;  %v3582_v11 = vld [vmem:[%s5845_s6] ss:$0 sm:$0xff] }
 0xeac   :  { %2403 = vrot.lane.b32.xlu1 %v2402_v18, %s4817_s25  ;;  %4562 = vmatpush3.bf16.msra.mxu0 %v4559_v24  ;;  %s4823_s6 = smov [#allocation7]  }
 0xead   :  { %4700 = vpow2.f32 %v3579_v20  ;;  %v4563_v20 = vpack.c.bf16 %v2489_v49, %v2488_v44 }
 0xeaf   :  { %4564 = vmatprep.subr.bf16.mxu0 %v4563_v20 }
 0xeb0   :  { %2385 = vrot.lane.b32.xlu1 %v2384_v16, %s4817_s25  ;;  %4566 = vmatpush3.bf16.msra.mxu0 %v4563_v20 }
 0xeb7   :  { %v4701_v38 = vpop.eup %4700 }
 0xeb8   :  { %v2362_v25 = vadd.f32 1.0, %v4701_v38 }
 0xeba   :  { %4702 = vrcp.f32 %v2362_v25 }
 0xec4   :  { %v5501_v30 = vpop.eup %4702 }
 0xec5   :  { %v2365_v31 = vmul.f32 %v5501_v30, %v2284_v6  ;;  %v2371_v19 = vsub.f32 1.0, %v5501_v30 }
 0xec7   :  { %v2369_v32 = vadd.f32 %v2367_v21, %v2365_v31 }
 0xec9   :  { %4704 = vtanh.f32 %v2369_v32 }
 0xed3   :  { %v4705_v62 = vpop.eup %4704 }
 0xed4   :  { %2373 = vrot.lane.b32.xlu0 %v4705_v62, %s4817_s25 }
 0xf1d   :  { %v2431_v14 = vpop.permute.xlu0 %2430 }
 0xf1e   :  { %v2404_v54 = vpop.permute.xlu1 %2403 }
 0xf1f   :  { %v2406_v61 = vadd.f32 %v2404_v54, %v2393_v15  ;;  %v2520_v15 = vrot.slane %v2506_v56, %v4936_v28  ;;  %v2530_v54 = vrot.slane %v2522_v7, %v4936_v28 }
 0xf21   :  { %v3580_v9 = vmul.f32 -1.442695, %v2406_v61 }
 0xf22   :  { %v2386_v34 = vpop.permute.xlu1 %2385 }
 0xf23   :  { %4706 = vpow2.f32 %v3580_v9  ;;  %v2388_v3 = vmul.f32 %v5501_v30, %v2386_v34  ;;  %v4818_v9 = vmov 0  }
 0xf24   :  { %4708 = vpow2.f32 %v3581_v22  ;;  %4586 = vset.pattern.permute.xlu0 %v4818_v9  ;;  %4587 = vset.pattern.permute.xlu1 %v4818_v9 }
 0xf2d   :  { %v4707_v23 = vpop.eup %4706 }
 0xf2e   :  { %v2410_v26 = vadd.f32 1.0, %v4707_v23  ;;  %v4709_v52 = vpop.eup %4708 }
 0xf2f   :  { %v2419_v27 = vadd.f32 1.0, %v4709_v52 }
 0xf30   :  { %4710 = vrcp.f32 %v2410_v26 }
 0xf31   :  { %4712 = vrcp.f32 %v2419_v27  ;;  %v3583_v27 = vld [vmem:[%s5846_s7] ss:$0 sm:$0xff]  ;;  %s3526_s7 = sshll.u32 %s4823_s6, 4  ;;  %s3527_s7 = int_to_ptr.vmem [resolvable:$true] %s3526_s7 }
 0xf32   :  { %s4760_s13 = scalar_lea.vmem %s3527_s7, 256  ;;  %p4765_p9 = scmp.lt.s32.totalorder %s3527_s7, %s3527_s7 }
 0xf33   :  { %p4761_p8 = scmp.ne.s32.totalorder %s3527_s7, %s4760_s13  ;;  %p4766_p10 = scmp.lt.s32.totalorder %s4760_s13, %s4760_s13 }
 0xf35   :  { %p4767_p11 = por %p4766_p10, %p4765_p9 }
 0xf37   :  { %p4768_p12 = pnand %p4767_p11, %p4761_p8 }
 0xf3a   :  { %v4711_v45 = vpop.eup %4710 }
 0xf3b   :  { %v2433_v57 = vmul.f32 %v4711_v45, %v2431_v14  ;;  %v4713_v1 = vpop.eup %4712 }
 0xf3c   :  { %v2438_v12 = vsub.f32 1.0, %v4713_v1  ;;  %v2440_v38 = vmul.f32 %v4713_v1, %v2386_v34  ;;  %v4821_v34 = vmov 1414812756  }
 0xf3d   :  { %v2436_v55 = vadd.f32 %v2434_v29, %v2433_v57  ;;  %v2648_v43 = vunpack.c.l.s4 %v4821_v34 }
 0xf3f   :  { %4714 = vtanh.f32 %v2436_v55  ;;  %v3584_v55 = vld [vmem:[#allocation3] ss:$0 sm:$0xff]  ;;  %v2649_v24 = vunpack.c.0.s8 %v2648_v43 }
 0xf41   :  { %v5604_v49 = vsub.s32 %v2649_v24, %v4908_v8 }
 0xf46   :  { %v2374_v33 = vpop.permute.xlu0 %2373 }
 0xf47   :  { %v2376_v6 = vmul.f32 %v2374_v33, %v2371_v19  ;;  %v5600_v19 = vsub.s32 %v2642_v37, %v4908_v8 }
 0xf49   :  { %v4715_v17 = vpop.eup %4714  ;;  %v2389_v18 = vadd.f32 %v2388_v3, %v2376_v6 }
 0xf4a   :  { %v2439_v16 = vmul.f32 %v4715_v17, %v2438_v12 }
 0xf4b   :  { %v2449_v25 = vrot.slane %v2389_v18, %v4936_v28 }
 0xf4c   :  { %v2441_v21 = vadd.f32 %v2440_v38, %v2439_v16 }
 0xf4d   :  { %2450 = vrot.lane.b32.xlu0 %v2449_v25, %s4817_s25  ;;  %v4822_v25 = vmov 1987475062  }
 0xf4e   :  { %v2461_v31 = vrot.slane %v2441_v21, %v4936_v28  ;;  %v2655_v21 = vunpack.c.l.s4 %v4822_v25 }
 0xf50   :  { %2462 = vrot.lane.b32.xlu1 %v2461_v31, %s4817_s25 }
 0xfbf   :  { %v2451_v30 = vpop.permute.xlu0 %2450 }
 0xfc0   :  { %2453 = vst.msk [vmem:[#allocation7 + $0xe] sm:$0x3] %vm673_vm2, %v2451_v30 }
 0xfc2   :  { %v2463_v32 = vpop.permute.xlu1 %2462 }
 0xfc3   :  { %2465 = vst.msk [vmem:[#allocation7] sm:$0x3] %vm687_vm3, %v2463_v32 }
 0xfc7   :  { %v5568_v48 = vld [vmem:[#allocation7 + $0xe] sm:$0x3] }
 0xfc8   :  { %v2523_v53 = vcombine.low %v5566_v42, %v5568_v48 }
 0xfca   :  { %v5578_v62 = vld [vmem:[#allocation7] sm:$0x3]  ;;  %v2537_v10 = vrot.slane %v2523_v53, %v4936_v28  ;;  %v2656_v53 = vunpack.c.0.s8 %v2655_v21 }
 0xfcb   :  { %v2505_v46 = vcombine.low %v5578_v62, %v5580_v39 }
 0xfcc   :  { %v2538_v5 = vcombine.low %v2530_v54, %v2537_v10  ;;  %v5629_v10 = vsub.s32 %v2656_v53, %v4908_v8 }
 0xfcd   :  { %v2513_v51 = vrot.slane %v2505_v46, %v4936_v28 }
 0xfcf   :  { %v2521_v61 = vcombine.low %v2513_v51, %v2520_v15 }
 0xfd1   :  { %4068 = vmatprep.mubr.f32.mxu0 %v2521_v61 }
 0xfd2   :  { %4069 = vmatmul.mubr.f32.vlgmr.msra.gmra.mrb[16].mxu0 %v2538_v5 }
0x10a5   :  { %v4070_v22 = vpop.f32.mrb[16].mxu0 }
0x10a6   :  { %v2613_v23 = vadd.f32 %v4070_v22, %v3582_v11  ;;  %v2607_v26 = vpop.f32.mrb[17].mxu0 }
0x10a7   :  { %v2608_v52 = vadd.f32 %v3582_v11, %v2607_v26 }
0x10a8   :  { %4716 = vtanh.f32 %v2613_v23 }
0x10a9   :  { %4718 = vtanh.f32 %v2608_v52 }
0x10b2   :  { %v4717_v45 = vpop.eup %4716 }
0x10b3   :  { %v4719_v14 = vpop.eup %4718  ;;  %v2626_v29 = vmul.f32 %v4717_v45, %v3583_v27 }
0x10b4   :  { %v2625_v57 = vmul.f32 %v4719_v14, %v3583_v27 }
0x10b5   :  { %2629 = vadd.xlane.f32.xlu0 %v2626_v29  ;;  %v2804_v29 = vand.u32 127, %v74_v2 }
0x10b6   :  { %2627 = vadd.xlane.f32.xlu1 %v2625_v57 }
0x10cb   :  { %2704 = vperm.xlu0 %4586, %v3584_v55   ;;  %v5650_v55 = vsub.s32 %v2804_v29, %v4908_v8  ;;  %v2939_v29 = vsub.s32 5, %v4908_v8 }
0x1142   :  { %v2630_v1 = vpop.xlane.xlu0 %2629 }
0x1143   :  { %v2667_v33 = vrot.slane %v2630_v1, %v5597_v47  ;;  %v2674_v3 = vrot.slane %v2630_v1, %v5600_v19  ;;  %v2681_v18 = vrot.slane %v2630_v1, %v5604_v49  ;;  %v2628_v20 = vpop.xlane.xlu1 %2627  ;;  %v2688_v11 = vrot.slane %v2630_v1, %v5629_v10 }
0x1144   :  { %v2639_v31 = vrot.slane %v2628_v20, %v5597_v47  ;;  %v2646_v56 = vrot.slane %v2628_v20, %v5600_v19  ;;  %v2653_v51 = vrot.slane %v2628_v20, %v5604_v49  ;;  %v2660_v61 = vrot.slane %v2628_v20, %v5629_v10 }
0x114a   :  { %v2705_v44 = vpop.permute.xlu0 %2704 }
0x114b   :  { %v5607_v6 = vadd.f32 %v2705_v44, %v2667_v33  ;;  %v5611_v17 = vadd.f32 %v2705_v44, %v2674_v3  ;;  %v5616_v38 = vadd.f32 %v2705_v44, %v2681_v18  ;;  %v5621_v32 = vadd.f32 %v2705_v44, %v2639_v31 }
0x114c   :  { %v5626_v46 = vadd.f32 %v2705_v44, %v2646_v56  ;;  %v5634_v54 = vadd.f32 %v2705_v44, %v2653_v51  ;;  %v5639_v9 = vadd.f32 %v2705_v44, %v2660_v61  ;;  %v5644_v23 = vadd.f32 %v2705_v44, %v2688_v11 }
0x114d   :  { %v2757_v12 = vrot.slane %v5607_v6, %v4936_v28  ;;  %v2764_v16 = vrot.slane %v5611_v17, %v4936_v28  ;;  %v2771_v30 = vrot.slane %v5616_v38, %v4936_v28  ;;  %v2729_v7 = vrot.slane %v5621_v32, %v4936_v28 }
0x114e   :  { %v2736_v15 = vrot.slane %v5626_v46, %v4936_v28  ;;  %v2743_v5 = vrot.slane %v5634_v54, %v4936_v28  ;;  %v2750_v22 = vrot.slane %v5639_v9, %v4936_v28  ;;  %v2778_v26 = vrot.slane %v5644_v23, %v4936_v28 }
0x114f   :  { %2792 = vperm.xlu1 %4587, %v2757_v12  }
0x1153   :  { %2795 = vperm.xlu1 %4587, %v2764_v16  }
0x1157   :  { %2798 = vperm.xlu1 %4587, %v2771_v30  }
0x115b   :  { %2780 = vperm.xlu1 %4587, %v2729_v7  }
0x115f   :  { %2783 = vperm.xlu1 %4587, %v2736_v15  }
0x1163   :  { %2786 = vperm.xlu1 %4587, %v2743_v5  }
0x1167   :  { %2789 = vperm.xlu1 %4587, %v2750_v22  }
0x116b   :  { %2801 = vperm.xlu1 %4587, %v2778_v26  }
0x11ce   :  { %v2793_v52 = vpop.permute.xlu1 %2792 }
0x11cf   :  { %v2824_v34 = vrot.slane %v2793_v52, %v5650_v55  ;;  %v2925_v52 = vsub.s32 3, %v4908_v8 }
0x11d2   :  { %v2796_v27 = vpop.permute.xlu1 %2795 }
0x11d3   :  { %v2828_v1 = vrot.slane %v2796_v27, %v5650_v55 }
0x11d6   :  { %v2799_v45 = vpop.permute.xlu1 %2798 }
0x11d7   :  { %v2832_v33 = vrot.slane %v2799_v45, %v5650_v55  ;;  %v2932_v45 = vsub.s32 4, %v4908_v8 }
0x11da   :  { %v2781_v14 = vpop.permute.xlu1 %2780 }
0x11db   :  { %v2808_v0 = vrot.slane %v2781_v14, %v5650_v55 }
0x11de   :  { %v2784_v57 = vpop.permute.xlu1 %2783 }
0x11df   :  { %v2812_v35 = vrot.slane %v2784_v57, %v5650_v55 }
0x11e1   :  { %v2838_v37 = vsel %vm2837_vm5, %v2812_v35, %v2808_v0 }
0x11e2   :  { %v2787_v58 = vpop.permute.xlu1 %2786 }
0x11e3   :  { %v2816_v60 = vrot.slane %v2787_v58, %v5650_v55  ;;  %v2946_v58 = vsub.s32 6, %v4908_v8 }
0x11e5   :  { %v2840_v43 = vsel %vm2839_vm6, %v2816_v60, %v2838_v37  ;;  %v2953_v60 = vsub.s32 7, %v4908_v8 }
0x11e6   :  { %v2790_v36 = vpop.permute.xlu1 %2789 }
0x11e7   :  { %v2820_v2 = vrot.slane %v2790_v36, %v5650_v55 }
0x11e9   :  { %v2842_v24 = vsel %vm2841_vm7, %v2820_v2, %v2840_v43 }
0x11ea   :  { %v2844_v44 = vsel %vm2843_vm8, %v2824_v34, %v2842_v24  ;;  %v2802_v3 = vpop.permute.xlu1 %2801 }
0x11eb   :  { %v2836_v12 = vrot.slane %v2802_v3, %v5650_v55  ;;  %v2846_v18 = vsel %vm2845_vm9, %v2828_v1, %v2844_v44 }
0x11ec   :  { %v2848_v20 = vsel %vm2847_vm10, %v2832_v33, %v2846_v18 }
0x11ed   :  { %v2850_v16 = vsel %vm2849_vm11, %v2836_v12, %v2848_v20 }
0x11ee   :  { %v2853_v25 = vsel %vm2852_vm12, %v2850_v16, -inf }
0x11ef   :  { %2854 = vmax.xlane.f32.xlu0 %v2853_v25 }
0x127c   :  { %v2855_v21 = vpop.xlane.xlu0 %2854 }
0x127d   :  { %v2863_v31 = vrot.slane %v2855_v21, %v5597_v47  ;;  %v2870_v30 = vrot.slane %v2855_v21, %v5600_v19  ;;  %v2877_v53 = vrot.slane %v2855_v21, %v5604_v49  ;;  %v2884_v56 = vrot.slane %v2855_v21, %v5629_v10 }
0x127f   :  { %v2885_v7 = vcombine.low %v2863_v31, %v2870_v30  ;;  %v2886_v51 = vcombine.low %v2877_v53, %v2884_v56 }
0x1281   :  { %v2893_v15 = vrot.slane %v2885_v7, %v4936_v28  ;;  %v2900_v61 = vrot.slane %v2886_v51, %v4936_v28 }
0x1283   :  { %v2901_v5 = vcombine.low %v2893_v15, %v2900_v61 }
0x1285   :  { %v2905_v11 = vrot.slane %v2901_v5, %v5098_v63  ;;  %v2912_v22 = vrot.slane %v2901_v5, %v5104_v4  ;;  %v2919_v26 = vrot.slane %v2901_v5, %v5109_v13  ;;  %v2926_v27 = vrot.slane %v2901_v5, %v2925_v52 }
0x1286   :  { %v2933_v14 = vrot.slane %v2901_v5, %v2932_v45  ;;  %v2940_v57 = vrot.slane %v2901_v5, %v2939_v29  ;;  %v2947_v35 = vrot.slane %v2901_v5, %v2946_v58  ;;  %v2954_v0 = vrot.slane %v2901_v5, %v2953_v60 }
0x1287   :  { %2907 = vbcast.lane.b32.xlu1 %v2905_v11, 256 }
0x128b   :  { %2914 = vbcast.lane.b32.xlu1 %v2912_v22, 256 }
0x128f   :  { %2921 = vbcast.lane.b32.xlu1 %v2919_v26, 256 }
0x1293   :  { %2928 = vbcast.lane.b32.xlu1 %v2926_v27, 256 }
0x1297   :  { %2935 = vbcast.lane.b32.xlu1 %v2933_v14, 256 }
0x129b   :  { %2942 = vbcast.lane.b32.xlu1 %v2940_v57, 256 }
0x129f   :  { %2949 = vbcast.lane.b32.xlu1 %v2947_v35, 256 }
0x12a3   :  { %2956 = vbcast.lane.b32.xlu1 %v2954_v0, 256 }
0x12f9   :  { %v2908_v36 = vpop.permute.xlu1 %2907 }
0x12fa   :  { %v2964_v37 = vrot.slane %v2908_v36, %v4936_v28 }
0x12fc   :  { %v3022_v2 = vsub.f32 %v5621_v32, %v2964_v37 }
0x12fd   :  { %v2915_v34 = vpop.permute.xlu1 %2914 }
0x12fe   :  { %v3030_v43 = vmul.f32 1.442695, %v3022_v2  ;;  %v2971_v1 = vrot.slane %v2915_v34, %v4936_v28 }
0x1300   :  { %4720 = vpow2.f32 %v3030_v43  ;;  %v3023_v24 = vsub.f32 %v5626_v46, %v2971_v1 }
0x1301   :  { %v2922_v33 = vpop.permute.xlu1 %2921 }
0x1302   :  { %v3032_v44 = vmul.f32 1.442695, %v3023_v24  ;;  %v2978_v3 = vrot.slane %v2922_v33, %v4936_v28 }
0x1304   :  { %4722 = vpow2.f32 %v3032_v44  ;;  %v3024_v12 = vsub.f32 %v5634_v54, %v2978_v3 }
0x1305   :  { %v2929_v18 = vpop.permute.xlu1 %2928 }
0x1306   :  { %v3034_v20 = vmul.f32 1.442695, %v3024_v12  ;;  %v2985_v16 = vrot.slane %v2929_v18, %v4936_v28 }
0x1308   :  { %4724 = vpow2.f32 %v3034_v20  ;;  %v3025_v32 = vsub.f32 %v5639_v9, %v2985_v16 }
0x1309   :  { %v2936_v25 = vpop.permute.xlu1 %2935 }
0x130a   :  { %v5700_v21 = vpop.eup %4720  ;;  %v3036_v31 = vmul.f32 1.442695, %v3025_v32  ;;  %v2992_v46 = vrot.slane %v2936_v25, %v4936_v28 }
0x130b   :  { %v3060_v30 = vrot.slane %v5700_v21, %v4936_v28 }
0x130c   :  { %4726 = vpow2.f32 %v3036_v31  ;;  %v3026_v53 = vsub.f32 %v5607_v6, %v2992_v46 }
0x130d   :  { %3111 = vperm.xlu0 %4586, %v3060_v30   ;;  %v2943_v54 = vpop.permute.xlu1 %2942 }
0x130e   :  { %v5706_v56 = vpop.eup %4722  ;;  %v3038_v7 = vmul.f32 1.442695, %v3026_v53  ;;  %v2999_v51 = vrot.slane %v2943_v54, %v4936_v28 }
0x130f   :  { %v3067_v9 = vrot.slane %v5706_v56, %v4936_v28 }
0x1310   :  { %4728 = vpow2.f32 %v3038_v7  ;;  %v3027_v15 = vsub.f32 %v5611_v17, %v2999_v51 }
0x1311   :  { %3114 = vperm.xlu1 %4587, %v3067_v9   ;;  %v2950_v61 = vpop.permute.xlu1 %2949 }
0x1312   :  { %v5712_v5 = vpop.eup %4724  ;;  %v3040_v11 = vmul.f32 1.442695, %v3027_v15  ;;  %v3006_v6 = vrot.slane %v2950_v61, %v4936_v28 }
0x1313   :  { %v3074_v22 = vrot.slane %v5712_v5, %v4936_v28 }
0x1314   :  { %4730 = vpow2.f32 %v3040_v11  ;;  %v3028_v26 = vsub.f32 %v5616_v38, %v3006_v6 }
0x1315   :  { %3117 = vperm.xlu1 %4587, %v3074_v22   ;;  %v2957_v27 = vpop.permute.xlu1 %2956 }
0x1316   :  { %v5718_v14 = vpop.eup %4726  ;;  %v3042_v57 = vmul.f32 1.442695, %v3028_v26  ;;  %v3013_v17 = vrot.slane %v2957_v27, %v4936_v28 }
0x1317   :  { %v3081_v35 = vrot.slane %v5718_v14, %v4936_v28 }
0x1318   :  { %4732 = vpow2.f32 %v3042_v57  ;;  %v3029_v0 = vsub.f32 %v5644_v23, %v3013_v17 }
0x1319   :  { %3120 = vperm.xlu1 %4587, %v3081_v35  }
0x131a   :  { %v5724_v36 = vpop.eup %4728  ;;  %v3044_v37 = vmul.f32 1.442695, %v3029_v0 }
0x131b   :  { %v3088_v38 = vrot.slane %v5724_v36, %v4936_v28 }
0x131c   :  { %4734 = vpow2.f32 %v3044_v37 }
0x131d   :  { %3123 = vperm.xlu1 %4587, %v3088_v38  }
0x131e   :  { %v5728_v2 = vpop.eup %4730 }
0x131f   :  { %v3095_v34 = vrot.slane %v5728_v2, %v4936_v28 }
0x1321   :  { %3126 = vperm.xlu1 %4587, %v3095_v34  }
0x1322   :  { %v5732_v43 = vpop.eup %4732 }
0x1323   :  { %v3102_v23 = vrot.slane %v5732_v43, %v4936_v28 }
0x1325   :  { %3129 = vperm.xlu0 %4586, %v3102_v23  }
0x1326   :  { %v5736_v1 = vpop.eup %4734 }
0x1327   :  { %v3109_v24 = vrot.slane %v5736_v1, %v4936_v28 }
0x1329   :  { %3132 = vperm.xlu1 %4587, %v3109_v24  }
0x138c   :  { %v3112_v18 = vpop.permute.xlu0 %3111 }
0x138d   :  { %v3137_v25 = vrot.slane %v3112_v18, %v5650_v55 }
0x1390   :  { %v3115_v33 = vpop.permute.xlu1 %3114 }
0x1391   :  { %v3141_v20 = vrot.slane %v3115_v33, %v5650_v55 }
0x1393   :  { %v3166_v53 = vsel %vm2837_vm5, %v3141_v20, %v3137_v25 }
0x1394   :  { %v3118_v44 = vpop.permute.xlu1 %3117 }
0x1395   :  { %v3145_v16 = vrot.slane %v3118_v44, %v5650_v55 }
0x1397   :  { %v3167_v7 = vsel %vm2839_vm6, %v3145_v16, %v3166_v53 }
0x1398   :  { %v3121_v3 = vpop.permute.xlu1 %3120 }
0x1399   :  { %v3149_v31 = vrot.slane %v3121_v3, %v5650_v55 }
0x139b   :  { %v3168_v9 = vsel %vm2841_vm7, %v3149_v31, %v3167_v7 }
0x139c   :  { %v3124_v12 = vpop.permute.xlu1 %3123 }
0x139d   :  { %v3153_v46 = vrot.slane %v3124_v12, %v5650_v55 }
0x139f   :  { %v3169_v15 = vsel %vm2843_vm8, %v3153_v46, %v3168_v9 }
0x13a0   :  { %v3127_v32 = vpop.permute.xlu1 %3126 }
0x13a1   :  { %v3157_v54 = vrot.slane %v3127_v32, %v5650_v55 }
0x13a3   :  { %v3170_v11 = vsel %vm2845_vm9, %v3157_v54, %v3169_v15 }
0x13a4   :  { %v3130_v30 = vpop.permute.xlu0 %3129 }
0x13a5   :  { %v3161_v51 = vrot.slane %v3130_v30, %v5650_v55 }
0x13a7   :  { %v3171_v22 = vsel %vm2847_vm10, %v3161_v51, %v3170_v11 }
0x13a8   :  { %v3133_v61 = vpop.permute.xlu1 %3132 }
0x13a9   :  { %v3165_v6 = vrot.slane %v3133_v61, %v5650_v55 }
0x13ab   :  { %v3172_v26 = vsel %vm2849_vm11, %v3165_v6, %v3171_v22 }
0x13ac   :  { %v3174_v27 = vsel %vm2852_vm12, %v3172_v26, 0.0 }
0x13ad   :  { %3175 = vadd.xlane.f32.xlu0 %v3174_v27 }
0x143a   :  { %v3176_v57 = vpop.xlane.xlu0 %3175 }
0x143b   :  { %4736 = vrcp.f32 %v3176_v57 }
0x1445   :  { %v4737_v17 = vpop.eup %4736 }
0x1446   :  { %v3185_v35 = vrot.slane %v4737_v17, %v5597_v47  ;;  %v3192_v0 = vrot.slane %v4737_v17, %v5600_v19  ;;  %v3199_v37 = vrot.slane %v4737_v17, %v5604_v49  ;;  %v3206_v38 = vrot.slane %v4737_v17, %v5629_v10 }
0x1448   :  { %v3207_v34 = vcombine.low %v3185_v35, %v3192_v0  ;;  %v3208_v55 = vcombine.low %v3199_v37, %v3206_v38 }
0x144a   :  { %v3215_v23 = vrot.slane %v3207_v34, %v4936_v28  ;;  %v3222_v24 = vrot.slane %v3208_v55, %v4936_v28 }
0x144c   :  { %v3223_v33 = vcombine.low %v3215_v23, %v3222_v24 }
0x144e   :  { %v3227_v44 = vrot.slane %v3223_v33, %v5098_v63  ;;  %v3234_v3 = vrot.slane %v3223_v33, %v5104_v4  ;;  %v3241_v12 = vrot.slane %v3223_v33, %v5109_v13  ;;  %v3248_v19 = vrot.slane %v3223_v33, %v2925_v52 }
0x144f   :  { %v3255_v49 = vrot.slane %v3223_v33, %v2932_v45  ;;  %v3262_v10 = vrot.slane %v3223_v33, %v2939_v29  ;;  %v3269_v63 = vrot.slane %v3223_v33, %v2946_v58  ;;  %v3276_v4 = vrot.slane %v3223_v33, %v2953_v60 }
0x1450   :  { %3229 = vbcast.lane.b32.xlu1 %v3227_v44, 256 }
0x1454   :  { %3236 = vbcast.lane.b32.xlu1 %v3234_v3, 256 }
0x1458   :  { %3243 = vbcast.lane.b32.xlu1 %v3241_v12, 256 }
0x145c   :  { %3250 = vbcast.lane.b32.xlu1 %v3248_v19, 256 }
0x1460   :  { %3257 = vbcast.lane.b32.xlu1 %v3255_v49, 256 }
0x1464   :  { %3264 = vbcast.lane.b32.xlu1 %v3262_v10, 256 }
0x1468   :  { %3271 = vbcast.lane.b32.xlu1 %v3269_v63, 256 }
0x146c   :  { %3278 = vbcast.lane.b32.xlu1 %v3276_v4, 256 }
0x14c2   :  { %v3230_v13 = vpop.permute.xlu1 %3229 }
0x14c3   :  { %v3286_v52 = vrot.slane %v3230_v13, %v4936_v28 }
0x14c5   :  { %v3344_v18 = vmul.f32 %v5700_v21, %v3286_v52 }
0x14c6   :  { %v3237_v20 = vpop.permute.xlu1 %3236 }
0x14c7   :  { %v3293_v45 = vrot.slane %v3237_v20, %v4936_v28  ;;  %3354 = vperm.xlu0 %4586, %v3344_v18  }
0x14c9   :  { %v3345_v29 = vmul.f32 %v5706_v56, %v3293_v45 }
0x14ca   :  { %v3244_v16 = vpop.permute.xlu1 %3243 }
0x14cb   :  { %v3300_v32 = vrot.slane %v3244_v16, %v4936_v28  ;;  %3366 = vperm.xlu1 %4587, %v3345_v29  }
0x14cd   :  { %v3346_v58 = vmul.f32 %v5712_v5, %v3300_v32 }
0x14ce   :  { %v3251_v8 = vpop.permute.xlu1 %3250 }
0x14cf   :  { %v3307_v60 = vrot.slane %v3251_v8, %v4936_v28  ;;  %3378 = vperm.xlu1 %4587, %v3346_v58  }
0x14d1   :  { %v3347_v25 = vmul.f32 %v5718_v14, %v3307_v60 }
0x14d2   :  { %v3258_v31 = vpop.permute.xlu1 %3257 }
0x14d3   :  { %v3314_v21 = vrot.slane %v3258_v31, %v4936_v28  ;;  %3390 = vperm.xlu1 %4587, %v3347_v25  }
0x14d5   :  { %v3348_v46 = vmul.f32 %v5724_v36, %v3314_v21 }
0x14d6   :  { %v3265_v30 = vpop.permute.xlu1 %3264 }
0x14d7   :  { %v3321_v56 = vrot.slane %v3265_v30, %v4936_v28  ;;  %3402 = vperm.xlu1 %4587, %v3348_v46  }
0x14d9   :  { %v3349_v53 = vmul.f32 %v5728_v2, %v3321_v56 }
0x14da   :  { %v3272_v54 = vpop.permute.xlu1 %3271 }
0x14db   :  { %v3328_v5 = vrot.slane %v3272_v54, %v4936_v28  ;;  %3414 = vperm.xlu1 %4587, %v3349_v53  }
0x14dd   :  { %v3350_v7 = vmul.f32 %v5732_v43, %v3328_v5 }
0x14de   :  { %v3279_v51 = vpop.permute.xlu1 %3278 }
0x14df   :  { %v3335_v14 = vrot.slane %v3279_v51, %v4936_v28  ;;  %3426 = vperm.xlu0 %4586, %v3350_v7  }
0x14e1   :  { %v3351_v9 = vmul.f32 %v5736_v1, %v3335_v14 }
0x14e3   :  { %3438 = vperm.xlu1 %4587, %v3351_v9  }
0x14e4   :  { %4771 = shalt.err (!%p4768_p12)
}
0x14e5   :  { %s4772_s16 = scalar_lea.hbm %s5848_s9, 256 }
0x14e6   :  { %p4773_p13 = scmp.ne.s32.totalorder %s5848_s9, %s4772_s16  ;;  %p4776_p0 = scmp.lt.u32.totalorder %s4772_s16, %s5848_s9 }
0x14e8   :  { %p4778_p1 = pnand %p4776_p0, %p4773_p13 }
0x14ea   :  { %4781 = shalt.err (!%p4778_p1)
}
0x14eb   :  { %s4824_s21 = smov 32   ;;  %s4825_s22 = smov 2   ;;  %vm3456_vm13 = vcmask 1041408  }
0x14ec   :  { %3532 = dma.vmem_to_hbm [thread:$0]  %s3527_s7, 256, %s5848_s9, [#allocation6], %s4824_s21, %s4824_s21, %s4825_s22  }
0x14ed   :  { %s4826_s9 = smov [#allocation8]  }
0x14ee   :  { %s3538_s0 = sshll.u32 %s4826_s9, 4  ;;  %s3539_s0 = int_to_ptr.vmem [resolvable:$true] %s3538_s0 }
0x14ef   :  { %s4782_s1 = scalar_lea.vmem %s3539_s0, 128  ;;  %p4787_p3 = scmp.lt.s32.totalorder %s3539_s0, %s3539_s0 }
0x14f0   :  { %p4783_p2 = scmp.ne.s32.totalorder %s3539_s0, %s4782_s1  ;;  %p4788_p4 = scmp.lt.s32.totalorder %s4782_s1, %s4782_s1 }
0x14f2   :  { %p4789_p5 = por %p4788_p4, %p4787_p3 }
0x14f4   :  { %p4790_p6 = pnand %p4789_p5, %p4783_p2 }
0x1546   :  { %v3355_v28 = vpop.permute.xlu0 %3354 }
0x1547   :  { %v3363_v36 = vrot.slane %v3355_v28, %v5597_v47 }
0x1549   :  { %v3448_v2 = vmul.f32 %v3363_v36, %v5578_v62 }
0x154a   :  { %v3367_v43 = vpop.permute.xlu1 %3366 }
0x154b   :  { %v3457_v1 = vsel %vm3456_vm13, %v3448_v2, 0.0  ;;  %v3375_v15 = vrot.slane %v3367_v43, %v5597_v47 }
0x154c   :  { %v3458_v61 = vrot.slane %v3457_v1, 4 }
0x154d   :  { %v3449_v11 = vmul.f32 %v3375_v15, %v5580_v39 }
0x154e   :  { %v3459_v6 = vadd.f32 %v3458_v61, %v3457_v1  ;;  %v3379_v22 = vpop.permute.xlu1 %3378 }
0x154f   :  { %v3464_v26 = vsel %vm3456_vm13, %v3449_v11, 0.0  ;;  %v3387_v27 = vrot.slane %v3379_v22, %v5597_v47 }
0x1550   :  { %v3460_v57 = vrot.slane %v3459_v6, 2  ;;  %v3465_v17 = vrot.slane %v3464_v26, 4 }
0x1551   :  { %v3450_v35 = vmul.f32 %v3387_v27, %v5562_v40 }
0x1552   :  { %v3461_v0 = vadd.f32 %v3460_v57, %v3459_v6  ;;  %v3466_v62 = vadd.f32 %v3465_v17, %v3464_v26  ;;  %v3391_v37 = vpop.permute.xlu1 %3390 }
0x1553   :  { %v3471_v38 = vsel %vm3456_vm13, %v3450_v35, 0.0  ;;  %v3399_v34 = vrot.slane %v3391_v37, %v5597_v47 }
0x1554   :  { %v3462_v55 = vrot.slane %v3461_v0, 1  ;;  %v3467_v23 = vrot.slane %v3466_v62, 2  ;;  %v3472_v39 = vrot.slane %v3471_v38, 4 }
0x1555   :  { %v3451_v24 = vmul.f32 %v3399_v34, %v5570_v50 }
0x1556   :  { %v3463_v33 = vadd.f32 %v3462_v55, %v3461_v0  ;;  %v3468_v44 = vadd.f32 %v3467_v23, %v3466_v62  ;;  %v3473_v3 = vadd.f32 %v3472_v39, %v3471_v38  ;;  %v3403_v12 = vpop.permute.xlu1 %3402 }
0x1557   :  { %v3478_v19 = vsel %vm3456_vm13, %v3451_v24, 0.0  ;;  %v3411_v40 = vrot.slane %v3403_v12, %v5597_v47 }
0x1558   :  { %3513 = vst [vmem:[#allocation8] sm:$0x1] %v3463_v33  ;;  %v3469_v49 = vrot.slane %v3468_v44, 1  ;;  %v3474_v10 = vrot.slane %v3473_v3, 2  ;;  %v3479_v63 = vrot.slane %v3478_v19, 4 }
0x1559   :  { %v3452_v4 = vmul.f32 %v3411_v40, %v5576_v59 }
0x155a   :  { %v3470_v13 = vadd.f32 %v3469_v49, %v3468_v44  ;;  %v3475_v52 = vadd.f32 %v3474_v10, %v3473_v3  ;;  %v3480_v18 = vadd.f32 %v3479_v63, %v3478_v19  ;;  %v3415_v20 = vpop.permute.xlu1 %3414 }
0x155b   :  { %v3485_v50 = vsel %vm3456_vm13, %v3452_v4, 0.0  ;;  %v3423_v45 = vrot.slane %v3415_v20, %v5597_v47 }
0x155c   :  { %3514 = vst [vmem:[#allocation8 + $0x1] sm:$0x1] %v3470_v13  ;;  %v3476_v29 = vrot.slane %v3475_v52, 1  ;;  %v3481_v16 = vrot.slane %v3480_v18, 2  ;;  %v3486_v32 = vrot.slane %v3485_v50, 4 }
0x155d   :  { %v3453_v58 = vmul.f32 %v3423_v45, %v5564_v41 }
0x155e   :  { %v3477_v8 = vadd.f32 %v3476_v29, %v3475_v52  ;;  %v3482_v60 = vadd.f32 %v3481_v16, %v3480_v18  ;;  %v3487_v25 = vadd.f32 %v3486_v32, %v3485_v50  ;;  %v3427_v31 = vpop.permute.xlu0 %3426 }
0x155f   :  { %v3492_v59 = vsel %vm3456_vm13, %v3453_v58, 0.0  ;;  %v3435_v21 = vrot.slane %v3427_v31, %v5597_v47 }
0x1560   :  { %3515 = vst [vmem:[#allocation8 + $0x2] sm:$0x1] %v3477_v8  ;;  %v3483_v46 = vrot.slane %v3482_v60, 1  ;;  %v3488_v30 = vrot.slane %v3487_v25, 2  ;;  %v3493_v56 = vrot.slane %v3492_v59, 4 }
0x1561   :  { %v3454_v53 = vmul.f32 %v3435_v21, %v5566_v42 }
0x1562   :  { %v3484_v54 = vadd.f32 %v3483_v46, %v3482_v60  ;;  %v3489_v5 = vadd.f32 %v3488_v30, %v3487_v25  ;;  %v3494_v7 = vadd.f32 %v3493_v56, %v3492_v59  ;;  %v3439_v51 = vpop.permute.xlu1 %3438 }
0x1563   :  { %v3499_v41 = vsel %vm3456_vm13, %v3454_v53, 0.0  ;;  %v3447_v14 = vrot.slane %v3439_v51, %v5597_v47 }
0x1564   :  { %3516 = vst [vmem:[#allocation8 + $0x3] sm:$0x1] %v3484_v54  ;;  %v3490_v9 = vrot.slane %v3489_v5, 1  ;;  %v3495_v28 = vrot.slane %v3494_v7, 2  ;;  %v3500_v36 = vrot.slane %v3499_v41, 4 }
0x1565   :  { %v3455_v2 = vmul.f32 %v3447_v14, %v5568_v48 }
0x1566   :  { %v3491_v43 = vadd.f32 %v3490_v9, %v3489_v5  ;;  %v3496_v1 = vadd.f32 %v3495_v28, %v3494_v7  ;;  %v3501_v15 = vadd.f32 %v3500_v36, %v3499_v41 }
0x1567   :  { %v3506_v61 = vsel %vm3456_vm13, %v3455_v2, 0.0 }
0x1568   :  { %3517 = vst [vmem:[#allocation8 + $0x4] sm:$0x1] %v3491_v43  ;;  %v3497_v42 = vrot.slane %v3496_v1, 1  ;;  %v3502_v11 = vrot.slane %v3501_v15, 2  ;;  %v3507_v6 = vrot.slane %v3506_v61, 4 }
0x156a   :  { %v3498_v22 = vadd.f32 %v3497_v42, %v3496_v1  ;;  %v3503_v26 = vadd.f32 %v3502_v11, %v3501_v15  ;;  %v3508_v27 = vadd.f32 %v3507_v6, %v3506_v61 }
0x156c   :  { %3518 = vst [vmem:[#allocation8 + $0x5] sm:$0x1] %v3498_v22  ;;  %v3504_v47 = vrot.slane %v3503_v26, 1  ;;  %v3509_v57 = vrot.slane %v3508_v27, 2 }
0x156e   :  { %v3505_v17 = vadd.f32 %v3504_v47, %v3503_v26  ;;  %v3510_v35 = vadd.f32 %v3509_v57, %v3508_v27 }
0x1570   :  { %3519 = vst [vmem:[#allocation8 + $0x6] sm:$0x1] %v3505_v17  ;;  %v3511_v48 = vrot.slane %v3510_v35, 1 }
0x1572   :  { %v3512_v0 = vadd.f32 %v3511_v48, %v3510_v35 }
0x1574   :  { %3520 = vst [vmem:[#allocation8 + $0x7] sm:$0x1] %v3512_v0 }
0x1575   :  { %4793 = shalt.err (!%p4790_p6)
}
0x1576   :  { %s4794_s4 = scalar_lea.hbm %s5849_s10, 128 }
0x1577   :  { %p4795_p7 = scmp.ne.s32.totalorder %s5849_s10, %s4794_s4  ;;  %p4798_p8 = scmp.lt.u32.totalorder %s4794_s4, %s5849_s10 }
0x1579   :  { %p4800_p9 = pnand %p4798_p8, %p4795_p7 }
0x157b   :  { %4803 = shalt.err (!%p4800_p9)
}
0x157c   :  { %s4827_s30 = smov 16   ;;  %s4828_s11 = smov 1  }
0x157d   :  { %3544 = dma.vmem_to_hbm [thread:$0]  %s3539_s0, 128, %s5849_s10, [#allocation9], %s4827_s30, %s4827_s30, %s4828_s11  }
0x157e   :  { %4806 = dma.done.wait [#allocation6], 256  }
0x157f   :  { %4807 = vsyncadd [#allocation6], 4294967040 }
0x1580   :  { %4808 = dma.done.wait [#allocation9], 128  }
0x1581   :  { %4809 = vsyncadd [#allocation9], 4294967168 }
0x1582   :  { %3551 = vsyncpa [#allocation5], 1 }
0x1583   :  { %3552 = vsyncpa [#allocation6], 1 }
0x1584   :  { %3553 = vsyncpa [#allocation9], 1 }

</bundles_post_ra>
